<compile_context>
chip_gen: v5e
topology: v5e:2x2
jax: 0.10.0
libtpu: 0.0.40
codegen_flags: <defaults>
</compile_context>

<pallas_src>
import numpy as np
import jax
import jax.numpy as jnp
from jax import lax
from jax.experimental import pallas as pl
from jax.experimental.pallas import tpu as pltpu


# ---------------------------------------------------------------------------
# Pass A: per-quadrant foreground occupancy + 2x-downsampled instance,
#         tiled over image rows.
# ---------------------------------------------------------------------------
def _stats_resize_kernel(label_ref, img_ref, mask_ref, resized_ref, area_ref):
    i = pl.program_id(0)
    n_top = pl.num_programs(0) // 2            # row tiles in the top half

    label = label_ref[0]                       # scalar-prefetched (SMEM)
    m = mask_ref[...].astype(jnp.int32)        # (TH, W)

    C, TH, W = img_ref.shape
    TH2, W2 = TH // 2, W // 2

    # 2x nearest-neighbour (stride-2) downsample as 0/1 selection matmuls on
    # the otherwise-idle MXU.  Exact: each output element is a single img*1.
    rsel = (lax.broadcasted_iota(jnp.int32, (TH2, TH), 1)
            == 2 * lax.broadcasted_iota(jnp.int32, (TH2, TH), 0)).astype(jnp.float32)
    csel = (lax.broadcasted_iota(jnp.int32, (W, W2), 0)
            == 2 * lax.broadcasted_iota(jnp.int32, (W, W2), 1)).astype(jnp.float32)

    # make_foreground_instance: where(mask != label, 0, mask) -> binarize.
    # Downsample fg once and img per channel, multiply at quarter size
    # (selection matmuls are exact, so this equals downsample(img * fg)).
    fg = (jnp.where(m != label, 0, m) != 0).astype(jnp.float32)       # (TH, W)
    fg_ds = jnp.dot(jnp.dot(rsel, fg, preferred_element_type=jnp.float32),
                    csel, preferred_element_type=jnp.float32)         # (TH2, W2)

    for c in range(C):                         # C is small & static -> unrolled
        img_ds = jnp.dot(jnp.dot(rsel, img_ref[c], preferred_element_type=jnp.float32),
                         csel, preferred_element_type=jnp.float32)    # (TH2, W2)
        resized_ref[c] = img_ds * fg_ds

    # Quadrant occupancy of binarize(mask): static half-width slices; the
    # top/bottom split is a grid-level scalar decision because the row tiling
    # is aligned to H/2.  Quadrant order: 0=TR, 1=TL, 2=BL, 3=BR.
    binary = (m != 0).astype(jnp.float32)
    left = jnp.sum(binary[:, :W2], keepdims=True)    # (1, 1)
    right = jnp.sum(binary[:, W2:], keepdims=True)   # (1, 1)
    zero = jnp.zeros_like(left)

    @pl.when(i == 0)
    def _init():
        area_ref[...] = jnp.zeros_like(area_ref)

    @pl.when(i < n_top)
    def _top_half():
        area_ref[...] += jnp.concatenate([right, left, zero, zero], axis=1)

    @pl.when(i >= n_top)
    def _bottom_half():
        area_ref[...] += jnp.concatenate([zero, zero, left, right], axis=1)


# ---------------------------------------------------------------------------
# Pass B: paste the resized instance into the emptiest quadrant only.
# The output aliases the input image, so untouched quadrants keep their data
# and only C * (H/2) * (W/2) elements are ever written back to HBM.
# ---------------------------------------------------------------------------
def _paste_kernel(sel_ref, resized_ref, imgq_ref, out_ref):
    del sel_ref                                # only consumed by the index_maps
    r = resized_ref[...]
    out_ref[...] = jnp.where(r != 0.0, r, imgq_ref[...])


def _pick_tile_h(h_half, c, w, mask_bytes):
    """Largest row tile (multiple of 16, divides H/2) fitting comfortably in VMEM."""
    for th in (128, 64, 32, 16):
        if th > h_half or h_half % th:
            continue
        # double-buffered img + mask inputs and resized output for one step
        vmem = 2 * (c * th * w * 4 + th * w * mask_bytes + c * (th // 2) * (w // 2) * 4)
        if vmem <= 8 * 1024 * 1024:            # safe on v5e/v6e/v7x scoped VMEM
            return th
    raise ValueError("H/2 must be divisible by 16 and one row tile must fit VMEM")


def context_augmentation(img_chw, mask, label):
    """ContextAugmentation forward.

    img_chw : (C, H, W) float image (channel-first so W maps to TPU lanes;
              transpose once at the pipeline boundary if your data is HWC)
    mask    : (H, W) integer segmentation mask (int8 recommended: 4x less
              HBM traffic than int32)
    label   : scalar foreground label
    returns : (C, H, W) float32 augmented image
    """
    img = jnp.asarray(img_chw, jnp.float32)
    C, H, W = img.shape
    mask = jnp.asarray(mask)
    if mask.shape != (H, W):
        raise ValueError(f"mask shape {mask.shape} must be {(H, W)}")
    if W % 256 != 0:
        raise ValueError("W must be a multiple of 256 (quadrant width stays 128-lane aligned)")
    if H % 32 != 0:
        raise ValueError("H must be a multiple of 32 (row tiles stay 8-sublane aligned)")

    H2, W2 = H // 2, W // 2
    th = _pick_tile_h(H2, C, W, mask.dtype.itemsize)   # full-image row tile
    nt = H // th                                       # even by construction
    label_arr = jnp.asarray(label, jnp.int32).reshape(1)

    # ---- Pass A: quadrant areas + downsampled instance --------------------
    resized, area = pl.pallas_call(
        _stats_resize_kernel,
        out_shape=(jax.ShapeDtypeStruct((C, H2, W2), jnp.float32),
                   jax.ShapeDtypeStruct((1, 4), jnp.float32)),
        grid_spec=pltpu.PrefetchScalarGridSpec(
            num_scalar_prefetch=1,                         # label
            grid=(nt,),
            in_specs=[
                pl.BlockSpec((C, th, W), lambda i, lab: (0, i, 0)),      # img rows
                pl.BlockSpec((th, W), lambda i, lab: (i, 0)),            # mask rows
            ],
            out_specs=(
                pl.BlockSpec((C, th // 2, W2), lambda i, lab: (0, i, 0)),  # resized rows
                pl.BlockSpec((1, 4), lambda i, lab: (0, 0)),               # resident accumulator
            ),
        ),
        compiler_params=pltpu.CompilerParams(
            # the (1,4) area accumulator is revisited every step -> "arbitrary"
            dimension_semantics=("arbitrary",)),
    )(label_arr, img, mask)

    # Tiny glue: first-occurrence argmin over 4 floats (np.argmin semantics).
    sel = jnp.argmin(area[0]).astype(jnp.int32).reshape(1)

    # ---- Pass B: paste into the selected quadrant only ---------------------
    tb = th // 2                 # quadrant row tile (multiple of 8)
    ntb = H2 // tb               # row tiles per quadrant

    def _quad_map(i, sel_ref):   # block index inside the selected quadrant
        s = sel_ref[0]
        bottom = (s >= 2).astype(jnp.int32)                        # 0/1
        right = jnp.logical_or(s == 0, s == 3).astype(jnp.int32)   # 0/1
        return (0, i + bottom * ntb, right)

    out = pl.pallas_call(
        _paste_kernel,
        out_shape=jax.ShapeDtypeStruct((C, H, W), jnp.float32),
        grid_spec=pltpu.PrefetchScalarGridSpec(
            num_scalar_prefetch=1,                         # selected quadrant
            grid=(ntb,),
            in_specs=[
                pl.BlockSpec((C, tb, W2), lambda i, sel: (0, i, 0)),   # resized rows
                pl.BlockSpec((C, tb, W2), _quad_map),                  # img @ quadrant
            ],
            out_specs=pl.BlockSpec((C, tb, W2), _quad_map),
        ),
        # call operands are (sel, resized, img) -> img (index 2) aliases out 0
        input_output_aliases={2: 0},
        compiler_params=pltpu.CompilerParams(dimension_semantics=("parallel",)),
    )(sel, resized, img)

    return out


# ---------------------------------------------------------------------------
# Pure-numpy reference (CHW) for the correctness check.
# ---------------------------------------------------------------------------
def _reference_numpy(img_chw, mask, label):
    img = np.asarray(img_chw, np.float32)
    mask = np.asarray(mask).astype(np.int64)
    m1 = np.where(mask != label, 0, mask)
    fg = np.where(m1 != 0, 1, m1).astype(np.float32)
    inst = img * fg[None, :, :]
    H, W = mask.shape
    h2, w2 = H // 2, W // 2
    binary = np.where(mask != 0, 1, mask).astype(np.float32)
    areas = [binary[:h2, w2:].sum(), binary[:h2, :w2].sum(),
             binary[h2:, :w2].sum(), binary[h2:, w2:].sum()]
    sel = int(np.argmin(areas))
    resized = inst[:, ::2, ::2]
    quads = [(slice(0, h2), slice(w2, W)), (slice(0, h2), slice(0, w2)),
             (slice(h2, H), slice(0, w2)), (slice(h2, H), slice(w2, W))]
    out = img.copy()
    ys, xs = quads[sel]
    out[:, ys, xs] = np.where(resized != 0, resized, out[:, ys, xs])
    return out


if __name__ == "__main__":
    key = jax.random.PRNGKey(0)
    k_img, k_mask = jax.random.split(key)
    C, H, W = 3, 256, 256
    img = jax.random.uniform(k_img, (C, H, W), dtype=jnp.float32)
    mask = jax.random.randint(k_mask, (H, W), 0, 4, dtype=jnp.int32).astype(jnp.int8)
    label = 2

    # Snapshot inputs for the reference before running (pass B aliases img).
    img_np = np.asarray(img)
    mask_np = np.asarray(mask)

    run = jax.jit(context_augmentation)
    out = jax.block_until_ready(run(img, mask, label))

    ref = _reference_numpy(img_np, mask_np, label)
    np.testing.assert_allclose(np.asarray(out), ref, rtol=1e-5, atol=1e-5)
    print("KERNEL_OK")
</pallas_src>

<mosaic_0001>
module attributes {stable_mosaic.version = 11 : i64} {
  func.func @_paste_kernel(%arg0: i32, %arg1: memref<1xi32, #tpu.memory_space<smem>>, %arg2: memref<3x64x128xf32, #tpu.memory_space<vmem>>, %arg3: memref<3x64x128xf32, #tpu.memory_space<vmem>>, %arg4: memref<3x64x128xf32, #tpu.memory_space<vmem>>) attributes {dimension_semantics = [#tpu.dimension_semantics<parallel>], iteration_bounds = array<i64: 2>, scalar_prefetch = 1 : i64, scratch_operands = 0 : i64, tpu.core_type = #tpu.core_type<tc>, window_params = [{transform_indices = @transform_0, window_bounds = array<i64: 3, 64, 128>}, {transform_indices = @transform_1, window_bounds = array<i64: 3, 64, 128>}, {transform_indices = @transform_2, window_bounds = array<i64: 3, 64, 128>}]} {
    %c0 = arith.constant 0 : index
    %c0_0 = arith.constant 0 : index
    %c0_1 = arith.constant 0 : index
    %0 = vector.load %arg2[%c0, %c0_0, %c0_1] : memref<3x64x128xf32, #tpu.memory_space<vmem>>, vector<3x64x128xf32>
    %cst = arith.constant 0.000000e+00 : f32
    %1 = vector.broadcast %cst : f32 to vector<3x64x128xf32>
    %2 = arith.cmpf one, %0, %1 : vector<3x64x128xf32>
    %c0_2 = arith.constant 0 : index
    %c0_3 = arith.constant 0 : index
    %c0_4 = arith.constant 0 : index
    %3 = vector.load %arg3[%c0_2, %c0_3, %c0_4] : memref<3x64x128xf32, #tpu.memory_space<vmem>>, vector<3x64x128xf32>
    %4 = arith.select %2, %0, %3 : vector<3x64x128xi1>, vector<3x64x128xf32>
    %c0_5 = arith.constant 0 : index
    %c0_6 = arith.constant 0 : index
    %c0_7 = arith.constant 0 : index
    %5 = vector.load %arg4[%c0_5, %c0_6, %c0_7] : memref<3x64x128xf32, #tpu.memory_space<vmem>>, vector<3x64x128xf32>
    tpu.vector_store %arg4[%c0_5, %c0_6, %c0_7], %4 {strides = array<i32>} : memref<3x64x128xf32, #tpu.memory_space<vmem>>, vector<3x64x128xf32>,
    return
  }
  func.func @transform_0(%arg0: i32, %arg1: memref<1xi32, #tpu.memory_space<smem>>) -> (i32, i32, i32) {
    %c0_i32 = arith.constant 0 : i32
    %c0_i32_0 = arith.constant 0 : i32
    %c0_i32_1 = arith.constant 0 : i32
    return %c0_i32, %arg0, %c0_i32_0 : i32, i32, i32
  }
  func.func @transform_1(%arg0: i32, %arg1: memref<1xi32, #tpu.memory_space<smem>>) -> (i32, i32, i32) {
    %c0 = arith.constant 0 : index
    %0 = memref.load %arg1[%c0] : memref<1xi32, #tpu.memory_space<smem>>
    %c2_i32 = arith.constant 2 : i32
    %1 = arith.cmpi sge, %0, %c2_i32 : i32
    %2 = arith.extui %1 : i1 to i32
    %c0_i32 = arith.constant 0 : i32
    %3 = arith.cmpi eq, %0, %c0_i32 : i32
    %c3_i32 = arith.constant 3 : i32
    %4 = arith.cmpi eq, %0, %c3_i32 : i32
    %5 = arith.ori %3, %4 : i1
    %6 = arith.extui %5 : i1 to i32
    %c2_i32_0 = arith.constant 2 : i32
    %7 = arith.muli %2, %c2_i32_0 : i32
    %8 = arith.addi %arg0, %7 : i32
    %c0_i32_1 = arith.constant 0 : i32
    %c0_i32_2 = arith.constant 0 : i32
    return %c0_i32_1, %8, %6 : i32, i32, i32
  }
  func.func @transform_2(%arg0: i32, %arg1: memref<1xi32, #tpu.memory_space<smem>>) -> (i32, i32, i32) {
    %c0 = arith.constant 0 : index
    %0 = memref.load %arg1[%c0] : memref<1xi32, #tpu.memory_space<smem>>
    %c2_i32 = arith.constant 2 : i32
    %1 = arith.cmpi sge, %0, %c2_i32 : i32
    %2 = arith.extui %1 : i1 to i32
    %c0_i32 = arith.constant 0 : i32
    %3 = arith.cmpi eq, %0, %c0_i32 : i32
    %c3_i32 = arith.constant 3 : i32
    %4 = arith.cmpi eq, %0, %c3_i32 : i32
    %5 = arith.ori %3, %4 : i1
    %6 = arith.extui %5 : i1 to i32
    %c2_i32_0 = arith.constant 2 : i32
    %7 = arith.muli %2, %c2_i32_0 : i32
    %8 = arith.addi %arg0, %7 : i32
    %c0_i32_1 = arith.constant 0 : i32
    %c0_i32_2 = arith.constant 0 : i32
    return %c0_i32_1, %8, %6 : i32, i32, i32
  }
}

module attributes {stable_mosaic.version = 11 : i64} {
  func.func @_stats_resize_kernel(%arg0: i32, %arg1: memref<1xi32, #tpu.memory_space<smem>>, %arg2: memref<3x128x256xf32, #tpu.memory_space<vmem>>, %arg3: memref<128x256xi8, #tpu.memory_space<vmem>>, %arg4: memref<3x64x128xf32, #tpu.memory_space<vmem>>, %arg5: memref<1x4xf32, #tpu.memory_space<vmem>>) attributes {dimension_semantics = [#tpu.dimension_semantics<arbitrary>], iteration_bounds = array<i64: 2>, scalar_prefetch = 1 : i64, scratch_operands = 0 : i64, tpu.core_type = #tpu.core_type<tc>, window_params = [{transform_indices = @transform_0, window_bounds = array<i64: 3, 128, 256>}, {transform_indices = @transform_1, window_bounds = array<i64: 128, 256>}, {transform_indices = @transform_2, window_bounds = array<i64: 3, 64, 128>}, {pipeline_mode = #tpu.pipeline_mode<synchronous>, transform_indices = @transform_3, window_bounds = array<i64: 1, 4>}]} {
    %c0 = arith.constant 0 : index
    %0 = memref.load %arg1[%c0] : memref<1xi32, #tpu.memory_space<smem>>
    %c0_0 = arith.constant 0 : index
    %c0_1 = arith.constant 0 : index
    %1 = vector.load %arg3[%c0_0, %c0_1] : memref<128x256xi8, #tpu.memory_space<vmem>>, vector<128x256xi8>
    %2 = arith.extsi %1 : vector<128x256xi8> to vector<128x256xi32>
    %3 = tpu.iota {dimensions = array<i32: 1>} : vector<64x128xi32>
    %4 = tpu.iota {dimensions = array<i32: 0>} : vector<64x128xi32>
    %c2_i32 = arith.constant 2 : i32
    %5 = vector.broadcast %c2_i32 : i32 to vector<64x128xi32>
    %6 = arith.muli %5, %4 : vector<64x128xi32>
    %7 = arith.cmpi eq, %3, %6 : vector<64x128xi32>
    %8 = arith.extui %7 : vector<64x128xi1> to vector<64x128xi32>
    %9 = arith.sitofp %8 : vector<64x128xi32> to vector<64x128xf32>
    %10 = tpu.iota {dimensions = array<i32: 0>} : vector<256x128xi32>
    %11 = tpu.iota {dimensions = array<i32: 1>} : vector<256x128xi32>
    %c2_i32_2 = arith.constant 2 : i32
    %12 = vector.broadcast %c2_i32_2 : i32 to vector<256x128xi32>
    %13 = arith.muli %12, %11 : vector<256x128xi32>
    %14 = arith.cmpi eq, %10, %13 : vector<256x128xi32>
    %15 = arith.extui %14 : vector<256x128xi1> to vector<256x128xi32>
    %16 = arith.sitofp %15 : vector<256x128xi32> to vector<256x128xf32>
    %17 = vector.broadcast %0 : i32 to vector<128x256xi32>
    %18 = arith.cmpi ne, %2, %17 : vector<128x256xi32>
    %c0_i32 = arith.constant 0 : i32
    %19 = vector.broadcast %c0_i32 : i32 to vector<128x256xi32>
    %20 = arith.select %18, %19, %2 : vector<128x256xi1>, vector<128x256xi32>
    %c0_i32_3 = arith.constant 0 : i32
    %21 = vector.broadcast %c0_i32_3 : i32 to vector<128x256xi32>
    %22 = arith.cmpi ne, %20, %21 : vector<128x256xi32>
    %23 = arith.extui %22 : vector<128x256xi1> to vector<128x256xi32>
    %24 = arith.sitofp %23 : vector<128x256xi32> to vector<128x256xf32>
    %cst = arith.constant dense<0.000000e+00> : vector<64x256xf32>
    %25 = tpu.matmul %9, %24, %cst {dimension_numbers = #tpu.dot_dimension_numbers<[1], [0], [0], [1], [0, 0, 1, 1], [], []>} : vector<64x128xf32>, vector<128x256xf32>, vector<64x256xf32> -> vector<64x256xf32>
    %cst_4 = arith.constant dense<0.000000e+00> : vector<64x128xf32>
    %26 = tpu.matmul %25, %16, %cst_4 {dimension_numbers = #tpu.dot_dimension_numbers<[1], [0], [0], [1], [0, 0, 1, 1], [], []>} : vector<64x256xf32>, vector<256x128xf32>, vector<64x128xf32> -> vector<64x128xf32>
    %c0_5 = arith.constant 0 : index
    %c0_6 = arith.constant 0 : index
    %c0_7 = arith.constant 0 : index
    %27 = vector.load %arg2[%c0_5, %c0_6, %c0_7] : memref<3x128x256xf32, #tpu.memory_space<vmem>>, vector<1x128x256xf32>
    %28 = vector.shape_cast %27 : vector<1x128x256xf32> to vector<128x256xf32>
    %cst_8 = arith.constant dense<0.000000e+00> : vector<64x256xf32>
    %29 = tpu.matmul %9, %28, %cst_8 {dimension_numbers = #tpu.dot_dimension_numbers<[1], [0], [0], [1], [0, 0, 1, 1], [], []>} : vector<64x128xf32>, vector<128x256xf32>, vector<64x256xf32> -> vector<64x256xf32>
    %cst_9 = arith.constant dense<0.000000e+00> : vector<64x128xf32>
    %30 = tpu.matmul %29, %16, %cst_9 {dimension_numbers = #tpu.dot_dimension_numbers<[1], [0], [0], [1], [0, 0, 1, 1], [], []>} : vector<64x256xf32>, vector<256x128xf32>, vector<64x128xf32> -> vector<64x128xf32>
    %31 = arith.mulf %30, %26 : vector<64x128xf32>
    %c0_10 = arith.constant 0 : index
    %c0_11 = arith.constant 0 : index
    %c0_12 = arith.constant 0 : index
    %32 = vector.load %arg4[%c0_10, %c0_11, %c0_12] : memref<3x64x128xf32, #tpu.memory_space<vmem>>, vector<1x64x128xf32>
    %33 = vector.shape_cast %32 : vector<1x64x128xf32> to vector<64x128xf32>
    %34 = vector.shape_cast %31 : vector<64x128xf32> to vector<1x64x128xf32>
    tpu.vector_store %arg4[%c0_10, %c0_11, %c0_12], %34 {strides = array<i32>} : memref<3x64x128xf32, #tpu.memory_space<vmem>>, vector<1x64x128xf32>,
    %c1 = arith.constant 1 : index
    %c0_13 = arith.constant 0 : index
    %c0_14 = arith.constant 0 : index
    %35 = vector.load %arg2[%c1, %c0_13, %c0_14] : memref<3x128x256xf32, #tpu.memory_space<vmem>>, vector<1x128x256xf32>
    %36 = vector.shape_cast %35 : vector<1x128x256xf32> to vector<128x256xf32>
    %cst_15 = arith.constant dense<0.000000e+00> : vector<64x256xf32>
    %37 = tpu.matmul %9, %36, %cst_15 {dimension_numbers = #tpu.dot_dimension_numbers<[1], [0], [0], [1], [0, 0, 1, 1], [], []>} : vector<64x128xf32>, vector<128x256xf32>, vector<64x256xf32> -> vector<64x256xf32>
    %cst_16 = arith.constant dense<0.000000e+00> : vector<64x128xf32>
    %38 = tpu.matmul %37, %16, %cst_16 {dimension_numbers = #tpu.dot_dimension_numbers<[1], [0], [0], [1], [0, 0, 1, 1], [], []>} : vector<64x256xf32>, vector<256x128xf32>, vector<64x128xf32> -> vector<64x128xf32>
    %39 = arith.mulf %38, %26 : vector<64x128xf32>
    %c1_17 = arith.constant 1 : index
    %c0_18 = arith.constant 0 : index
    %c0_19 = arith.constant 0 : index
    %40 = vector.load %arg4[%c1_17, %c0_18, %c0_19] : memref<3x64x128xf32, #tpu.memory_space<vmem>>, vector<1x64x128xf32>
    %41 = vector.shape_cast %40 : vector<1x64x128xf32> to vector<64x128xf32>
    %42 = vector.shape_cast %39 : vector<64x128xf32> to vector<1x64x128xf32>
    tpu.vector_store %arg4[%c1_17, %c0_18, %c0_19], %42 {strides = array<i32>} : memref<3x64x128xf32, #tpu.memory_space<vmem>>, vector<1x64x128xf32>,
    %c2 = arith.constant 2 : index
    %c0_20 = arith.constant 0 : index
    %c0_21 = arith.constant 0 : index
    %43 = vector.load %arg2[%c2, %c0_20, %c0_21] : memref<3x128x256xf32, #tpu.memory_space<vmem>>, vector<1x128x256xf32>
    %44 = vector.shape_cast %43 : vector<1x128x256xf32> to vector<128x256xf32>
    %cst_22 = arith.constant dense<0.000000e+00> : vector<64x256xf32>
    %45 = tpu.matmul %9, %44, %cst_22 {dimension_numbers = #tpu.dot_dimension_numbers<[1], [0], [0], [1], [0, 0, 1, 1], [], []>} : vector<64x128xf32>, vector<128x256xf32>, vector<64x256xf32> -> vector<64x256xf32>
    %cst_23 = arith.constant dense<0.000000e+00> : vector<64x128xf32>
    %46 = tpu.matmul %45, %16, %cst_23 {dimension_numbers = #tpu.dot_dimension_numbers<[1], [0], [0], [1], [0, 0, 1, 1], [], []>} : vector<64x256xf32>, vector<256x128xf32>, vector<64x128xf32> -> vector<64x128xf32>
    %47 = arith.mulf %46, %26 : vector<64x128xf32>
    %c2_24 = arith.constant 2 : index
    %c0_25 = arith.constant 0 : index
    %c0_26 = arith.constant 0 : index
    %48 = vector.load %arg4[%c2_24, %c0_25, %c0_26] : memref<3x64x128xf32, #tpu.memory_space<vmem>>, vector<1x64x128xf32>
    %49 = vector.shape_cast %48 : vector<1x64x128xf32> to vector<64x128xf32>
    %50 = vector.shape_cast %47 : vector<64x128xf32> to vector<1x64x128xf32>
    tpu.vector_store %arg4[%c2_24, %c0_25, %c0_26], %50 {strides = array<i32>} : memref<3x64x128xf32, #tpu.memory_space<vmem>>, vector<1x64x128xf32>,
    %c0_i32_27 = arith.constant 0 : i32
    %51 = vector.broadcast %c0_i32_27 : i32 to vector<128x256xi32>
    %52 = arith.cmpi ne, %2, %51 : vector<128x256xi32>
    %53 = arith.extui %52 : vector<128x256xi1> to vector<128x256xi32>
    %54 = arith.sitofp %53 : vector<128x256xi32> to vector<128x256xf32>
    %55 = vector.extract_strided_slice %54 {offsets = [0, 0], sizes = [128, 128], strides = [1, 1]} : vector<128x256xf32> to vector<128x128xf32>
    %56 = vector.shape_cast %55 : vector<128x128xf32> to vector<1x128x128xf32>
    %cst_28 = arith.constant dense<0.000000e+00> : vector<1xf32>
    %57 = vector.multi_reduction <add>, %56, %cst_28 [1, 2] : vector<1x128x128xf32> to vector<1xf32>
    %58 = vector.shape_cast %57 : vector<1xf32> to vector<1x1x1xf32>
    %59 = vector.extract %58[0, 0, 0] : f32 from vector<1x1x1xf32>
    %60 = vector.broadcast %59 : f32 to vector<1x1xf32>
    %61 = vector.extract_strided_slice %54 {offsets = [0, 128], sizes = [128, 128], strides = [1, 1]} : vector<128x256xf32> to vector<128x128xf32>
    %62 = vector.shape_cast %61 : vector<128x128xf32> to vector<1x128x128xf32>
    %cst_29 = arith.constant dense<0.000000e+00> : vector<1xf32>
    %63 = vector.multi_reduction <add>, %62, %cst_29 [1, 2] : vector<1x128x128xf32> to vector<1xf32>
    %64 = vector.shape_cast %63 : vector<1xf32> to vector<1x1x1xf32>
    %65 = vector.extract %64[0, 0, 0] : f32 from vector<1x1x1xf32>
    %66 = vector.broadcast %65 : f32 to vector<1x1xf32>
    %cst_30 = arith.constant 0.000000e+00 : f32
    %67 = vector.broadcast %cst_30 : f32 to vector<1x1xf32>
    %c0_i32_31 = arith.constant 0 : i32
    %68 = arith.cmpi eq, %arg0, %c0_i32_31 : i32
    %69 = arith.extui %68 : i1 to i32
    %c0_i32_32 = arith.constant 0 : i32
    %70 = arith.cmpi ne, %69, %c0_i32_32 : i32
    scf.if %70 {
      %cst_36 = arith.constant 0.000000e+00 : f32
      %77 = vector.broadcast %cst_36 : f32 to vector<1x4xf32>
      %c0_37 = arith.constant 0 : index
      %c0_38 = arith.constant 0 : index
      %78 = vector.load %arg5[%c0_37, %c0_38] : memref<1x4xf32, #tpu.memory_space<vmem>>, vector<1x4xf32>
      tpu.vector_store %arg5[%c0_37, %c0_38], %77 {strides = array<i32>} : memref<1x4xf32, #tpu.memory_space<vmem>>, vector<1x4xf32>,
    } else {
    }
    %c1_i32 = arith.constant 1 : i32
    %71 = arith.cmpi slt, %arg0, %c1_i32 : i32
    %72 = arith.extui %71 : i1 to i32
    %c0_i32_33 = arith.constant 0 : i32
    %73 = arith.cmpi ne, %72, %c0_i32_33 : i32
    scf.if %73 {
      %c0_36 = arith.constant 0 : index
      %c0_37 = arith.constant 0 : index
      %77 = vector.load %arg5[%c0_36, %c0_37] : memref<1x4xf32, #tpu.memory_space<vmem>>, vector<1x4xf32>
      %78 = tpu.concatenate %66, %60, %67, %67 in 1 : vector<1x1xf32>, vector<1x1xf32>, vector<1x1xf32>, vector<1x1xf32> -> vector<1x4xf32>
      %79 = arith.addf %77, %78 : vector<1x4xf32>
      %c0_38 = arith.constant 0 : index
      %c0_39 = arith.constant 0 : index
      %80 = vector.load %arg5[%c0_38, %c0_39] : memref<1x4xf32, #tpu.memory_space<vmem>>, vector<1x4xf32>
      tpu.vector_store %arg5[%c0_38, %c0_39], %79 {strides = array<i32>} : memref<1x4xf32, #tpu.memory_space<vmem>>, vector<1x4xf32>,
    } else {
    }
    %c1_i32_34 = arith.constant 1 : i32
    %74 = arith.cmpi sge, %arg0, %c1_i32_34 : i32
    %75 = arith.extui %74 : i1 to i32
    %c0_i32_35 = arith.constant 0 : i32
    %76 = arith.cmpi ne, %75, %c0_i32_35 : i32
    scf.if %76 {
      %c0_36 = arith.constant 0 : index
      %c0_37 = arith.constant 0 : index
      %77 = vector.load %arg5[%c0_36, %c0_37] : memref<1x4xf32, #tpu.memory_space<vmem>>, vector<1x4xf32>
      %78 = tpu.concatenate %67, %67, %60, %66 in 1 : vector<1x1xf32>, vector<1x1xf32>, vector<1x1xf32>, vector<1x1xf32> -> vector<1x4xf32>
      %79 = arith.addf %77, %78 : vector<1x4xf32>
      %c0_38 = arith.constant 0 : index
      %c0_39 = arith.constant 0 : index
      %80 = vector.load %arg5[%c0_38, %c0_39] : memref<1x4xf32, #tpu.memory_space<vmem>>, vector<1x4xf32>
      tpu.vector_store %arg5[%c0_38, %c0_39], %79 {strides = array<i32>} : memref<1x4xf32, #tpu.memory_space<vmem>>, vector<1x4xf32>,
    } else {
    }
    return
  }
  func.func @transform_0(%arg0: i32, %arg1: memref<1xi32, #tpu.memory_space<smem>>) -> (i32, i32, i32) {
    %c0_i32 = arith.constant 0 : i32
    %c0_i32_0 = arith.constant 0 : i32
    %c0_i32_1 = arith.constant 0 : i32
    return %c0_i32, %arg0, %c0_i32_0 : i32, i32, i32
  }
  func.func @transform_1(%arg0: i32, %arg1: memref<1xi32, #tpu.memory_space<smem>>) -> (i32, i32) {
    %c0_i32 = arith.constant 0 : i32
    %c0_i32_0 = arith.constant 0 : i32
    return %arg0, %c0_i32 : i32, i32
  }
  func.func @transform_2(%arg0: i32, %arg1: memref<1xi32, #tpu.memory_space<smem>>) -> (i32, i32, i32) {
    %c0_i32 = arith.constant 0 : i32
    %c0_i32_0 = arith.constant 0 : i32
    %c0_i32_1 = arith.constant 0 : i32
    return %c0_i32, %arg0, %c0_i32_0 : i32, i32, i32
  }
  func.func @transform_3(%arg0: i32, %arg1: memref<1xi32, #tpu.memory_space<smem>>) -> (i32, i32) {
    %c0_i32 = arith.constant 0 : i32
    %c0_i32_0 = arith.constant 0 : i32
    %c0_i32_1 = arith.constant 0 : i32
    return %c0_i32, %c0_i32_0 : i32, i32
  }
}

</mosaic_0001>

<bundles_post_ra>
// kernel: context_augmentation.3
= control target key start
LH: loop header
LB: loop body
LE: loop exit
PB: predicated region body
PF: predicated region fallthrough
CT: control target
= control target key end

     0   :  { %s1270_s0 = inlined_call_operand.<no memory space> [shape: s32[1], index: 0, kind: input, shape index: {}]   ;;  %s1271_s1 = inlined_call_operand.vmem [shape: f32[3,128,128], index: 1, kind: input, shape index: {}]   ;;  %s1272_s2 = inlined_call_operand.hbm [shape: f32[3,256,256], index: 2, kind: input, shape index: {}, may-alias: {2,3}]   ;;  %s1273_s3 = inlined_call_operand.hbm [shape: f32[3,256,256], index: 3, kind: output, shape index: {}, may-alias: {2,3}]  }
   0x1   :  { %1276 = sst [smem:[#allocation20_spill]] %s1271_s1 }
   0x2   :  { %8 = sst [smem:[#allocation3]] %s1270_s0 }
   0x3   :  { %9 = vsyncpa [#allocation6], 0 }
   0x4   :  { %11 = vsyncpa [#allocation6 + $0x1], 0 }
   0x5   :  { %12 = vsyncpa [#allocation7], 0 }
   0x6   :  { %14 = vsyncpa [#allocation7 + $0x1], 0  ;;  %s933_s14 = smov 0   ;;  %s935_s15 = smov 0  }
   0x7   :  { %s937_s16 = smov 0   ;;  %s939_s17 = smov 0  }
   0x8   :  { %s941_s18 = smov 0   ;;  %s943_s19 = smov 0  }
   0x9   :  { %s945_s20 = smov 0   ;;  %s947_s21 = smov 0  }
   0xa   :  { %s949_s0 = smov 0  }
   0xb LB: > { %1277 = sst [smem:[#allocation16_spill]] %s891_s21  ;;  %s977_s22 = sadd.s32 4294967295, %s895_s0   ;;  %s895_s0 = sphi %s949_s0, %s1298_s0   ;;  %s891_s21 = sphi %s947_s21, %s1291_s21   ;;  %s887_s20 = sphi %s945_s20, %s1290_s20   ;;  %s883_s19 = sphi %s943_s19, %s1297_s19   ;;  %s879_s18 = sphi %s941_s18, %s1296_s18   ;;  %s875_s17 = sphi %s939_s17, %s1295_s17   ;;  %s871_s16 = sphi %s937_s16, %s1294_s16   ;;  %s867_s15 = sphi %s935_s15, %s1293_s15   ;;  %s863_s14 = sphi %s933_s14, %s1292_s14  }
   0xc   : > { %s680_s23 = sadd.s32 4294967294, %s895_s0   ;;  %s981_s24 = sadd.s32 1, %s895_s0  }
   0xd   : > { %s27_s25 = sadd.s32 1, %s891_s21  ;;  %s24_s26 = ssub.s32 %s895_s0, %s981_s24 }
   0xe   : > { %p34_p0 = scmp.ne.s32.totalorder %s891_s21, %s887_s20  ;;  %p25_p1 = scmp.eq.s32.totalorder %s24_s26, 0 }
   0xf   : > { %p35_p2 = scmp.eq.s32.totalorder %s895_s0, 0  ;;  %s50_s27 = sld [smem:[#allocation3]] }
  0x10   : > { %s73_s28 = sadd.s32 1, %s883_s19  ;;  %p80_p4 = scmp.ne.s32.totalorder %s883_s19, %s879_s18 }
  0x11   : > { %s991_s29 = scalar_select %p25_p1, %s891_s21, %s27_s25  }
  0x12   : > { %p993_p3 = por %p35_p2, %p34_p0  ;;  %p86_p5 = scmp.ne.s32.totalorder %s879_s18, %s875_s17 }
  0x13   : > { %1278 = sst [smem:[#allocation17_spill]] %s991_s29  ;;  %p87_p6 = scmp.eq.s32.totalorder %s977_s22, 0 }
  0x14   : > { %p1001_p7 = por %p80_p4, %p35_p2  ;;  %s119_s5 = sadd.s32 1, %s871_s16 }
  0x15   : > { %p1006_p8 = por %p87_p6, %p86_p5  ;;  %p129_p9 = scmp.ne.s32.totalorder %s871_s16, %s867_s15 }
  0x16   : > { %p51_p10 = scmp.ge.s32.totalorder %s50_s27, 2  ;;  %p130_p11 = scmp.eq.s32.totalorder %s977_s22, 1 }
  0x17   : > { %p135_p13 = scmp.ne.s32.totalorder %s867_s15, %s863_s14  ;;  %p136_p1 = scmp.eq.s32.totalorder %s680_s23, 1 }
  0x18   : > { %s52_s7 = scalar_select %p51_p10, 1, 0 }
  0x19   : > { %p1013_p12 = por %p130_p11, %p129_p9  ;;  %p1024_p2 = por %p136_p1, %p135_p13 }
  0x1a   : > { %s681_s9 = sshll.u32 %s52_s7, 1  ;;  %p686_p4 = scmp.ge.s32.totalorder %s895_s0, 2 }
  0x1b   : > { %s58_s10 = sadd.s32 %s895_s0, %s681_s9  ;;  %s67_s11 = sadd.s32 %s681_s9, %s981_s24 }
  0x1c   : > { %s68_s12 = ssub.s32 %s58_s10, %s67_s11 }
  0x1d   : > { %p71_p0 = scmp.eq.s32.totalorder %s68_s12, 0 }
  0x1e   : > { %152 = sbr.rel (%p686_p4) target bundleno = 90 (0x5a), region = 16 }
  0x1f   : > { %s1022_s13 = scalar_select %p71_p0, %s883_s19, %s73_s28  }
  0x20   : > { %s1029_s25 = scalar_select %p71_p0, %s871_s16, %s119_s5  }
  0x21   : > { %1283 = sst [smem:[#allocation18_spill]] %s1022_s13 }
  0x22   : > { %1285 = sst [smem:[#allocation19_spill]] %s1029_s25 }
  0x23   : > { %155 = sbr.rel (!%p993_p3) target bundleno = 69 (0x45), region = 20  ;;  %s157_s26 = sand.u32 (%p993_p3), 1, %s891_s21  }
  0x24   : > { %s702_s23 = sshll.u32 (%p993_p3), %s895_s0, 6  ;;  %s705_s27 = smul.u32 (%p993_p3), 192, %s157_s26 }
  0x25   : > { %s1286_s1 = sld [smem:[#allocation20_spill]] (%p993_p3) }
  0x26   : > { %s1046_s30 = scalar_lea.vmem (%p993_p3), [#allocation4], %s705_s27 }
  0x2b   : > { %s1041_s9 = scalar_lea.vmem %s1286_s1, %s702_s23 }
  0x2c   : > { %v237_v0 = vld [vmem:[%s1041_s9] sm:$0xff]  ;;  %v239_v1 = vld [vmem:[%s1041_s9 + $0x8] sm:$0xff]  ;;  %v241_v2 = vld [vmem:[%s1041_s9 + $0x10] sm:$0xff] }
  0x2d   : > { %238 = vst [vmem:[%s1046_s30] sm:$0xff] %v237_v0  ;;  %v243_v3 = vld [vmem:[%s1041_s9 + $0x18] sm:$0xff]  ;;  %v245_v4 = vld [vmem:[%s1041_s9 + $0x20] sm:$0xff]  ;;  %v247_v5 = vld [vmem:[%s1041_s9 + $0x28] sm:$0xff] }
  0x2e   : > { %240 = vst [vmem:[%s1046_s30 + $0x8] sm:$0xff] %v239_v1  ;;  %v249_v6 = vld [vmem:[%s1041_s9 + $0x30] sm:$0xff]  ;;  %v251_v7 = vld [vmem:[%s1041_s9 + $0x38] sm:$0xff]  ;;  %v253_v8 = vld [vmem:[%s1041_s9 + $0x80] sm:$0xff] }
  0x2f   : > { %242 = vst [vmem:[%s1046_s30 + $0x10] sm:$0xff] %v241_v2  ;;  %v255_v9 = vld [vmem:[%s1041_s9 + $0x88] sm:$0xff]  ;;  %v257_v10 = vld [vmem:[%s1041_s9 + $0x90] sm:$0xff]  ;;  %v259_v11 = vld [vmem:[%s1041_s9 + $0x98] sm:$0xff] }
  0x30   : > { %244 = vst [vmem:[%s1046_s30 + $0x18] sm:$0xff] %v243_v3  ;;  %v261_v12 = vld [vmem:[%s1041_s9 + $0xa0] sm:$0xff]  ;;  %v263_v13 = vld [vmem:[%s1041_s9 + $0xa8] sm:$0xff]  ;;  %v265_v14 = vld [vmem:[%s1041_s9 + $0xb0] sm:$0xff] }
  0x31   : > { %246 = vst [vmem:[%s1046_s30 + $0x20] sm:$0xff] %v245_v4  ;;  %v267_v15 = vld [vmem:[%s1041_s9 + $0xb8] sm:$0xff]  ;;  %v269_v16 = vld [vmem:[%s1041_s9 + $0x100] sm:$0xff]  ;;  %v271_v17 = vld [vmem:[%s1041_s9 + $0x108] sm:$0xff] }
  0x32   : > { %248 = vst [vmem:[%s1046_s30 + $0x28] sm:$0xff] %v247_v5  ;;  %v273_v18 = vld [vmem:[%s1041_s9 + $0x110] sm:$0xff]  ;;  %v275_v19 = vld [vmem:[%s1041_s9 + $0x118] sm:$0xff]  ;;  %v277_v20 = vld [vmem:[%s1041_s9 + $0x120] sm:$0xff] }
  0x33   : > { %250 = vst [vmem:[%s1046_s30 + $0x30] sm:$0xff] %v249_v6  ;;  %v279_v21 = vld [vmem:[%s1041_s9 + $0x128] sm:$0xff]  ;;  %v281_v22 = vld [vmem:[%s1041_s9 + $0x130] sm:$0xff]  ;;  %v283_v23 = vld [vmem:[%s1041_s9 + $0x138] sm:$0xff] }
  0x34   : > { %252 = vst [vmem:[%s1046_s30 + $0x38] sm:$0xff] %v251_v7 }
  0x35   : > { %254 = vst [vmem:[%s1046_s30 + $0x40] sm:$0xff] %v253_v8 }
  0x36   : > { %256 = vst [vmem:[%s1046_s30 + $0x48] sm:$0xff] %v255_v9 }
  0x37   : > { %258 = vst [vmem:[%s1046_s30 + $0x50] sm:$0xff] %v257_v10 }
  0x38   : > { %260 = vst [vmem:[%s1046_s30 + $0x58] sm:$0xff] %v259_v11 }
  0x39   : > { %262 = vst [vmem:[%s1046_s30 + $0x60] sm:$0xff] %v261_v12 }
  0x3a   : > { %264 = vst [vmem:[%s1046_s30 + $0x68] sm:$0xff] %v263_v13 }
  0x3b   : > { %266 = vst [vmem:[%s1046_s30 + $0x70] sm:$0xff] %v265_v14 }
  0x3c   : > { %268 = vst [vmem:[%s1046_s30 + $0x78] sm:$0xff] %v267_v15 }
  0x3d   : > { %270 = vst [vmem:[%s1046_s30 + $0x80] sm:$0xff] %v269_v16 }
  0x3e   : > { %272 = vst [vmem:[%s1046_s30 + $0x88] sm:$0xff] %v271_v17 }
  0x3f   : > { %274 = vst [vmem:[%s1046_s30 + $0x90] sm:$0xff] %v273_v18 }
  0x40   : > { %276 = vst [vmem:[%s1046_s30 + $0x98] sm:$0xff] %v275_v19 }
  0x41   : > { %278 = vst [vmem:[%s1046_s30 + $0xa0] sm:$0xff] %v277_v20 }
  0x42   : > { %280 = vst [vmem:[%s1046_s30 + $0xa8] sm:$0xff] %v279_v21 }
  0x43   : > { %282 = vst [vmem:[%s1046_s30 + $0xb0] sm:$0xff] %v281_v22 }
  0x44   : > { %284 = vst [vmem:[%s1046_s30 + $0xb8] sm:$0xff] %v283_v23 }
  0x45 PF: > { %s1274_s5 = sand.u32 1, %s883_s19   ;;  %s296_s10 = sld [smem:[#allocation3]] }
  0x46   : > { %s706_s11 = smul.u32 192, %s1274_s5  ;;  %s897_s28 = smov 8192  }
  0x47   : > { %s710_s12 = scalar_select %p1001_p7, [#allocation0], [#allocation13] }
  0x48   : > { %s295_s23 = scalar_lea.vmem [#allocation5], %s706_s11  ;;  %711 = sst [smem:[#allocation10]] (%p1001_p7), %s897_s28 }
  0x49   : > { %s316_s26 = sld [smem:[%s710_s12]]   ;;  %s1098_s27 = sshll.u32 %s295_s23, 4  ;;  %s327_s27 = int_to_ptr.vmem [resolvable:$true] %s1098_s27 }
  0x4a   : > { %s898_s9 = smov 1024   ;;  %s899_s29 = smov 8  }
  0x4b   : > { %p297_p3 = scmp.ge.s32.totalorder %s296_s10, 2  ;;  %p299_p5 = scmp.eq.s32.totalorder %s296_s10, 0 }
  0x4c   : > { %p300_p6 = scmp.eq.s32.totalorder %s296_s10, 3  ;;  %712 = sst [smem:[#allocation10 + $0x1]] (%p1001_p7), %s898_s9 }
  0x4d   : > { %s298_s7 = scalar_select %p297_p3, 1, 0 }
  0x4e   : > { %p301_p9 = por %p300_p6, %p299_p5  ;;  %713 = sst [smem:[#allocation10 + $0x2]] (%p1001_p7), %s899_s29 }
  0x4f   : > { %s689_s30 = sshll.u32 %s298_s7, 1  ;;  %s693_s11 = sshll.u32 %s316_s26, 26 }
  0x50   : > { %s302_s12 = scalar_select %p301_p9, 1, 0 }
  0x51   : > { %s304_s23 = sadd.s32 %s895_s0, %s689_s30  ;;  %s694_s5 = sadd.s32 134217728, %s693_s11 }
  0x52   : > { %s703_s28 = sshll.u32 %s304_s23, 4  ;;  %s900_s7 = smov 256  }
  0x53   : > { %s309_s1 = sadd.s32 %s703_s28, %s302_s12  ;;  %714 = sst [smem:[#allocation10 + $0x3]] (%p1001_p7), %s900_s7 }
  0x54   : > { %s692_s10 = sshll.u32 %s309_s1, 3  ;;  %s901_s25 = smov 128  }
  0x55   : > { %s311_s9 = scalar_lea.hbm %s1272_s2, %s692_s10  ;;  %715 = sst [smem:[#allocation10 + $0x4]] (%p1001_p7), %s901_s25 }
  0x56   : > { %s324_s26 = sshll.u32 %s311_s9, 4  ;;  %716 = sst [smem:[#allocation10 + $0x5]] (%p1001_p7), %s899_s29  ;;  %s325_s26 = int_to_ptr.hbm [resolvable:$true] %s324_s26 }
  0x57   : > { %s1287_s30 = sand.u32 1, %s883_s19   ;;  %s902_s12 = smov [#allocation9]  }
  0x58   : > { %s292_s11 = scalar_lea.sflag [#allocation6], %s1287_s30 }
  0x59   : > { %717 = dma.general (%p1001_p7), %s325_s26, 3072, %s327_s27, %s292_s11, %s902_s12, [#allocation10], %s694_s5, 0  }
  0x5a PF: > { %p695_p10 = scmp.ge.s32.totalorder %s895_s0, 1  ;;  %p347_p11 = scmp.lt.s32.totalorder %s895_s0, 3 }
  0x5c   : > { %p348_p13 = pnand %p695_p10, %p347_p11 }
  0x5d   : > { %s354_s1 = sand.u32 (!%p348_p13), 1, %s887_s20   ;;  %s360_s21 = sand.u32 (!%p348_p13), 1, %s879_s18  }
  0x5e   : > { %351 = sbr.rel (%p348_p13) target bundleno = 147 (0x93), region = 62  ;;  %s361_s23 = scalar_lea.sflag (!%p348_p13), [#allocation6], %s360_s21 }
  0x5f   : > { %s707_s13 = smul.u32 (!%p348_p13), 192, %s354_s1 }
  0x60   : > { %s708_s29 = smul.u32 (!%p348_p13), 192, %s360_s21 }
  0x61   : > { %s1127_s25 = scalar_lea.vmem (!%p348_p13), [#allocation4], %s707_s13 }
  0x62   : > { %s1129_s4 = scalar_lea.vmem (!%p348_p13), [#allocation5], %s708_s29 }
  0x63   : > { %854 = dma.done.wait (%p1006_p8), %s361_s23, 3072  }
  0x64   : > { %856 = vsyncadd (%p1006_p8), %s361_s23, 4294964224  ;;  %s387_s20 = sand.u32 1, %s867_s15   ;;  %v411_v24 = vld [vmem:[%s1127_s25] sm:$0xff]  ;;  %v412_v26 = vld [vmem:[%s1127_s25 + $0x8] sm:$0xff] }
  0x65   : > { %s709_s5 = smul.u32 192, %s387_s20  ;;  %v459_v25 = vld [vmem:[%s1129_s4] sm:$0xff]  ;;  %vm435_vm0 = vcmp.ne.f32.partialorder %v411_v24, 0.0  ;;  %vm436_vm1 = vcmp.ne.f32.partialorder %v412_v26, 0.0  ;;  %v460_v27 = vld [vmem:[%s1129_s4 + $0x8] sm:$0xff]  ;;  %v413_v28 = vld [vmem:[%s1127_s25 + $0x10] sm:$0xff] }
  0x66   : > { %v461_v29 = vld [vmem:[%s1129_s4 + $0x10] sm:$0xff]  ;;  %v483_v30 = vsel %vm435_vm0, %v411_v24, %v459_v25  ;;  %v484_v31 = vsel %vm436_vm1, %v412_v26, %v460_v27  ;;  %vm437_vm2 = vcmp.ne.f32.partialorder %v413_v28, 0.0  ;;  %v414_v32 = vld [vmem:[%s1127_s25 + $0x18] sm:$0xff]  ;;  %v415_v34 = vld [vmem:[%s1127_s25 + $0x20] sm:$0xff]  ;;  %s1215_s27 = scalar_lea.sflag [#allocation7], %s387_s20 }
  0x67   : > { %v462_v33 = vld [vmem:[%s1129_s4 + $0x18] sm:$0xff]  ;;  %s1147_s6 = scalar_lea.vmem [#allocation8], %s709_s5  ;;  %v485_v35 = vsel %vm437_vm2, %v413_v28, %v461_v29  ;;  %vm438_vm3 = vcmp.ne.f32.partialorder %v414_v32, 0.0  ;;  %vm439_vm4 = vcmp.ne.f32.partialorder %v415_v34, 0.0  ;;  %v463_v36 = vld [vmem:[%s1129_s4 + $0x20] sm:$0xff]  ;;  %v416_v37 = vld [vmem:[%s1127_s25 + $0x28] sm:$0xff] }
  0x68   : > { %507 = vst [vmem:[%s1147_s6] sm:$0xff] %v483_v30  ;;  %v464_v38 = vld [vmem:[%s1129_s4 + $0x28] sm:$0xff]  ;;  %v486_v39 = vsel %vm438_vm3, %v414_v32, %v462_v33  ;;  %v487_v40 = vsel %vm439_vm4, %v415_v34, %v463_v36  ;;  %vm440_vm5 = vcmp.ne.f32.partialorder %v416_v37, 0.0  ;;  %v417_v41 = vld [vmem:[%s1127_s25 + $0x30] sm:$0xff]  ;;  %v418_v43 = vld [vmem:[%s1127_s25 + $0x38] sm:$0xff] }
  0x69   : > { %508 = vst [vmem:[%s1147_s6 + $0x8] sm:$0xff] %v484_v31  ;;  %v465_v42 = vld [vmem:[%s1129_s4 + $0x30] sm:$0xff]  ;;  %v488_v44 = vsel %vm440_vm5, %v416_v37, %v464_v38  ;;  %vm441_vm6 = vcmp.ne.f32.partialorder %v417_v41, 0.0  ;;  %vm442_vm7 = vcmp.ne.f32.partialorder %v418_v43, 0.0  ;;  %v466_v45 = vld [vmem:[%s1129_s4 + $0x38] sm:$0xff]  ;;  %v419_v46 = vld [vmem:[%s1127_s25 + $0x40] sm:$0xff] }
  0x6a   : > { %509 = vst [vmem:[%s1147_s6 + $0x10] sm:$0xff] %v485_v35  ;;  %v467_v47 = vld [vmem:[%s1129_s4 + $0x40] sm:$0xff]  ;;  %v489_v48 = vsel %vm441_vm6, %v417_v41, %v465_v42  ;;  %vm443_vm8 = vcmp.ne.f32.partialorder %v419_v46, 0.0  ;;  %v420_v49 = vld [vmem:[%s1127_s25 + $0x48] sm:$0xff]  ;;  %v421_v51 = vld [vmem:[%s1127_s25 + $0x50] sm:$0xff]  ;;  %v490_v52 = vsel %vm442_vm7, %v418_v43, %v466_v45 }
  0x6b   : > { %510 = vst [vmem:[%s1147_s6 + $0x18] sm:$0xff] %v486_v39  ;;  %v468_v50 = vld [vmem:[%s1129_s4 + $0x48] sm:$0xff]  ;;  %vm444_vm9 = vcmp.ne.f32.partialorder %v420_v49, 0.0  ;;  %vm445_vm10 = vcmp.ne.f32.partialorder %v421_v51, 0.0  ;;  %v469_v53 = vld [vmem:[%s1129_s4 + $0x50] sm:$0xff]  ;;  %v422_v54 = vld [vmem:[%s1127_s25 + $0x58] sm:$0xff]  ;;  %v491_v55 = vsel %vm443_vm8, %v419_v46, %v467_v47 }
  0x6c   : > { %511 = vst [vmem:[%s1147_s6 + $0x20] sm:$0xff] %v487_v40  ;;  %vm446_vm11 = vcmp.ne.f32.partialorder %v422_v54, 0.0  ;;  %v470_v56 = vld [vmem:[%s1129_s4 + $0x58] sm:$0xff]  ;;  %v423_v57 = vld [vmem:[%s1127_s25 + $0x60] sm:$0xff]  ;;  %v424_v58 = vld [vmem:[%s1127_s25 + $0x68] sm:$0xff]  ;;  %v492_v59 = vsel %vm444_vm9, %v420_v49, %v468_v50  ;;  %v493_v62 = vsel %vm445_vm10, %v421_v51, %v469_v53 }
  0x6d   : > { %512 = vst [vmem:[%s1147_s6 + $0x28] sm:$0xff] %v488_v44  ;;  %vm447_vm12 = vcmp.ne.f32.partialorder %v423_v57, 0.0  ;;  %v471_v60 = vld [vmem:[%s1129_s4 + $0x60] sm:$0xff]  ;;  %v425_v61 = vld [vmem:[%s1127_s25 + $0x70] sm:$0xff]  ;;  %vm448_vm13 = vcmp.ne.f32.partialorder %v424_v58, 0.0  ;;  %v472_v63 = vld [vmem:[%s1129_s4 + $0x68] sm:$0xff]  ;;  %v494_v2 = vsel %vm446_vm11, %v422_v54, %v470_v56 }
  0x6e   : > { %513 = vst [vmem:[%s1147_s6 + $0x30] sm:$0xff] %v489_v48  ;;  %v426_v0 = vld [vmem:[%s1127_s25 + $0x78] sm:$0xff]  ;;  %v427_v1 = vld [vmem:[%s1127_s25 + $0x80] sm:$0xff]  ;;  %vm449_vm14 = vcmp.ne.f32.partialorder %v425_v61, 0.0  ;;  %v473_v3 = vld [vmem:[%s1129_s4 + $0x70] sm:$0xff]  ;;  %v495_v5 = vsel %vm447_vm12, %v423_v57, %v471_v60  ;;  %v496_v8 = vsel %vm448_vm13, %v424_v58, %v472_v63 }
  0x6f   : > { %514 = vst [vmem:[%s1147_s6 + $0x38] sm:$0xff] %v490_v52  ;;  %v428_v4 = vld [vmem:[%s1127_s25 + $0x88] sm:$0xff]  ;;  %vm450_vm15 = vcmp.ne.f32.partialorder %v426_v0, 0.0  ;;  %v474_v6 = vld [vmem:[%s1129_s4 + $0x78] sm:$0xff]  ;;  %v429_v7 = vld [vmem:[%s1127_s25 + $0x90] sm:$0xff]  ;;  %vm451_vm0 = vcmp.ne.f32.partialorder %v427_v1, 0.0  ;;  %v497_v11 = vsel %vm449_vm14, %v425_v61, %v473_v3 }
  0x70   : > { %515 = vst [vmem:[%s1147_s6 + $0x40] sm:$0xff] %v491_v55  ;;  %v475_v9 = vld [vmem:[%s1129_s4 + $0x80] sm:$0xff]  ;;  %v430_v10 = vld [vmem:[%s1127_s25 + $0x98] sm:$0xff]  ;;  %vm452_vm1 = vcmp.ne.f32.partialorder %v428_v4, 0.0  ;;  %v476_v12 = vld [vmem:[%s1129_s4 + $0x88] sm:$0xff]  ;;  %v498_v14 = vsel %vm450_vm15, %v426_v0, %v474_v6  ;;  %vm453_vm2 = vcmp.ne.f32.partialorder %v429_v7, 0.0 }
  0x71   : > { %516 = vst [vmem:[%s1147_s6 + $0x48] sm:$0xff] %v492_v59  ;;  %v431_v13 = vld [vmem:[%s1127_s25 + $0xa0] sm:$0xff]  ;;  %v477_v15 = vld [vmem:[%s1129_s4 + $0x90] sm:$0xff]  ;;  %v432_v16 = vld [vmem:[%s1127_s25 + $0xa8] sm:$0xff]  ;;  %v499_v17 = vsel %vm451_vm0, %v427_v1, %v475_v9  ;;  %vm454_vm3 = vcmp.ne.f32.partialorder %v430_v10, 0.0  ;;  %v500_v20 = vsel %vm452_vm1, %v428_v4, %v476_v12 }
  0x72   : > { %517 = vst [vmem:[%s1147_s6 + $0x50] sm:$0xff] %v493_v62  ;;  %v478_v18 = vld [vmem:[%s1129_s4 + $0x98] sm:$0xff]  ;;  %v433_v19 = vld [vmem:[%s1127_s25 + $0xb0] sm:$0xff]  ;;  %vm455_vm4 = vcmp.ne.f32.partialorder %v431_v13, 0.0  ;;  %v479_v21 = vld [vmem:[%s1129_s4 + $0xa0] sm:$0xff]  ;;  %v501_v23 = vsel %vm453_vm2, %v429_v7, %v477_v15  ;;  %vm456_vm5 = vcmp.ne.f32.partialorder %v432_v16, 0.0 }
  0x73   : > { %518 = vst [vmem:[%s1147_s6 + $0x58] sm:$0xff] %v494_v2  ;;  %v434_v22 = vld [vmem:[%s1127_s25 + $0xb8] sm:$0xff]  ;;  %v480_v24 = vld [vmem:[%s1129_s4 + $0xa8] sm:$0xff]  ;;  %v502_v25 = vsel %vm454_vm3, %v430_v10, %v478_v18  ;;  %vm457_vm6 = vcmp.ne.f32.partialorder %v433_v19, 0.0  ;;  %v481_v26 = vld [vmem:[%s1129_s4 + $0xb0] sm:$0xff]  ;;  %v503_v27 = vsel %vm455_vm4, %v431_v13, %v479_v21 }
  0x74   : > { %519 = vst [vmem:[%s1147_s6 + $0x60] sm:$0xff] %v495_v5  ;;  %vm458_vm7 = vcmp.ne.f32.partialorder %v434_v22, 0.0  ;;  %v482_v28 = vld [vmem:[%s1129_s4 + $0xb8] sm:$0xff]  ;;  %v504_v29 = vsel %vm456_vm5, %v432_v16, %v480_v24  ;;  %v505_v30 = vsel %vm457_vm6, %v433_v19, %v481_v26 }
  0x75   : > { %520 = vst [vmem:[%s1147_s6 + $0x68] sm:$0xff] %v496_v8  ;;  %v506_v31 = vsel %vm458_vm7, %v434_v22, %v482_v28 }
  0x76   : > { %521 = vst [vmem:[%s1147_s6 + $0x70] sm:$0xff] %v497_v11 }
  0x77   : > { %522 = vst [vmem:[%s1147_s6 + $0x78] sm:$0xff] %v498_v14 }
  0x78   : > { %523 = vst [vmem:[%s1147_s6 + $0x80] sm:$0xff] %v499_v17 }
  0x79   : > { %524 = vst [vmem:[%s1147_s6 + $0x88] sm:$0xff] %v500_v20 }
  0x7a   : > { %525 = vst [vmem:[%s1147_s6 + $0x90] sm:$0xff] %v501_v23 }
  0x7b   : > { %526 = vst [vmem:[%s1147_s6 + $0x98] sm:$0xff] %v502_v25 }
  0x7c   : > { %527 = vst [vmem:[%s1147_s6 + $0xa0] sm:$0xff] %v503_v27 }
  0x7d   : > { %528 = vst [vmem:[%s1147_s6 + $0xa8] sm:$0xff] %v504_v29 }
  0x7e   : > { %529 = vst [vmem:[%s1147_s6 + $0xb0] sm:$0xff] %v505_v30 }
  0x7f   : > { %530 = vst [vmem:[%s1147_s6 + $0xb8] sm:$0xff] %v506_v31 }
  0x80   : > { %s539_s28 = sld [smem:[#allocation3]]  ;;  %s903_s10 = smov 1024  }
  0x81   : > { %719 = sst [smem:[#allocation12]] (%p1013_p12), %s903_s10  ;;  %s904_s9 = smov 8192  }
  0x82   : > { %720 = sst [smem:[#allocation12 + $0x1]] (%p1013_p12), %s904_s9  ;;  %s905_s7 = smov 8  }
  0x83   : > { %721 = sst [smem:[#allocation12 + $0x2]] (%p1013_p12), %s905_s7  ;;  %s906_s26 = smov 128  }
  0x84   : > { %722 = sst [smem:[#allocation12 + $0x3]] (%p1013_p12), %s906_s26  ;;  %s907_s30 = smov 256  }
  0x85   : > { %723 = sst [smem:[#allocation12 + $0x4]] (%p1013_p12), %s907_s30  ;;  %s565_s1 = sshll.u32 %s1147_s6, 4  ;;  %s566_s1 = int_to_ptr.vmem [resolvable:$true] %s565_s1 }
  0x86   : > { %p540_p7 = scmp.ge.s32.totalorder %s539_s28, 2  ;;  %p542_p8 = scmp.eq.s32.totalorder %s539_s28, 0 }
  0x87   : > { %p543_p0 = scmp.eq.s32.totalorder %s539_s28, 3  ;;  %724 = sst [smem:[#allocation12 + $0x5]] (%p1013_p12), %s905_s7 }
  0x88   : > { %s541_s11 = scalar_select %p540_p7, 1, 0 }
  0x89   : > { %p544_p1 = por %p543_p0, %p542_p8  ;;  %s908_s10 = smov [#allocation11]  }
  0x8a   : > { %s696_s12 = sshll.u32 %s541_s11, 1  ;;  %s909_s9 = smov 0  }
  0x8b   : > { %s545_s21 = scalar_select %p544_p1, 1, 0 }
  0x8c   : > { %s547_s13 = sadd.s32 %s696_s12, %s977_s22 }
  0x8d   : > { %s704_s29 = sshll.u32 %s547_s13, 4 }
  0x8e   : > { %s552_s25 = sadd.s32 %s704_s29, %s545_s21 }
  0x8f   : > { %s699_s23 = sshll.u32 %s552_s25, 3 }
  0x90   : > { %s554_s5 = scalar_lea.hbm %s1273_s3, %s699_s23 }
  0x91   : > { %s567_s28 = sshll.u32 %s554_s5, 4  ;;  %s568_s28 = int_to_ptr.hbm [resolvable:$true] %s567_s28 }
  0x92   : > { %725 = dma.general (%p1013_p12), %s566_s1, 3072, %s568_s28, %s1215_s27, %s908_s10, [#allocation12], %s909_s9, 0  }
  0x93 PF: > { %s595_s6 = sand.u32 1, %s863_s14   ;;  %p728_p3 = pnand %p686_p4, %p1024_p2 }
  0x94   : > { %s596_s22 = scalar_lea.sflag [#allocation7], %s595_s6 }
  0x95   : > { %p729_p5 = pneg %p728_p3 }
  0x97   : > { %858 = dma.done.wait (%p729_p5), %s596_s22, 3072  }
  0x98   : > { %860 = vsyncadd (%p729_p5), %s596_s22, 4294964224  ;;  %s1288_s7 = sld [smem:[#allocation19_spill]]  ;;  %p17_p12 = scmp.ge.s32.totalorder %s981_s24, 4  }
  0x99   : > { %s1289_s8 = sld [smem:[#allocation18_spill]]  ;;  %s1292_s14 = smov %s867_s15 }
  0x9a   : > { %s1290_s20 = sld [smem:[#allocation16_spill]]  ;;  %s1293_s15 = smov %s871_s16 }
  0x9b   : > { %s1291_s21 = sld [smem:[#allocation17_spill]]  ;;  %s1295_s17 = smov %s879_s18 }
  0x9c   : > { %s1296_s18 = smov %s883_s19  ;;  %s1298_s0 = smov %s981_s24 }
  0x9d   :  { %19 = sbr.rel (!%p17_p12) target bundleno = 11 (0xb), region = 129 }
  0x9e   : > { %s1294_s16 = smov %s1288_s7 }
  0x9f   : > { %s1297_s19 = smov %s1289_s8 }
  0xa2   :  { %602 = vsyncpa [#allocation6], 1 }
  0xa3   :  { %604 = vsyncpa [#allocation6 + $0x1], 1 }
  0xa4   :  { %605 = vsyncpa [#allocation7], 1 }
  0xa5   :  { %607 = vsyncpa [#allocation7 + $0x1], 1 }

// kernel: context_augmentation.2
= control target key start
LH: loop header
LB: loop body
LE: loop exit
PB: predicated region body
PF: predicated region fallthrough
CT: control target
= control target key end

     0   :  { %s4154_s0 = inlined_call_operand.<no memory space> [shape: s32[1], index: 0, kind: input, shape index: {}]   ;;  %s4155_s1 = inlined_call_operand.vmem [shape: f32[3,256,256], index: 1, kind: input, shape index: {}]   ;;  %s4156_s2 = inlined_call_operand.vmem [shape: s8[256,256], index: 2, kind: input, shape index: {}]   ;;  %s4157_s3 = inlined_call_operand.vmem [shape: f32[3,128,128], index: 3, kind: output, shape index: {0}]   ;;  %s4158_s4 = inlined_call_operand.vmem [shape: f32[1,4], index: 4, kind: output, shape index: {1}]  }
   0x1   :  { %10 = sst [smem:[#allocation3]] %s4154_s0 }
   0x2   :  { %s2479_s17 = smov 0   ;;  %s2481_s18 = smov 0  }
   0x3   :  { %s2483_s19 = smov 0  }
   0x4 LB: > { %s2495_s0 = sadd.s32 4294967295, %s2446_s19   ;;  %s2498_s20 = sadd.s32 1, %s2446_s19   ;;  %s2446_s19 = sphi %s2483_s19, %s4306_s19   ;;  %s2442_s18 = sphi %s2481_s18, %s4305_s18   ;;  %s2438_s17 = sphi %s2479_s17, %s4304_s17  }
   0x5   : > { %s20_s21 = ssub.s32 %s2446_s19, %s2498_s20  ;;  %s23_s22 = sadd.s32 1, %s2442_s18 }
   0x6   : > { %p21_p0 = scmp.eq.s32.totalorder %s20_s21, 0  ;;  %p30_p1 = scmp.ne.s32.totalorder %s2442_s18, %s2438_s17 }
   0x7   : > { %p31_p2 = scmp.eq.s32.totalorder %s2446_s19, 0  ;;  %p86_p3 = scmp.eq.s32.totalorder %s2495_s0, 1 }
   0x8   : > { %s2508_s23 = scalar_select %p21_p0, %s2442_s18, %s23_s22  }
   0x9   : > { %p32_p4 = por %p31_p2, %p30_p1  ;;  %p2510_p5 = por %p86_p3, %p30_p1 }
   0xa   : > { %p1963_p6 = scmp.ge.s32.totalorder %s2446_s19, 2 }
   0xc   : > { %129 = sbr.rel (%p1963_p6) target bundleno = 117 (0x75), region = 16 }
  0x11   : > { %132 = sbr.rel (!%p32_p4) target bundleno = 117 (0x75), region = 20  ;;  %s134_s25 = sand.u32 (%p32_p4), 1, %s2442_s18  }
  0x12   : > { %s2387_s26 = sshll.u32 (%p32_p4), %s2446_s19, 8  ;;  %s2390_s27 = smul.u32 (%p32_p4), 768, %s134_s25 }
  0x13   : > { %s2520_s30 = scalar_lea.vmem (%p32_p4), %s4155_s1, %s2387_s26 }
  0x14   : > { %v153_v0 = vld [vmem:[%s2520_s30] sm:$0xff] (%p32_p4)  ;;  %v155_v1 = vld [vmem:[%s2520_s30 + $0x8] sm:$0xff] (%p32_p4)  ;;  %v157_v2 = vld [vmem:[%s2520_s30 + $0x10] sm:$0xff] (%p32_p4)  ;;  %s2525_s5 = scalar_lea.vmem (%p32_p4), [#allocation4], %s2390_s27 }
  0x15   : > { %154 = vst [vmem:[%s2525_s5] sm:$0xff] (%p32_p4), %v153_v0  ;;  %v159_v3 = vld [vmem:[%s2520_s30 + $0x18] sm:$0xff] (%p32_p4)  ;;  %v161_v4 = vld [vmem:[%s2520_s30 + $0x20] sm:$0xff] (%p32_p4)  ;;  %v163_v5 = vld [vmem:[%s2520_s30 + $0x28] sm:$0xff] (%p32_p4) }
  0x16   : > { %156 = vst [vmem:[%s2525_s5 + $0x8] sm:$0xff] %v155_v1  ;;  %v165_v6 = vld [vmem:[%s2520_s30 + $0x30] sm:$0xff]  ;;  %v167_v7 = vld [vmem:[%s2520_s30 + $0x38] sm:$0xff]  ;;  %v169_v8 = vld [vmem:[%s2520_s30 + $0x40] sm:$0xff] }
  0x17   : > { %158 = vst [vmem:[%s2525_s5 + $0x10] sm:$0xff] %v157_v2  ;;  %v171_v9 = vld [vmem:[%s2520_s30 + $0x48] sm:$0xff]  ;;  %v173_v10 = vld [vmem:[%s2520_s30 + $0x50] sm:$0xff]  ;;  %v175_v11 = vld [vmem:[%s2520_s30 + $0x58] sm:$0xff] }
  0x18   : > { %160 = vst [vmem:[%s2525_s5 + $0x18] sm:$0xff] %v159_v3  ;;  %v177_v12 = vld [vmem:[%s2520_s30 + $0x60] sm:$0xff]  ;;  %v179_v13 = vld [vmem:[%s2520_s30 + $0x68] sm:$0xff]  ;;  %v181_v14 = vld [vmem:[%s2520_s30 + $0x70] sm:$0xff] }
  0x19   : > { %162 = vst [vmem:[%s2525_s5 + $0x20] sm:$0xff] %v161_v4  ;;  %v183_v15 = vld [vmem:[%s2520_s30 + $0x78] sm:$0xff]  ;;  %v185_v16 = vld [vmem:[%s2520_s30 + $0x80] sm:$0xff]  ;;  %v187_v17 = vld [vmem:[%s2520_s30 + $0x88] sm:$0xff] }
  0x1a   : > { %164 = vst [vmem:[%s2525_s5 + $0x28] sm:$0xff] %v163_v5  ;;  %v189_v18 = vld [vmem:[%s2520_s30 + $0x90] sm:$0xff]  ;;  %v191_v19 = vld [vmem:[%s2520_s30 + $0x98] sm:$0xff]  ;;  %v193_v20 = vld [vmem:[%s2520_s30 + $0xa0] sm:$0xff] }
  0x1b   : > { %166 = vst [vmem:[%s2525_s5 + $0x30] sm:$0xff] %v165_v6  ;;  %v195_v21 = vld [vmem:[%s2520_s30 + $0xa8] sm:$0xff]  ;;  %v197_v22 = vld [vmem:[%s2520_s30 + $0xb0] sm:$0xff]  ;;  %v199_v23 = vld [vmem:[%s2520_s30 + $0xb8] sm:$0xff] }
  0x1c   : > { %168 = vst [vmem:[%s2525_s5 + $0x38] sm:$0xff] %v167_v7  ;;  %v201_v24 = vld [vmem:[%s2520_s30 + $0xc0] sm:$0xff]  ;;  %v203_v25 = vld [vmem:[%s2520_s30 + $0xc8] sm:$0xff]  ;;  %v205_v26 = vld [vmem:[%s2520_s30 + $0xd0] sm:$0xff] }
  0x1d   : > { %170 = vst [vmem:[%s2525_s5 + $0x40] sm:$0xff] %v169_v8  ;;  %v207_v27 = vld [vmem:[%s2520_s30 + $0xd8] sm:$0xff]  ;;  %v209_v28 = vld [vmem:[%s2520_s30 + $0xe0] sm:$0xff]  ;;  %v211_v29 = vld [vmem:[%s2520_s30 + $0xe8] sm:$0xff] }
  0x1e   : > { %172 = vst [vmem:[%s2525_s5 + $0x48] sm:$0xff] %v171_v9  ;;  %v213_v30 = vld [vmem:[%s2520_s30 + $0xf0] sm:$0xff]  ;;  %v215_v31 = vld [vmem:[%s2520_s30 + $0xf8] sm:$0xff]  ;;  %v217_v32 = vld [vmem:[%s2520_s30 + $0x200] sm:$0xff] }
  0x1f   : > { %174 = vst [vmem:[%s2525_s5 + $0x50] sm:$0xff] %v173_v10  ;;  %v219_v33 = vld [vmem:[%s2520_s30 + $0x208] sm:$0xff]  ;;  %v221_v34 = vld [vmem:[%s2520_s30 + $0x210] sm:$0xff]  ;;  %v223_v35 = vld [vmem:[%s2520_s30 + $0x218] sm:$0xff] }
  0x20   : > { %176 = vst [vmem:[%s2525_s5 + $0x58] sm:$0xff] %v175_v11  ;;  %v225_v36 = vld [vmem:[%s2520_s30 + $0x220] sm:$0xff]  ;;  %v227_v37 = vld [vmem:[%s2520_s30 + $0x228] sm:$0xff]  ;;  %v229_v38 = vld [vmem:[%s2520_s30 + $0x230] sm:$0xff] }
  0x21   : > { %178 = vst [vmem:[%s2525_s5 + $0x60] sm:$0xff] %v177_v12  ;;  %v231_v39 = vld [vmem:[%s2520_s30 + $0x238] sm:$0xff]  ;;  %v233_v40 = vld [vmem:[%s2520_s30 + $0x240] sm:$0xff]  ;;  %v235_v41 = vld [vmem:[%s2520_s30 + $0x248] sm:$0xff] }
  0x22   : > { %180 = vst [vmem:[%s2525_s5 + $0x68] sm:$0xff] %v179_v13  ;;  %v237_v42 = vld [vmem:[%s2520_s30 + $0x250] sm:$0xff]  ;;  %v239_v43 = vld [vmem:[%s2520_s30 + $0x258] sm:$0xff]  ;;  %v241_v44 = vld [vmem:[%s2520_s30 + $0x260] sm:$0xff] }
  0x23   : > { %182 = vst [vmem:[%s2525_s5 + $0x70] sm:$0xff] %v181_v14  ;;  %v243_v45 = vld [vmem:[%s2520_s30 + $0x268] sm:$0xff]  ;;  %v245_v46 = vld [vmem:[%s2520_s30 + $0x270] sm:$0xff]  ;;  %v247_v47 = vld [vmem:[%s2520_s30 + $0x278] sm:$0xff] }
  0x24   : > { %184 = vst [vmem:[%s2525_s5 + $0x78] sm:$0xff] %v183_v15  ;;  %v249_v48 = vld [vmem:[%s2520_s30 + $0x280] sm:$0xff]  ;;  %v251_v49 = vld [vmem:[%s2520_s30 + $0x288] sm:$0xff]  ;;  %v253_v50 = vld [vmem:[%s2520_s30 + $0x290] sm:$0xff] }
  0x25   : > { %186 = vst [vmem:[%s2525_s5 + $0x80] sm:$0xff] %v185_v16  ;;  %v255_v51 = vld [vmem:[%s2520_s30 + $0x298] sm:$0xff]  ;;  %v257_v52 = vld [vmem:[%s2520_s30 + $0x2a0] sm:$0xff]  ;;  %v259_v53 = vld [vmem:[%s2520_s30 + $0x2a8] sm:$0xff] }
  0x26   : > { %188 = vst [vmem:[%s2525_s5 + $0x88] sm:$0xff] %v187_v17  ;;  %v261_v54 = vld [vmem:[%s2520_s30 + $0x2b0] sm:$0xff]  ;;  %v263_v55 = vld [vmem:[%s2520_s30 + $0x2b8] sm:$0xff]  ;;  %v265_v56 = vld [vmem:[%s2520_s30 + $0x2c0] sm:$0xff] }
  0x27   : > { %190 = vst [vmem:[%s2525_s5 + $0x90] sm:$0xff] %v189_v18  ;;  %v267_v57 = vld [vmem:[%s2520_s30 + $0x2c8] sm:$0xff]  ;;  %v269_v58 = vld [vmem:[%s2520_s30 + $0x2d0] sm:$0xff]  ;;  %v271_v59 = vld [vmem:[%s2520_s30 + $0x2d8] sm:$0xff] }
  0x28   : > { %192 = vst [vmem:[%s2525_s5 + $0x98] sm:$0xff] %v191_v19  ;;  %v273_v60 = vld [vmem:[%s2520_s30 + $0x2e0] sm:$0xff]  ;;  %v275_v61 = vld [vmem:[%s2520_s30 + $0x2e8] sm:$0xff]  ;;  %v277_v62 = vld [vmem:[%s2520_s30 + $0x2f0] sm:$0xff] }
  0x29   : > { %194 = vst [vmem:[%s2525_s5 + $0xa0] sm:$0xff] %v193_v20  ;;  %v279_v63 = vld [vmem:[%s2520_s30 + $0x2f8] sm:$0xff]  ;;  %v281_v0 = vld [vmem:[%s2520_s30 + $0x400] sm:$0xff]  ;;  %v283_v1 = vld [vmem:[%s2520_s30 + $0x408] sm:$0xff] }
  0x2a   : > { %196 = vst [vmem:[%s2525_s5 + $0xa8] sm:$0xff] %v195_v21  ;;  %v285_v2 = vld [vmem:[%s2520_s30 + $0x410] sm:$0xff]  ;;  %v287_v3 = vld [vmem:[%s2520_s30 + $0x418] sm:$0xff]  ;;  %v289_v4 = vld [vmem:[%s2520_s30 + $0x420] sm:$0xff] }
  0x2b   : > { %198 = vst [vmem:[%s2525_s5 + $0xb0] sm:$0xff] %v197_v22  ;;  %v291_v5 = vld [vmem:[%s2520_s30 + $0x428] sm:$0xff]  ;;  %v293_v6 = vld [vmem:[%s2520_s30 + $0x430] sm:$0xff]  ;;  %v295_v7 = vld [vmem:[%s2520_s30 + $0x438] sm:$0xff] }
  0x2c   : > { %200 = vst [vmem:[%s2525_s5 + $0xb8] sm:$0xff] %v199_v23  ;;  %v297_v8 = vld [vmem:[%s2520_s30 + $0x440] sm:$0xff]  ;;  %v299_v9 = vld [vmem:[%s2520_s30 + $0x448] sm:$0xff]  ;;  %v301_v10 = vld [vmem:[%s2520_s30 + $0x450] sm:$0xff] }
  0x2d   : > { %202 = vst [vmem:[%s2525_s5 + $0xc0] sm:$0xff] %v201_v24  ;;  %v303_v11 = vld [vmem:[%s2520_s30 + $0x458] sm:$0xff]  ;;  %v305_v12 = vld [vmem:[%s2520_s30 + $0x460] sm:$0xff]  ;;  %v307_v13 = vld [vmem:[%s2520_s30 + $0x468] sm:$0xff] }
  0x2e   : > { %204 = vst [vmem:[%s2525_s5 + $0xc8] sm:$0xff] %v203_v25  ;;  %v309_v14 = vld [vmem:[%s2520_s30 + $0x470] sm:$0xff]  ;;  %v311_v15 = vld [vmem:[%s2520_s30 + $0x478] sm:$0xff]  ;;  %v313_v16 = vld [vmem:[%s2520_s30 + $0x480] sm:$0xff] }
  0x2f   : > { %206 = vst [vmem:[%s2525_s5 + $0xd0] sm:$0xff] %v205_v26  ;;  %v315_v17 = vld [vmem:[%s2520_s30 + $0x488] sm:$0xff]  ;;  %v317_v18 = vld [vmem:[%s2520_s30 + $0x490] sm:$0xff]  ;;  %v319_v19 = vld [vmem:[%s2520_s30 + $0x498] sm:$0xff] }
  0x30   : > { %208 = vst [vmem:[%s2525_s5 + $0xd8] sm:$0xff] %v207_v27  ;;  %v321_v20 = vld [vmem:[%s2520_s30 + $0x4a0] sm:$0xff]  ;;  %v323_v21 = vld [vmem:[%s2520_s30 + $0x4a8] sm:$0xff]  ;;  %v325_v22 = vld [vmem:[%s2520_s30 + $0x4b0] sm:$0xff] }
  0x31   : > { %210 = vst [vmem:[%s2525_s5 + $0xe0] sm:$0xff] %v209_v28  ;;  %v327_v23 = vld [vmem:[%s2520_s30 + $0x4b8] sm:$0xff]  ;;  %v329_v24 = vld [vmem:[%s2520_s30 + $0x4c0] sm:$0xff]  ;;  %v331_v25 = vld [vmem:[%s2520_s30 + $0x4c8] sm:$0xff] }
  0x32   : > { %212 = vst [vmem:[%s2525_s5 + $0xe8] sm:$0xff] %v211_v29  ;;  %v333_v26 = vld [vmem:[%s2520_s30 + $0x4d0] sm:$0xff]  ;;  %v335_v27 = vld [vmem:[%s2520_s30 + $0x4d8] sm:$0xff]  ;;  %v337_v28 = vld [vmem:[%s2520_s30 + $0x4e0] sm:$0xff] }
  0x33   : > { %214 = vst [vmem:[%s2525_s5 + $0xf0] sm:$0xff] %v213_v30  ;;  %v339_v29 = vld [vmem:[%s2520_s30 + $0x4e8] sm:$0xff]  ;;  %v341_v30 = vld [vmem:[%s2520_s30 + $0x4f0] sm:$0xff] }
  0x34   : > { %216 = vst [vmem:[%s2525_s5 + $0xf8] sm:$0xff] %v215_v31  ;;  %v343_v31 = vld [vmem:[%s2520_s30 + $0x4f8] sm:$0xff] }
  0x35   : > { %218 = vst [vmem:[%s2525_s5 + $0x100] sm:$0xff] %v217_v32 }
  0x36   : > { %220 = vst [vmem:[%s2525_s5 + $0x108] sm:$0xff] %v219_v33 }
  0x37   : > { %222 = vst [vmem:[%s2525_s5 + $0x110] sm:$0xff] %v221_v34 }
  0x38   : > { %224 = vst [vmem:[%s2525_s5 + $0x118] sm:$0xff] %v223_v35 }
  0x39   : > { %226 = vst [vmem:[%s2525_s5 + $0x120] sm:$0xff] %v225_v36 }
  0x3a   : > { %228 = vst [vmem:[%s2525_s5 + $0x128] sm:$0xff] %v227_v37 }
  0x3b   : > { %230 = vst [vmem:[%s2525_s5 + $0x130] sm:$0xff] %v229_v38 }
  0x3c   : > { %232 = vst [vmem:[%s2525_s5 + $0x138] sm:$0xff] %v231_v39 }
  0x3d   : > { %234 = vst [vmem:[%s2525_s5 + $0x140] sm:$0xff] %v233_v40 }
  0x3e   : > { %236 = vst [vmem:[%s2525_s5 + $0x148] sm:$0xff] %v235_v41 }
  0x3f   : > { %238 = vst [vmem:[%s2525_s5 + $0x150] sm:$0xff] %v237_v42 }
  0x40   : > { %240 = vst [vmem:[%s2525_s5 + $0x158] sm:$0xff] %v239_v43 }
  0x41   : > { %242 = vst [vmem:[%s2525_s5 + $0x160] sm:$0xff] %v241_v44 }
  0x42   : > { %244 = vst [vmem:[%s2525_s5 + $0x168] sm:$0xff] %v243_v45 }
  0x43   : > { %246 = vst [vmem:[%s2525_s5 + $0x170] sm:$0xff] %v245_v46 }
  0x44   : > { %248 = vst [vmem:[%s2525_s5 + $0x178] sm:$0xff] %v247_v47 }
  0x45   : > { %250 = vst [vmem:[%s2525_s5 + $0x180] sm:$0xff] %v249_v48 }
  0x46   : > { %252 = vst [vmem:[%s2525_s5 + $0x188] sm:$0xff] %v251_v49 }
  0x47   : > { %254 = vst [vmem:[%s2525_s5 + $0x190] sm:$0xff] %v253_v50 }
  0x48   : > { %256 = vst [vmem:[%s2525_s5 + $0x198] sm:$0xff] %v255_v51 }
  0x49   : > { %258 = vst [vmem:[%s2525_s5 + $0x1a0] sm:$0xff] %v257_v52 }
  0x4a   : > { %260 = vst [vmem:[%s2525_s5 + $0x1a8] sm:$0xff] %v259_v53 }
  0x4b   : > { %262 = vst [vmem:[%s2525_s5 + $0x1b0] sm:$0xff] %v261_v54 }
  0x4c   : > { %264 = vst [vmem:[%s2525_s5 + $0x1b8] sm:$0xff] %v263_v55 }
  0x4d   : > { %266 = vst [vmem:[%s2525_s5 + $0x1c0] sm:$0xff] %v265_v56 }
  0x4e   : > { %268 = vst [vmem:[%s2525_s5 + $0x1c8] sm:$0xff] %v267_v57 }
  0x4f   : > { %270 = vst [vmem:[%s2525_s5 + $0x1d0] sm:$0xff] %v269_v58 }
  0x50   : > { %272 = vst [vmem:[%s2525_s5 + $0x1d8] sm:$0xff] %v271_v59 }
  0x51   : > { %274 = vst [vmem:[%s2525_s5 + $0x1e0] sm:$0xff] %v273_v60 }
  0x52   : > { %276 = vst [vmem:[%s2525_s5 + $0x1e8] sm:$0xff] %v275_v61 }
  0x53   : > { %278 = vst [vmem:[%s2525_s5 + $0x1f0] sm:$0xff] %v277_v62 }
  0x54   : > { %280 = vst [vmem:[%s2525_s5 + $0x1f8] sm:$0xff] %v279_v63 }
  0x55   : > { %282 = vst [vmem:[%s2525_s5 + $0x200] sm:$0xff] %v281_v0 }
  0x56   : > { %284 = vst [vmem:[%s2525_s5 + $0x208] sm:$0xff] %v283_v1 }
  0x57   : > { %286 = vst [vmem:[%s2525_s5 + $0x210] sm:$0xff] %v285_v2 }
  0x58   : > { %288 = vst [vmem:[%s2525_s5 + $0x218] sm:$0xff] %v287_v3 }
  0x59   : > { %290 = vst [vmem:[%s2525_s5 + $0x220] sm:$0xff] %v289_v4 }
  0x5a   : > { %292 = vst [vmem:[%s2525_s5 + $0x228] sm:$0xff] %v291_v5 }
  0x5b   : > { %294 = vst [vmem:[%s2525_s5 + $0x230] sm:$0xff] %v293_v6 }
  0x5c   : > { %296 = vst [vmem:[%s2525_s5 + $0x238] sm:$0xff] %v295_v7 }
  0x5d   : > { %298 = vst [vmem:[%s2525_s5 + $0x240] sm:$0xff] %v297_v8 }
  0x5e   : > { %300 = vst [vmem:[%s2525_s5 + $0x248] sm:$0xff] %v299_v9 }
  0x5f   : > { %302 = vst [vmem:[%s2525_s5 + $0x250] sm:$0xff] %v301_v10 }
  0x60   : > { %304 = vst [vmem:[%s2525_s5 + $0x258] sm:$0xff] %v303_v11 }
  0x61   : > { %306 = vst [vmem:[%s2525_s5 + $0x260] sm:$0xff] %v305_v12 }
  0x62   : > { %308 = vst [vmem:[%s2525_s5 + $0x268] sm:$0xff] %v307_v13 }
  0x63   : > { %310 = vst [vmem:[%s2525_s5 + $0x270] sm:$0xff] %v309_v14 }
  0x64   : > { %312 = vst [vmem:[%s2525_s5 + $0x278] sm:$0xff] %v311_v15 }
  0x65   : > { %314 = vst [vmem:[%s2525_s5 + $0x280] sm:$0xff] %v313_v16 }
  0x66   : > { %316 = vst [vmem:[%s2525_s5 + $0x288] sm:$0xff] %v315_v17 }
  0x67   : > { %318 = vst [vmem:[%s2525_s5 + $0x290] sm:$0xff] %v317_v18 }
  0x68   : > { %320 = vst [vmem:[%s2525_s5 + $0x298] sm:$0xff] %v319_v19 }
  0x69   : > { %322 = vst [vmem:[%s2525_s5 + $0x2a0] sm:$0xff] %v321_v20 }
  0x6a   : > { %324 = vst [vmem:[%s2525_s5 + $0x2a8] sm:$0xff] %v323_v21 }
  0x6b   : > { %326 = vst [vmem:[%s2525_s5 + $0x2b0] sm:$0xff] %v325_v22 }
  0x6c   : > { %328 = vst [vmem:[%s2525_s5 + $0x2b8] sm:$0xff] %v327_v23 }
  0x6d   : > { %330 = vst [vmem:[%s2525_s5 + $0x2c0] sm:$0xff] %v329_v24 }
  0x6e   : > { %332 = vst [vmem:[%s2525_s5 + $0x2c8] sm:$0xff] %v331_v25 }
  0x6f   : > { %334 = vst [vmem:[%s2525_s5 + $0x2d0] sm:$0xff] %v333_v26 }
  0x70   : > { %336 = vst [vmem:[%s2525_s5 + $0x2d8] sm:$0xff] %v335_v27 }
  0x71   : > { %338 = vst [vmem:[%s2525_s5 + $0x2e0] sm:$0xff] %v337_v28 }
  0x72   : > { %340 = vst [vmem:[%s2525_s5 + $0x2e8] sm:$0xff] %v339_v29 }
  0x73   : > { %342 = vst [vmem:[%s2525_s5 + $0x2f0] sm:$0xff] %v341_v30 }
  0x74   : > { %344 = vst [vmem:[%s2525_s5 + $0x2f8] sm:$0xff] %v343_v31 }
  0x75 PF: > { %p1967_p7 = scmp.ge.s32.totalorder %s2446_s19, 1  ;;  %p359_p8 = scmp.lt.s32.totalorder %s2446_s19, 3 }
  0x77   : > { %p360_p9 = pnand %p1967_p7, %p359_p8 }
  0x79   : > { %363 = sbr.rel (%p360_p9) target bundleno = 743 (0x2e7), region = 47 }
  0x7e   : > { %s1968_s6 = sshll.u32 %s2495_s0, 2  ;;  %s403_s7 = sld [smem:[#allocation3]]  ;;  %v2448_v48 = vmov 1.0  }
  0x7f   : > { %p396_p10 = scmp.lt.s32.totalorder %s1968_s6, 7  ;;  %s366_s12 = sand.u32 1, %s2438_s17  }
  0x80   : > { %s2895_s13 = smul.u32 768, %s366_s12  ;;  %p2379_p11 = scmp.ne.s32.totalorder %s2495_s0, 0 }
  0x81   : > { %s4308_s6 = smov (!%p396_p10, %s1968_s6), 7  ;;  %s2392_s15 = smul.u32 192, %s366_s12 }
  0x82   : > { %s2388_s8 = sshll.u32 %s4308_s6, 4  ;;  %s2915_s14 = scalar_lea.vmem [#allocation4], %s2895_s13 }
  0x83   : > { %s2722_s11 = scalar_lea.vmem %s4156_s2, %s2388_s8  ;;  %s4015_s16 = scalar_lea.vmem [#allocation5], %s2392_s15 }
  0x84   : > { %v410_v32 = vld [vmem:[%s2722_s11 + $0x30] sm:$0xff]  ;;  %v2725_v33 = vstv %s403_s7  ;;  %v411_v34 = vld [vmem:[%s2722_s11 + $0x38] sm:$0xff]  ;;  %v408_v43 = vld [vmem:[%s2722_s11 + $0x20] sm:$0xff] }
  0x85   : > { %v2728_v35 = vunpack.c.3.s8 %v410_v32  ;;  %v2730_v36 = vunpack.c.3.s8 %v411_v34  ;;  %v2732_v37 = vunpack.c.2.s8 %v410_v32  ;;  %v2734_v38 = vunpack.c.2.s8 %v411_v34  ;;  %v409_v50 = vld [vmem:[%s2722_s11 + $0x28] sm:$0xff]  ;;  %v406_v0 = vld [vmem:[%s2722_s11 + $0x10] sm:$0xff]  ;;  %v407_v1 = vld [vmem:[%s2722_s11 + $0x18] sm:$0xff] }
  0x86   : > { %v2736_v39 = vunpack.c.1.s8 %v410_v32  ;;  %v2738_v40 = vunpack.c.1.s8 %v411_v34  ;;  %v2740_v41 = vunpack.c.0.s8 %v410_v32  ;;  %v2742_v42 = vunpack.c.0.s8 %v411_v34  ;;  %v404_v17 = vld [vmem:[%s2722_s11] sm:$0xff]  ;;  %v405_v21 = vld [vmem:[%s2722_s11 + $0x8] sm:$0xff] }
  0x87   : > { %4195 = vst [vmem:[#allocation6_spill] sm:$0xff] %v2728_v35  ;;  %vm639_vm0 = vcmp.ne.s32.totalorder %v2728_v35, %v2725_v33  ;;  %vm640_vm1 = vcmp.ne.s32.totalorder %v2730_v36, %v2725_v33  ;;  %vm637_vm2 = vcmp.ne.s32.totalorder %v2732_v37, %v2725_v33  ;;  %vm638_vm3 = vcmp.ne.s32.totalorder %v2734_v38, %v2725_v33 }
  0x88   : > { %4196 = vst [vmem:[#allocation7_spill] sm:$0xff] %v2730_v36  ;;  %v671_v44 = vsel %vm639_vm0, 0, %v2728_v35  ;;  %v672_v45 = vsel %vm640_vm1, 0, %v2730_v36  ;;  %v669_v46 = vsel %vm637_vm2, 0, %v2732_v37  ;;  %v670_v47 = vsel %vm638_vm3, 0, %v2734_v38 }
  0x89   : > { %4197 = vst [vmem:[#allocation8_spill] sm:$0xff] %v2734_v38  ;;  %vm703_vm4 = vcmp.ne.s32.totalorder %v671_v44, 0  ;;  %vm704_vm5 = vcmp.ne.s32.totalorder %v672_v45, 0  ;;  %vm701_vm6 = vcmp.ne.s32.totalorder %v669_v46, 0  ;;  %vm702_vm7 = vcmp.ne.s32.totalorder %v670_v47, 0 }
  0x8a   : > { %4198 = vst [vmem:[#allocation9_spill] sm:$0xff] %v2738_v40  ;;  %2043 = vmatpush.msk.msra.mxu0 %vm703_vm4, %v2448_v48  ;;  %2067 = vmatpush.msk.msra.mxu1 %vm704_vm5, %v2448_v48  ;;  %vm635_vm8 = vcmp.ne.s32.totalorder %v2736_v39, %v2725_v33  ;;  %vm636_vm9 = vcmp.ne.s32.totalorder %v2738_v40, %v2725_v33  ;;  %v2765_v49 = vunpack.c.3.s8 %v408_v43  ;;  %v2778_v55 = vunpack.c.3.s8 %v409_v50 }
  0x8b   : > { %4199 = vst [vmem:[#allocation10_spill] sm:$0xff] %v2742_v42  ;;  %vm633_vm10 = vcmp.ne.s32.totalorder %v2740_v41, %v2725_v33  ;;  %v667_v51 = vsel %vm635_vm8, 0, %v2736_v39  ;;  %v668_v52 = vsel %vm636_vm9, 0, %v2738_v40  ;;  %vm634_vm11 = vcmp.ne.s32.totalorder %v2742_v42, %v2725_v33  ;;  %v2171_v40 = vld [vmem:[%s2915_s14 + $0x100] sm:$0xff] }
  0x8c   : > { %v665_v53 = vsel %vm633_vm10, 0, %v2740_v41  ;;  %2044 = vmatpush.msk.msra.mxu0 %vm701_vm6, %v2448_v48  ;;  %2068 = vmatpush.msk.msra.mxu1 %vm702_vm7, %v2448_v48  ;;  %vm699_vm12 = vcmp.ne.s32.totalorder %v667_v51, 0  ;;  %vm700_vm13 = vcmp.ne.s32.totalorder %v668_v52, 0  ;;  %v666_v54 = vsel %vm634_vm11, 0, %v2742_v42  ;;  %v2172_v42 = vld [vmem:[%s2915_s14 + $0x108] sm:$0xff] }
  0x8d   : > { %vm697_vm14 = vcmp.ne.s32.totalorder %v665_v53, 0  ;;  %vm698_vm15 = vcmp.ne.s32.totalorder %v666_v54, 0  ;;  %vm631_vm0 = vcmp.ne.s32.totalorder %v2765_v49, %v2725_v33  ;;  %v2780_v56 = vunpack.c.2.s8 %v408_v43 }
  0x8e   : > { %2045 = vmatpush.msk.msra.mxu0 %vm699_vm12, %v2448_v48  ;;  %2069 = vmatpush.msk.msra.mxu1 %vm700_vm13, %v2448_v48  ;;  %v663_v57 = vsel %vm631_vm0, 0, %v2765_v49  ;;  %v2785_v58 = vunpack.c.2.s8 %v409_v50  ;;  %v2787_v59 = vunpack.c.1.s8 %v408_v43  ;;  %vm632_vm2 = vcmp.ne.s32.totalorder %v2778_v55, %v2725_v33 }
  0x8f   : > { %vm695_vm1 = vcmp.ne.s32.totalorder %v663_v57, 0  ;;  %vm629_vm3 = vcmp.ne.s32.totalorder %v2780_v56, %v2725_v33  ;;  %v2793_v60 = vunpack.c.1.s8 %v409_v50  ;;  %v664_v61 = vsel %vm632_vm2, 0, %v2778_v55 }
  0x90   : > { %2046 = vmatpush.msk.msra.mxu0 %vm697_vm14, %v2448_v48  ;;  %2070 = vmatpush.msk.msra.mxu1 %vm698_vm15, %v2448_v48  ;;  %v661_v62 = vsel %vm629_vm3, 0, %v2780_v56  ;;  %vm630_vm4 = vcmp.ne.s32.totalorder %v2785_v58, %v2725_v33  ;;  %vm696_vm5 = vcmp.ne.s32.totalorder %v664_v61, 0  ;;  %vm627_vm8 = vcmp.ne.s32.totalorder %v2787_v59, %v2725_v33 }
  0x91   : > { %vm693_vm6 = vcmp.ne.s32.totalorder %v661_v62, 0  ;;  %v662_v63 = vsel %vm630_vm4, 0, %v2785_v58  ;;  %v659_v2 = vsel %vm627_vm8, 0, %v2787_v59  ;;  %vm628_vm9 = vcmp.ne.s32.totalorder %v2793_v60, %v2725_v33 }
  0x92   : > { %2047 = vmatpush.msk.msra.mxu0 %vm695_vm1, %v2448_v48  ;;  %2071 = vmatpush.msk.msra.mxu1 %vm696_vm5, %v2448_v48  ;;  %vm694_vm7 = vcmp.ne.s32.totalorder %v662_v63, 0  ;;  %vm691_vm10 = vcmp.ne.s32.totalorder %v659_v2, 0  ;;  %v660_v3 = vsel %vm628_vm9, 0, %v2793_v60  ;;  %v2814_v4 = vunpack.c.0.s8 %v408_v43  ;;  %v963_v63 = vld [vmem:[%s2915_s14 + $0xf0] sm:$0xff] }
  0x93   : > { %vm692_vm11 = vcmp.ne.s32.totalorder %v660_v3, 0  ;;  %v2816_v5 = vunpack.c.0.s8 %v409_v50  ;;  %v2818_v6 = vunpack.c.3.s8 %v406_v0  ;;  %v2820_v7 = vunpack.c.3.s8 %v407_v1  ;;  %v964_v3 = vld [vmem:[%s2915_s14 + $0xf8] sm:$0xff] }
  0x94   : > { %2048 = vmatpush.msk.msra.mxu0 %vm693_vm6, %v2448_v48  ;;  %2072 = vmatpush.msk.msra.mxu1 %vm694_vm7, %v2448_v48  ;;  %vm625_vm12 = vcmp.ne.s32.totalorder %v2814_v4, %v2725_v33  ;;  %v2829_v9 = vunpack.c.2.s8 %v406_v0  ;;  %v2834_v11 = vunpack.c.2.s8 %v407_v1  ;;  %v2850_v16 = vunpack.c.1.s8 %v406_v0 }
  0x95   : > { %v657_v8 = vsel %vm625_vm12, 0, %v2814_v4  ;;  %vm626_vm13 = vcmp.ne.s32.totalorder %v2816_v5, %v2725_v33  ;;  %vm623_vm15 = vcmp.ne.s32.totalorder %v2818_v6, %v2725_v33  ;;  %vm624_vm1 = vcmp.ne.s32.totalorder %v2820_v7, %v2725_v33 }
  0x96   : > { %2049 = vmatpush.msk.msra.mxu0 %vm691_vm10, %v2448_v48  ;;  %2073 = vmatpush.msk.msra.mxu1 %vm692_vm11, %v2448_v48  ;;  %vm689_vm14 = vcmp.ne.s32.totalorder %v657_v8, 0  ;;  %v658_v10 = vsel %vm626_vm13, 0, %v2816_v5  ;;  %v655_v12 = vsel %vm623_vm15, 0, %v2818_v6  ;;  %v656_v13 = vsel %vm624_vm1, 0, %v2820_v7 }
  0x97   : > { %vm690_vm0 = vcmp.ne.s32.totalorder %v658_v10, 0  ;;  %vm687_vm2 = vcmp.ne.s32.totalorder %v655_v12, 0  ;;  %vm688_vm3 = vcmp.ne.s32.totalorder %v656_v13, 0  ;;  %vm621_vm4 = vcmp.ne.s32.totalorder %v2829_v9, %v2725_v33  ;;  %v961_v12 = vld [vmem:[%s2915_s14 + $0xe0] sm:$0xff] }
  0x98   : > { %2050 = vmatpush.msk.msra.mxu0 %vm689_vm14, %v2448_v48  ;;  %2074 = vmatpush.msk.msra.mxu1 %vm690_vm0, %v2448_v48  ;;  %v653_v14 = vsel %vm621_vm4, 0, %v2829_v9  ;;  %vm622_vm5 = vcmp.ne.s32.totalorder %v2834_v11, %v2725_v33  ;;  %v2854_v18 = vunpack.c.1.s8 %v407_v1  ;;  %v2856_v19 = vunpack.c.0.s8 %v406_v0 }
  0x99   : > { %vm685_vm6 = vcmp.ne.s32.totalorder %v653_v14, 0  ;;  %v654_v15 = vsel %vm622_vm5, 0, %v2834_v11  ;;  %v2858_v20 = vunpack.c.0.s8 %v407_v1  ;;  %vm619_vm8 = vcmp.ne.s32.totalorder %v2850_v16, %v2725_v33 }
  0x9a   : > { %2051 = vmatpush.msk.msra.mxu0 %vm687_vm2, %v2448_v48  ;;  %2075 = vmatpush.msk.msra.mxu1 %vm688_vm3, %v2448_v48  ;;  %vm686_vm7 = vcmp.ne.s32.totalorder %v654_v15, 0  ;;  %v651_v22 = vsel %vm619_vm8, 0, %v2850_v16  ;;  %vm620_vm9 = vcmp.ne.s32.totalorder %v2854_v18, %v2725_v33  ;;  %v2867_v23 = vunpack.c.3.s8 %v404_v17  ;;  %v962_v15 = vld [vmem:[%s2915_s14 + $0xe8] sm:$0xff] }
  0x9b   : > { %vm683_vm10 = vcmp.ne.s32.totalorder %v651_v22, 0  ;;  %v652_v24 = vsel %vm620_vm9, 0, %v2854_v18  ;;  %vm617_vm11 = vcmp.ne.s32.totalorder %v2856_v19, %v2725_v33  ;;  %v2872_v25 = vunpack.c.3.s8 %v405_v21 }
  0x9c   : > { %2052 = vmatpush.msk.msra.mxu0 %vm685_vm6, %v2448_v48  ;;  %2076 = vmatpush.msk.msra.mxu1 %vm686_vm7, %v2448_v48  ;;  %vm684_vm12 = vcmp.ne.s32.totalorder %v652_v24, 0  ;;  %v649_v26 = vsel %vm617_vm11, 0, %v2856_v19  ;;  %vm618_vm13 = vcmp.ne.s32.totalorder %v2858_v20, %v2725_v33  ;;  %vm615_vm0 = vcmp.ne.s32.totalorder %v2867_v23, %v2725_v33  ;;  %v959_v24 = vld [vmem:[%s2915_s14 + $0xd0] sm:$0xff] }
  0x9d   : > { %vm681_vm14 = vcmp.ne.s32.totalorder %v649_v26, 0  ;;  %v650_v27 = vsel %vm618_vm13, 0, %v2858_v20  ;;  %v647_v28 = vsel %vm615_vm0, 0, %v2867_v23  ;;  %vm1579_vm1 = vcmp.ne.s32.totalorder %v2867_v23, 0 }
  0x9e   : > { %2053 = vmatpush.msk.msra.mxu0 %vm683_vm10, %v2448_v48  ;;  %2077 = vmatpush.msk.msra.mxu1 %vm684_vm12, %v2448_v48  ;;  %vm682_vm15 = vcmp.ne.s32.totalorder %v650_v27, 0  ;;  %vm616_vm2 = vcmp.ne.s32.totalorder %v2872_v25, %v2725_v33  ;;  %vm679_vm3 = vcmp.ne.s32.totalorder %v647_v28, 0  ;;  %vm1580_vm4 = vcmp.ne.s32.totalorder %v2872_v25, 0  ;;  %v960_v27 = vld [vmem:[%s2915_s14 + $0xd8] sm:$0xff] }
  0x9f   : > { %v648_v29 = vsel %vm616_vm2, 0, %v2872_v25  ;;  %v416_v30 = vunpack.c.2.s8 %v404_v17  ;;  %vm1581_vm5 = vcmp.ne.s32.totalorder %v2856_v19, 0  ;;  %v417_v31 = vunpack.c.2.s8 %v405_v21 }
  0xa0   : > { %2054 = vmatpush.msk.msra.mxu0 %vm681_vm14, %v2448_v48  ;;  %2078 = vmatpush.msk.msra.mxu1 %vm682_vm15, %v2448_v48  ;;  %vm680_vm6 = vcmp.ne.s32.totalorder %v648_v29, 0  ;;  %v414_v32 = vunpack.c.1.s8 %v404_v17  ;;  %v415_v34 = vunpack.c.1.s8 %v405_v21  ;;  %vm1582_vm7 = vcmp.ne.s32.totalorder %v2858_v20, 0  ;;  %v957_v20 = vld [vmem:[%s2915_s14 + $0xc0] sm:$0xff] }
  0xa1   : > { %vm613_vm8 = vcmp.ne.s32.totalorder %v416_v30, %v2725_v33  ;;  %vm1577_vm9 = vcmp.ne.s32.totalorder %v416_v30, 0  ;;  %v412_v43 = vunpack.c.0.s8 %v404_v17  ;;  %v413_v44 = vunpack.c.0.s8 %v405_v21 }
  0xa2   : > { %2055 = vmatpush.msk.msra.mxu0 %vm679_vm3, %v2448_v48  ;;  %2079 = vmatpush.msk.msra.mxu1 %vm680_vm6, %v2448_v48  ;;  %v645_v45 = vsel %vm613_vm8, 0, %v416_v30  ;;  %v4171_v46 = vmov 0.0   ;;  %vm614_vm10 = vcmp.ne.s32.totalorder %v417_v31, %v2725_v33  ;;  %vm1578_vm11 = vcmp.ne.s32.totalorder %v417_v31, 0 }
  0xa3   : > { %v2351_v47 = vsel %vm1577_vm9, 1.0, %v4171_v46  ;;  %vm677_vm12 = vcmp.ne.s32.totalorder %v645_v45, 0  ;;  %v646_v50 = vsel %vm614_vm10, 0, %v417_v31  ;;  %v2352_v51 = vsel %vm1578_vm11, 1.0, %v4171_v46 }
  0xa4   : > { %vm611_vm13 = vcmp.ne.s32.totalorder %v414_v32, %v2725_v33  ;;  %2056 = vmatpush.msk.msra.mxu0 %vm677_vm12, %v2448_v48  ;;  %vm678_vm14 = vcmp.ne.s32.totalorder %v646_v50, 0  ;;  %vm1575_vm15 = vcmp.ne.s32.totalorder %v414_v32, 0  ;;  %vm612_vm0 = vcmp.ne.s32.totalorder %v415_v34, %v2725_v33  ;;  %v953_v50 = vld [vmem:[%s2915_s14 + $0xa0] sm:$0xff] }
  0xa5   : > { %v643_v52 = vsel %vm611_vm13, 0, %v414_v32  ;;  %2080 = vmatpush.msk.msra.mxu1 %vm678_vm14, %v2448_v48  ;;  %v2349_v53 = vsel %vm1575_vm15, 1.0, %v4171_v46  ;;  %v644_v54 = vsel %vm612_vm0, 0, %v415_v34  ;;  %vm1576_vm3 = vcmp.ne.s32.totalorder %v415_v34, 0  ;;  %v958_v32 = vld [vmem:[%s2915_s14 + $0xc8] sm:$0xff] }
  0xa6   : > { %vm675_vm2 = vcmp.ne.s32.totalorder %v643_v52, 0  ;;  %vm676_vm6 = vcmp.ne.s32.totalorder %v644_v54, 0  ;;  %v2350_v57 = vsel %vm1576_vm3, 1.0, %v4171_v46  ;;  %vm609_vm8 = vcmp.ne.s32.totalorder %v412_v43, %v2725_v33  ;;  %v951_v52 = vld [vmem:[%s2915_s14 + $0x90] sm:$0xff] }
  0xa7   : > { %2057 = vmatpush.msk.msra.mxu0 %vm675_vm2, %v2448_v48  ;;  %vm1573_vm9 = vcmp.ne.s32.totalorder %v412_v43, 0  ;;  %2081 = vmatpush.msk.msra.mxu1 %vm676_vm6, %v2448_v48  ;;  %v641_v61 = vsel %vm609_vm8, 0, %v412_v43  ;;  %vm610_vm10 = vcmp.ne.s32.totalorder %v413_v44, %v2725_v33  ;;  %vm1574_vm11 = vcmp.ne.s32.totalorder %v413_v44, 0 }
  0xa8   : > { %v2347_v62 = vsel %vm1573_vm9, 1.0, %v4171_v46  ;;  %vm673_vm12 = vcmp.ne.s32.totalorder %v641_v61, 0  ;;  %v642_v1 = vsel %vm610_vm10, 0, %v413_v44  ;;  %v2348_v2 = vsel %vm1574_vm11, 1.0, %v4171_v46  ;;  %v956_v44 = vld [vmem:[%s2915_s14 + $0xb8] sm:$0xff]  ;;  %v949_v61 = vld [vmem:[%s2915_s14 + $0x80] sm:$0xff] }
  0xa9   : > { %v1669_v0 = vadd.f32 %v2349_v53, %v2347_v62  ;;  %v2353_v8 = vsel %vm1579_vm1, 1.0, %v4171_v46  ;;  %2058 = vmatpush.msk.msra.mxu0 %vm673_vm12, %v2448_v48  ;;  %vm674_vm13 = vcmp.ne.s32.totalorder %v642_v1, 0  ;;  %v1694_v33 = vadd.f32 %v2350_v57, %v2348_v2  ;;  %v952_v53 = vld [vmem:[%s2915_s14 + $0x98] sm:$0xff]  ;;  %v950_v62 = vld [vmem:[%s2915_s14 + $0x88] sm:$0xff]  ;;  %v945_v2 = vld [vmem:[%s2915_s14 + $0x60] sm:$0xff] }
  0xaa   : > { %v444_v10 = vlaneseq  ;;  %vm1584_vm14 = vcmp.ne.s32.totalorder %v2854_v18, 0  ;;  %v2354_v13 = vsel %vm1580_vm4, 1.0, %v4171_v46  ;;  %2082 = vmatpush.msk.msra.mxu1 %vm674_vm13, %v2448_v48  ;;  %v2355_v17 = vsel %vm1581_vm5, 1.0, %v4171_v46  ;;  %v955_v18 = vld [vmem:[%s2915_s14 + $0xb0] sm:$0xff] }
  0xab   : > { %v1670_v14 = vadd.f32 %v2351_v47, %v1669_v0  ;;  %965 = vmatpush.msrb.mxu0 %v963_v63  ;;  %v1695_v21 = vadd.f32 %v2352_v51, %v1694_v33  ;;  %v2356_v25 = vsel %vm1582_vm7, 1.0, %v4171_v46  ;;  %v2358_v30 = vsel %vm1584_vm14, 1.0, %v4171_v46  ;;  %v954_v51 = vld [vmem:[%s2915_s14 + $0xa8] sm:$0xff]  ;;  %v947_v63 = vld [vmem:[%s2915_s14 + $0x70] sm:$0xff]  ;;  %v948_v0 = vld [vmem:[%s2915_s14 + $0x78] sm:$0xff] }
  0xac   : > { %v2934_v22 = vand.u32 127, %v444_v10  ;;  %v2936_v23 = vshrl.u32 %v444_v10, 7  ;;  %1006 = vmatpush.msrb.mxu1 %v964_v3  ;;  %v946_v3 = vld [vmem:[%s2915_s14 + $0x68] sm:$0xff]  ;;  %v944_v33 = vld [vmem:[%s2915_s14 + $0x58] sm:$0xff] }
  0xad   : > { %v1671_v26 = vadd.f32 %v2353_v8, %v1670_v14  ;;  %966 = vmatpush.msrb.mxu0 %v961_v12  ;;  %v1696_v19 = vadd.f32 %v2354_v13, %v1695_v21  ;;  %v943_v8 = vld [vmem:[%s2915_s14 + $0x50] sm:$0xff]  ;;  %v941_v13 = vld [vmem:[%s2915_s14 + $0x40] sm:$0xff]  ;;  %v942_v14 = vld [vmem:[%s2915_s14 + $0x48] sm:$0xff] }
  0xae   : > { %v455_v28 = vmul.u32 2, %v2936_v23  ;;  %1007 = vmatpush.msrb.mxu1 %v962_v15  ;;  %v2945_v29 = vadd.s32 8, %v2936_v23  ;;  %v2980_v57 = vadd.s32 16, %v2936_v23  ;;  %v3003_v12 = vadd.s32 24, %v2936_v23  ;;  %v939_v15 = vld [vmem:[%s2915_s14 + $0x30] sm:$0xff]  ;;  %v2176_v46 = vld [vmem:[%s2915_s14 + $0x128] sm:$0xff] }
  0xaf   : > { %v2950_v31 = vadd.f32 %v2355_v17, %v1671_v26  ;;  %967 = vmatpush.msrb.mxu0 %v959_v24  ;;  %v1697_v34 = vadd.f32 %v2356_v25, %v1696_v19  ;;  %v940_v17 = vld [vmem:[%s2915_s14 + $0x38] sm:$0xff]  ;;  %v937_v24 = vld [vmem:[%s2915_s14 + $0x20] sm:$0xff]  ;;  %v938_v25 = vld [vmem:[%s2915_s14 + $0x28] sm:$0xff]  ;;  %v3312_v36 = vadd.s32 160, %v2936_v23  ;;  %v3319_v38 = vadd.s32 152, %v2936_v23 }
  0xb0   : > { %vm2955_vm1 = vcmp.eq.s32.totalorder %v2934_v22, %v455_v28  ;;  %1008 = vmatpush.msrb.mxu1 %v960_v27  ;;  %v456_v47 = vmul.u32 2, %v2945_v29  ;;  %v457_v1 = vmul.u32 2, %v2980_v57  ;;  %v458_v21 = vmul.u32 2, %v3003_v12  ;;  %v935_v19 = vld [vmem:[%s2915_s14 + $0x10] sm:$0xff]  ;;  %v936_v28 = vld [vmem:[%s2915_s14 + $0x18] sm:$0xff] }
  0xb1   : > { %2059 = vmatmul.msk.f32.vlgmr.msra.gmra.mxu0 %vm2955_vm1, %v2448_v48  ;;  %2083 = vmatmul.msk.f32.vlgmr.msra.gmra.mxu1 %vm2955_vm1, %v2448_v48  ;;  %v2967_v45 = vadd.f32 %v2358_v30, %v1697_v34  ;;  %v3024_v27 = vadd.s32 32, %v2936_v23  ;;  %v933_v30 = vld [vmem:[%s2915_s14] sm:$0xff]  ;;  %v3386_v35 = vadd.s32 128, %v2936_v23 }
  0xb2   : > { %968 = vmatpush.msrb.mxu0 %v957_v20  ;;  %1009 = vmatpush.msrb.mxu1 %v958_v32  ;;  %vm2975_vm4 = vcmp.eq.s32.totalorder %v2934_v22, %v456_v47  ;;  %vm2998_vm5 = vcmp.eq.s32.totalorder %v2934_v22, %v457_v1  ;;  %vm3019_vm7 = vcmp.eq.s32.totalorder %v2934_v22, %v458_v21  ;;  %v934_v32 = vld [vmem:[%s2915_s14 + $0x8] sm:$0xff]  ;;  %v2202_v47 = vld [vmem:[%s2915_s14 + $0x1f8] sm:$0xff] }
  0xb3   : > { %v459_v20 = vmul.u32 2, %v3024_v27 }
  0xb4   : > { %969 = vmatpush.msrb.mxu0 %v955_v18  ;;  %1010 = vmatpush.msrb.mxu1 %v956_v44  ;;  %v3043_v18 = vadd.s32 40, %v2936_v23  ;;  %v2201_v44 = vld [vmem:[%s2915_s14 + $0x1f0] sm:$0xff] }
  0xb5   : > { %vm3038_vm15 = vcmp.eq.s32.totalorder %v2934_v22, %v459_v20  ;;  %v3115_v20 = vadd.s32 248, %v2936_v23 }
  0xb6   : > { %970 = vmatpush.msrb.mxu0 %v953_v50  ;;  %1011 = vmatpush.msrb.mxu1 %v954_v51  ;;  %v2199_v50 = vld [vmem:[%s2915_s14 + $0x1e0] sm:$0xff]  ;;  %v460_v51 = vmul.u32 2, %v3043_v18 }
  0xb8   : > { %971 = vmatpush.msrb.mxu0 %v951_v52  ;;  %1012 = vmatpush.msrb.mxu1 %v952_v53  ;;  %v2200_v52 = vld [vmem:[%s2915_s14 + $0x1e8] sm:$0xff]  ;;  %vm3057_vm0 = vcmp.eq.s32.totalorder %v2934_v22, %v460_v51  ;;  %v3149_v51 = vadd.s32 104, %v2936_v23 }
  0xb9   : > { %2060 = vmatmul.msk.f32.gmra.mxu0 %vm2975_vm4, %v2448_v48  ;;  %2084 = vmatmul.msk.f32.gmra.mxu1 %vm2975_vm4, %v2448_v48 }
  0xba   : > { %972 = vmatpush.msrb.mxu0 %v949_v61  ;;  %1013 = vmatpush.msrb.mxu1 %v950_v62  ;;  %v3062_v61 = vadd.s32 48, %v2936_v23  ;;  %v2197_v62 = vld [vmem:[%s2915_s14 + $0x1d0] sm:$0xff] }
  0xbc   : > { %973 = vmatpush.msrb.mxu0 %v947_v63  ;;  %1014 = vmatpush.msrb.mxu1 %v948_v0  ;;  %v2198_v63 = vld [vmem:[%s2915_s14 + $0x1d8] sm:$0xff]  ;;  %v2195_v0 = vld [vmem:[%s2915_s14 + $0x1c0] sm:$0xff]  ;;  %v461_v1 = vmul.u32 2, %v3062_v61 }
  0xbe   : > { %974 = vmatpush.msrb.mxu0 %v945_v2  ;;  %1015 = vmatpush.msrb.mxu1 %v946_v3  ;;  %v2196_v2 = vld [vmem:[%s2915_s14 + $0x1c8] sm:$0xff]  ;;  %vm3076_vm2 = vcmp.eq.s32.totalorder %v2934_v22, %v461_v1  ;;  %v3160_v1 = vadd.s32 224, %v2936_v23  ;;  %v4298_v3 = vmov 0.0  }
  0xc0   : > { %975 = vmatpush.msrb.mxu0 %v943_v8  ;;  %1016 = vmatpush.msrb.mxu1 %v944_v33  ;;  %v3081_v8 = vadd.s32 56, %v2936_v23  ;;  %v2193_v33 = vld [vmem:[%s2915_s14 + $0x1b0] sm:$0xff] }
  0xc1   : > { %2061 = vmatmul.msk.f32.gmra.mxu0 %vm2998_vm5, %v2448_v48  ;;  %2085 = vmatmul.msk.f32.gmra.mxu1 %vm2998_vm5, %v2448_v48 }
  0xc2   : > { %976 = vmatpush.msrb.mxu0 %v941_v13  ;;  %1017 = vmatpush.msrb.mxu1 %v942_v14  ;;  %v2194_v13 = vld [vmem:[%s2915_s14 + $0x1b8] sm:$0xff]  ;;  %v2191_v14 = vld [vmem:[%s2915_s14 + $0x1a0] sm:$0xff] }
  0xc4   : > { %977 = vmatpush.msrb.mxu0 %v939_v15  ;;  %1018 = vmatpush.msrb.mxu1 %v940_v17  ;;  %v462_v15 = vmul.u32 2, %v3081_v8  ;;  %v2192_v17 = vld [vmem:[%s2915_s14 + $0x1a8] sm:$0xff] }
  0xc6   : > { %978 = vmatpush.msrb.mxu0 %v937_v24  ;;  %1019 = vmatpush.msrb.mxu1 %v938_v25  ;;  %vm3095_vm3 = vcmp.eq.s32.totalorder %v2934_v22, %v462_v15  ;;  %v3100_v24 = vmul.u32 2, %v2934_v22  ;;  %v2189_v25 = vld [vmem:[%s2915_s14 + $0x190] sm:$0xff]  ;;  %v2188_v22 = vld [vmem:[%s2915_s14 + $0x188] sm:$0xff] }
  0xc7   : > { %v2181_v15 = vld [vmem:[%s2915_s14 + $0x150] sm:$0xff] }
  0xc8   : > { %979 = vmatpush.msrb.mxu0 %v935_v19  ;;  %1020 = vmatpush.msrb.mxu1 %v936_v28  ;;  %v2190_v19 = vld [vmem:[%s2915_s14 + $0x198] sm:$0xff]  ;;  %v2187_v28 = vld [vmem:[%s2915_s14 + $0x180] sm:$0xff]  ;;  %vm4192_vm8 = vcmp.eq.s32.totalorder %v3115_v20, %v3100_v24  ;;  %vm4159_vm11 = vcmp.eq.s32.totalorder %v3149_v51, %v3100_v24  ;;  %vm4161_vm14 = vcmp.eq.s32.totalorder %v3160_v1, %v3100_v24 }
  0xc9   : > { %2062 = vmatmul.msk.f32.gmra.mxu0 %vm3019_vm7, %v2448_v48  ;;  %2086 = vmatmul.msk.f32.gmra.mxu1 %vm3019_vm7, %v2448_v48 }
  0xca   : > { %980 = vmatpush.msrb.mxu0 %v933_v30  ;;  %1021 = vmatpush.msrb.mxu1 %v934_v32  ;;  %v3112_v30 = vadd.s32 120, %v2936_v23  ;;  %v3131_v32 = vadd.s32 112, %v2936_v23 }
  0xcb   : > { %2107 = vmatpush.msk.msra.mxu3 %vm4192_vm8, %v2448_v48 }
  0xcc   : > { %1178 = vmatpush.msra.mxu0 %v2201_v44  ;;  %1219 = vmatpush.msra.mxu1 %v2202_v47  ;;  %vm4191_vm6 = vcmp.eq.s32.totalorder %v3112_v30, %v3100_v24  ;;  %v3134_v44 = vadd.s32 240, %v2936_v23  ;;  %v2185_v47 = vld [vmem:[%s2915_s14 + $0x170] sm:$0xff]  ;;  %vm4166_vm9 = vcmp.eq.s32.totalorder %v3131_v32, %v3100_v24 }
  0xcd   : > { %2091 = vmatpush.msk.msra.mxu2 %vm4191_vm6, %v2448_v48 }
  0xce   : > { %1179 = vmatpush.msra.mxu0 %v2199_v50  ;;  %1220 = vmatpush.msra.mxu1 %v2200_v52  ;;  %v2186_v50 = vld [vmem:[%s2915_s14 + $0x178] sm:$0xff]  ;;  %vm4160_vm10 = vcmp.eq.s32.totalorder %v3134_v44, %v3100_v24  ;;  %v3152_v52 = vadd.s32 232, %v2936_v23 }
  0xcf   : > { %2092 = vmatpush.msk.msra.mxu2 %vm4166_vm9, %v2448_v48  ;;  %2108 = vmatpush.msk.msra.mxu3 %vm4160_vm10, %v2448_v48 }
  0xd0   : > { %1180 = vmatpush.msra.mxu0 %v2197_v62  ;;  %1221 = vmatpush.msra.mxu1 %v2198_v63  ;;  %v2183_v62 = vld [vmem:[%s2915_s14 + $0x160] sm:$0xff]  ;;  %v2184_v63 = vld [vmem:[%s2915_s14 + $0x168] sm:$0xff]  ;;  %vm4163_vm12 = vcmp.eq.s32.totalorder %v3152_v52, %v3100_v24 }
  0xd1   : > { %2063 = vmatmul.msk.f32.gmra.mxu0 %vm3038_vm15, %v2448_v48  ;;  %2087 = vmatmul.msk.f32.gmra.mxu1 %vm3038_vm15, %v2448_v48 }
  0xd2   : > { %1181 = vmatpush.msra.mxu0 %v2195_v0  ;;  %1222 = vmatpush.msra.mxu1 %v2196_v2  ;;  %v3157_v0 = vadd.s32 96, %v2936_v23  ;;  %v3175_v2 = vadd.s32 88, %v2936_v23 }
  0xd3   : > { %2093 = vmatpush.msk.msra.mxu2 %vm4159_vm11, %v2448_v48  ;;  %2109 = vmatpush.msk.msra.mxu3 %vm4163_vm12, %v2448_v48 }
  0xd4   : > { %1182 = vmatpush.msra.mxu0 %v2193_v33  ;;  %1223 = vmatpush.msra.mxu1 %v2194_v13  ;;  %v3178_v33 = vadd.s32 216, %v2936_v23  ;;  %vm4162_vm13 = vcmp.eq.s32.totalorder %v3157_v0, %v3100_v24  ;;  %vm4164_vm11 = vcmp.eq.s32.totalorder %v3175_v2, %v3100_v24  ;;  %v3205_v13 = vadd.s32 80, %v2936_v23 }
  0xd5   : > { %2094 = vmatpush.msk.msra.mxu2 %vm4162_vm13, %v2448_v48  ;;  %2110 = vmatpush.msk.msra.mxu3 %vm4161_vm14, %v2448_v48 }
  0xd6   : > { %1183 = vmatpush.msra.mxu0 %v2191_v14  ;;  %1224 = vmatpush.msra.mxu1 %v2192_v17  ;;  %vm4165_vm10 = vcmp.eq.s32.totalorder %v3178_v33, %v3100_v24  ;;  %v3208_v14 = vadd.s32 208, %v2936_v23  ;;  %v2182_v17 = vld [vmem:[%s2915_s14 + $0x158] sm:$0xff]  ;;  %vm4168_vm14 = vcmp.eq.s32.totalorder %v3205_v13, %v3100_v24 }
  0xd7   : > { %2095 = vmatpush.msk.msra.mxu2 %vm4164_vm11, %v2448_v48  ;;  %2111 = vmatpush.msk.msra.mxu3 %vm4165_vm10, %v2448_v48 }
  0xd8   : > { %1184 = vmatpush.msra.mxu0 %v2189_v25  ;;  %1225 = vmatpush.msra.mxu1 %v2190_v19  ;;  %vm4167_vm13 = vcmp.eq.s32.totalorder %v3208_v14, %v3100_v24  ;;  %v3223_v25 = vadd.s32 72, %v2936_v23  ;;  %v3226_v19 = vadd.s32 200, %v2936_v23 }
  0xd9   : > { %2064 = vmatmul.msk.f32.gmra.mxu0 %vm3057_vm0, %v2448_v48  ;;  %2088 = vmatmul.msk.f32.gmra.mxu1 %vm3057_vm0, %v2448_v48 }
  0xda   : > { %1185 = vmatpush.msra.mxu0 %v2187_v28  ;;  %1226 = vmatpush.msra.mxu1 %v2188_v22  ;;  %v2179_v28 = vld [vmem:[%s2915_s14 + $0x140] sm:$0xff]  ;;  %v2180_v22 = vld [vmem:[%s2915_s14 + $0x148] sm:$0xff]  ;;  %vm4175_vm12 = vcmp.eq.s32.totalorder %v3223_v25, %v3100_v24  ;;  %vm4169_vm11 = vcmp.eq.s32.totalorder %v3226_v19, %v3100_v24 }
  0xdb   : > { %2096 = vmatpush.msk.msra.mxu2 %vm4168_vm14, %v2448_v48  ;;  %2112 = vmatpush.msk.msra.mxu3 %vm4167_vm13, %v2448_v48  ;;  %vm4178_vm13 = vcmp.eq.s32.totalorder %v3081_v8, %v3100_v24 }
  0xdc   : > { %1186 = vmatpush.msra.mxu0 %v2185_v47  ;;  %1227 = vmatpush.msra.mxu1 %v2186_v50  ;;  %v3239_v47 = vadd.s32 64, %v2936_v23  ;;  %v3242_v50 = vadd.s32 192, %v2936_v23 }
  0xdd   : > { %2097 = vmatpush.msk.msra.mxu2 %vm4175_vm12, %v2448_v48  ;;  %2113 = vmatpush.msk.msra.mxu3 %vm4169_vm11, %v2448_v48  ;;  %vm4180_vm11 = vcmp.eq.s32.totalorder %v3062_v61, %v3100_v24 }
  0xde   : > { %1187 = vmatpush.msra.mxu0 %v2183_v62  ;;  %1228 = vmatpush.msra.mxu1 %v2184_v63  ;;  %v3249_v62 = vadd.s32 184, %v2936_v23  ;;  %vm4170_vm10 = vcmp.eq.s32.totalorder %v3239_v47, %v3100_v24  ;;  %vm4174_vm9 = vcmp.eq.s32.totalorder %v3242_v50, %v3100_v24  ;;  %v3276_v63 = vadd.s32 176, %v2936_v23 }
  0xdf   : > { %2098 = vmatpush.msk.msra.mxu2 %vm4170_vm10, %v2448_v48  ;;  %2114 = vmatpush.msk.msra.mxu3 %vm4174_vm9, %v2448_v48  ;;  %vm4186_vm9 = vcmp.eq.s32.totalorder %v3043_v18, %v3100_v24 }
  0xe0   : > { %1188 = vmatpush.msra.mxu0 %v2181_v15  ;;  %1229 = vmatpush.msra.mxu1 %v2182_v17  ;;  %vm4177_vm14 = vcmp.eq.s32.totalorder %v3249_v62, %v3100_v24  ;;  %v2177_v15 = vld [vmem:[%s2915_s14 + $0x130] sm:$0xff]  ;;  %v2178_v17 = vld [vmem:[%s2915_s14 + $0x138] sm:$0xff]  ;;  %vm4179_vm10 = vcmp.eq.s32.totalorder %v3276_v63, %v3100_v24 }
  0xe1   : > { %2065 = vmatmul.msk.f32.gmra.mxu0 %vm3076_vm2, %v2448_v48  ;;  %2089 = vmatmul.msk.f32.gmra.mxu1 %vm3076_vm2, %v2448_v48 }
  0xe2   : > { %1189 = vmatpush.msra.mxu0 %v2179_v28  ;;  %1230 = vmatpush.msra.mxu1 %v2180_v22  ;;  %v3299_v28 = vadd.s32 168, %v2936_v23  ;;  %v2175_v22 = vld [vmem:[%s2915_s14 + $0x120] sm:$0xff] }
  0xe3   : > { %2099 = vmatpush.msk.msra.mxu2 %vm4178_vm13, %v2448_v48  ;;  %2115 = vmatpush.msk.msra.mxu3 %vm4177_vm14, %v2448_v48  ;;  %vm4182_vm14 = vcmp.eq.s32.totalorder %v3024_v27, %v3100_v24  ;;  %vm4185_vm13 = vcmp.eq.s32.totalorder %v3312_v36, %v3100_v24 }
  0xe4   : > { %1190 = vmatpush.msra.mxu0 %v2177_v15  ;;  %1231 = vmatpush.msra.mxu1 %v2178_v17  ;;  %vm4181_vm12 = vcmp.eq.s32.totalorder %v3299_v28, %v3100_v24  ;;  %v2173_v15 = vld [vmem:[%s2915_s14 + $0x110] sm:$0xff]  ;;  %v2174_v17 = vld [vmem:[%s2915_s14 + $0x118] sm:$0xff] }
  0xe5   : > { %2100 = vmatpush.msk.msra.mxu2 %vm4180_vm11, %v2448_v48  ;;  %2116 = vmatpush.msk.msra.mxu3 %vm4179_vm10, %v2448_v48  ;;  %vm4189_vm10 = vcmp.eq.s32.totalorder %v3003_v12, %v3100_v24  ;;  %vm4188_vm11 = vcmp.eq.s32.totalorder %v3319_v38, %v3100_v24 }
  0xe6   : > { %1191 = vmatpush.msra.mxu0 %v2175_v22  ;;  %1232 = vmatpush.msra.mxu1 %v2176_v46  ;;  %v3346_v46 = vadd.s32 144, %v2936_v23  ;;  %v3369_v22 = vadd.s32 136, %v2936_v23 }
  0xe7   : > { %2101 = vmatpush.msk.msra.mxu2 %vm4186_vm9, %v2448_v48  ;;  %2117 = vmatpush.msk.msra.mxu3 %vm4181_vm12, %v2448_v48  ;;  %vm514_vm12 = vcmp.eq.s32.totalorder %v2980_v57, %v3100_v24 }
  0xe8   : > { %1192 = vmatpush.msra.mxu0 %v2173_v15  ;;  %1233 = vmatpush.msra.mxu1 %v2174_v17  ;;  %vm529_vm9 = vcmp.eq.s32.totalorder %v3369_v22, %v3100_v24  ;;  %v2287_v15 = vld [vmem:[%s2915_s14 + $0x2e0] sm:$0xff]  ;;  %v2288_v17 = vld [vmem:[%s2915_s14 + $0x2e8] sm:$0xff] }
  0xe9   : > { %2066 = vmatmul.msk.f32.gmra.mxu0 %vm3095_vm3, %v2448_v48  ;;  %2090 = vmatmul.msk.f32.gmra.mxu1 %vm3095_vm3, %v2448_v48 }
  0xea   : > { %2102 = vmatpush.msk.msra.mxu2 %vm4182_vm14, %v2448_v48  ;;  %2118 = vmatpush.msk.msra.mxu3 %vm4185_vm13, %v2448_v48  ;;  %vm530_vm14 = vcmp.eq.s32.totalorder %v3346_v46, %v3100_v24  ;;  %vm513_vm13 = vcmp.eq.s32.totalorder %v2945_v29, %v3100_v24 }
  0xeb   : > { %1193 = vmatpush.msra.mxu0 %v2171_v40  ;;  %1234 = vmatpush.msra.mxu1 %v2172_v42  ;;  %v2289_v40 = vld [vmem:[%s2915_s14 + $0x2f0] sm:$0xff]  ;;  %v2290_v42 = vld [vmem:[%s2915_s14 + $0x2f8] sm:$0xff] }
  0xec   : > { %2103 = vmatpush.msk.msra.mxu2 %vm4189_vm10, %v2448_v48  ;;  %2119 = vmatpush.msk.msra.mxu3 %vm4188_vm11, %v2448_v48  ;;  %vm4193_vm11 = vcmp.eq.s32.totalorder %v2936_v23, %v3100_v24  ;;  %vm4190_vm10 = vcmp.eq.s32.totalorder %v3386_v35, %v3100_v24 }
  0xee   : > { %2104 = vmatpush.msk.msra.mxu2 %vm514_vm12, %v2448_v48  ;;  %2120 = vmatpush.msk.msra.mxu3 %vm530_vm14, %v2448_v48 }
  0xf0   : > { %2105 = vmatpush.msk.msra.mxu2 %vm513_vm13, %v2448_v48  ;;  %2121 = vmatpush.msk.msra.mxu3 %vm529_vm9, %v2448_v48 }
  0xf1   : > { %2123 = vmatmul.msk.f32.vlgmr.msrb.gmra.mxu0 %vm2955_vm1, %v2448_v48  ;;  %2131 = vmatmul.msk.f32.vlgmr.msrb.gmra.mxu1 %vm2955_vm1, %v2448_v48 }
  0xf2   : > { %2106 = vmatpush.msk.msra.mxu2 %vm4193_vm11, %v2448_v48  ;;  %2122 = vmatpush.msk.msra.mxu3 %vm4190_vm10, %v2448_v48  ;;  %vm4216_vm10 = vcmp.eq.s32.totalorder %v3131_v32, %v3100_v24  ;;  %vm4219_vm11 = vcmp.eq.s32.totalorder %v3152_v52, %v3100_v24 }
  0xf3   : > { %1392 = vmatpush.msrb.mxu0 %v2289_v40  ;;  %1433 = vmatpush.msrb.mxu1 %v2290_v42  ;;  %v2285_v40 = vld [vmem:[%s2915_s14 + $0x2d0] sm:$0xff]  ;;  %v2286_v42 = vld [vmem:[%s2915_s14 + $0x2d8] sm:$0xff] }
  0xf4   : > { %2139 = vmatpush.msk.msrb.mxu2 %vm4191_vm6, %v2448_v48  ;;  %2155 = vmatpush.msk.msrb.mxu3 %vm4192_vm8, %v2448_v48  ;;  %vm4217_vm6 = vcmp.eq.s32.totalorder %v3134_v44, %v3100_v24  ;;  %vm4218_vm8 = vcmp.eq.s32.totalorder %v3149_v51, %v3100_v24 }
  0xf5   : > { %1393 = vmatpush.msrb.mxu0 %v2287_v15  ;;  %1434 = vmatpush.msrb.mxu1 %v2288_v17  ;;  %v2283_v15 = vld [vmem:[%s2915_s14 + $0x2c0] sm:$0xff]  ;;  %v2284_v17 = vld [vmem:[%s2915_s14 + $0x2c8] sm:$0xff] }
  0xf6   : > { %2140 = vmatpush.msk.msrb.mxu2 %vm4216_vm10, %v2448_v48  ;;  %2156 = vmatpush.msk.msrb.mxu3 %vm4217_vm6, %v2448_v48  ;;  %vm4220_vm10 = vcmp.eq.s32.totalorder %v3157_v0, %v3100_v24  ;;  %vm4221_vm6 = vcmp.eq.s32.totalorder %v3160_v1, %v3100_v24 }
  0xf7   : > { %1394 = vmatpush.msrb.mxu0 %v2285_v40  ;;  %1435 = vmatpush.msrb.mxu1 %v2286_v42  ;;  %v2281_v40 = vld [vmem:[%s2915_s14 + $0x2b0] sm:$0xff]  ;;  %v2282_v42 = vld [vmem:[%s2915_s14 + $0x2b8] sm:$0xff] }
  0xf8   : > { %2141 = vmatpush.msk.msrb.mxu2 %vm4218_vm8, %v2448_v48  ;;  %2157 = vmatpush.msk.msrb.mxu3 %vm4219_vm11, %v2448_v48  ;;  %vm4222_vm8 = vcmp.eq.s32.totalorder %v3175_v2, %v3100_v24  ;;  %vm4223_vm11 = vcmp.eq.s32.totalorder %v3178_v33, %v3100_v24 }
  0xf9   : > { %2124 = vmatmul.msk.f32.gmra.mxu0 %vm2975_vm4, %v2448_v48  ;;  %2132 = vmatmul.msk.f32.gmra.mxu1 %vm2975_vm4, %v2448_v48 }
  0xfa   : > { %2142 = vmatpush.msk.msrb.mxu2 %vm4220_vm10, %v2448_v48  ;;  %2158 = vmatpush.msk.msrb.mxu3 %vm4221_vm6, %v2448_v48  ;;  %vm4224_vm10 = vcmp.eq.s32.totalorder %v3205_v13, %v3100_v24  ;;  %vm4225_vm6 = vcmp.eq.s32.totalorder %v3208_v14, %v3100_v24 }
  0xfb   : > { %1395 = vmatpush.msrb.mxu0 %v2283_v15  ;;  %1436 = vmatpush.msrb.mxu1 %v2284_v17  ;;  %v2279_v15 = vld [vmem:[%s2915_s14 + $0x2a0] sm:$0xff]  ;;  %v2280_v17 = vld [vmem:[%s2915_s14 + $0x2a8] sm:$0xff] }
  0xfc   : > { %2143 = vmatpush.msk.msrb.mxu2 %vm4222_vm8, %v2448_v48  ;;  %2159 = vmatpush.msk.msrb.mxu3 %vm4223_vm11, %v2448_v48  ;;  %vm4226_vm8 = vcmp.eq.s32.totalorder %v3223_v25, %v3100_v24  ;;  %vm4227_vm11 = vcmp.eq.s32.totalorder %v3226_v19, %v3100_v24 }
  0xfd   : > { %1396 = vmatpush.msrb.mxu0 %v2281_v40  ;;  %1437 = vmatpush.msrb.mxu1 %v2282_v42  ;;  %v2277_v40 = vld [vmem:[%s2915_s14 + $0x290] sm:$0xff]  ;;  %v2278_v42 = vld [vmem:[%s2915_s14 + $0x298] sm:$0xff] }
  0xfe   : > { %2144 = vmatpush.msk.msrb.mxu2 %vm4224_vm10, %v2448_v48  ;;  %2160 = vmatpush.msk.msrb.mxu3 %vm4225_vm6, %v2448_v48  ;;  %vm4228_vm10 = vcmp.eq.s32.totalorder %v3239_v47, %v3100_v24  ;;  %vm4229_vm6 = vcmp.eq.s32.totalorder %v3242_v50, %v3100_v24 }
  0xff   : > { %1397 = vmatpush.msrb.mxu0 %v2279_v15  ;;  %1438 = vmatpush.msrb.mxu1 %v2280_v17  ;;  %v2275_v15 = vld [vmem:[%s2915_s14 + $0x280] sm:$0xff]  ;;  %v2276_v17 = vld [vmem:[%s2915_s14 + $0x288] sm:$0xff] }
 0x100   : > { %2145 = vmatpush.msk.msrb.mxu2 %vm4226_vm8, %v2448_v48  ;;  %2161 = vmatpush.msk.msrb.mxu3 %vm4227_vm11, %v2448_v48  ;;  %vm4230_vm8 = vcmp.eq.s32.totalorder %v3081_v8, %v3100_v24  ;;  %vm4231_vm11 = vcmp.eq.s32.totalorder %v3249_v62, %v3100_v24 }
 0x101   : > { %2125 = vmatmul.msk.f32.gmra.mxu0 %vm2998_vm5, %v2448_v48  ;;  %2133 = vmatmul.msk.f32.gmra.mxu1 %vm2998_vm5, %v2448_v48 }
 0x102   : > { %2146 = vmatpush.msk.msrb.mxu2 %vm4228_vm10, %v2448_v48  ;;  %2162 = vmatpush.msk.msrb.mxu3 %vm4229_vm6, %v2448_v48  ;;  %vm4232_vm10 = vcmp.eq.s32.totalorder %v3062_v61, %v3100_v24  ;;  %vm4233_vm6 = vcmp.eq.s32.totalorder %v3276_v63, %v3100_v24 }
 0x103   : > { %1398 = vmatpush.msrb.mxu0 %v2277_v40  ;;  %1439 = vmatpush.msrb.mxu1 %v2278_v42 }
 0x104   : > { %2147 = vmatpush.msk.msrb.mxu2 %vm4230_vm8, %v2448_v48  ;;  %2163 = vmatpush.msk.msrb.mxu3 %vm4231_vm11, %v2448_v48  ;;  %vm4234_vm8 = vcmp.eq.s32.totalorder %v3043_v18, %v3100_v24  ;;  %vm4235_vm11 = vcmp.eq.s32.totalorder %v3299_v28, %v3100_v24 }
 0x105   : > { %1399 = vmatpush.msrb.mxu0 %v2275_v15  ;;  %1440 = vmatpush.msrb.mxu1 %v2276_v17  ;;  %v2273_v15 = vld [vmem:[%s2915_s14 + $0x270] sm:$0xff]  ;;  %v2274_v17 = vld [vmem:[%s2915_s14 + $0x278] sm:$0xff] }
 0x106   : > { %2148 = vmatpush.msk.msrb.mxu2 %vm4232_vm10, %v2448_v48  ;;  %2164 = vmatpush.msk.msrb.mxu3 %vm4233_vm6, %v2448_v48  ;;  %vm4236_vm10 = vcmp.eq.s32.totalorder %v3024_v27, %v3100_v24  ;;  %vm4237_vm6 = vcmp.eq.s32.totalorder %v3312_v36, %v3100_v24 }
 0x107   : > { %1400 = vmatpush.msrb.mxu0 %v2273_v15  ;;  %1441 = vmatpush.msrb.mxu1 %v2274_v17 }
 0x108   : > { %2149 = vmatpush.msk.msrb.mxu2 %vm4234_vm8, %v2448_v48  ;;  %2165 = vmatpush.msk.msrb.mxu3 %vm4235_vm11, %v2448_v48  ;;  %vm4238_vm8 = vcmp.eq.s32.totalorder %v3003_v12, %v3100_v24  ;;  %vm4239_vm11 = vcmp.eq.s32.totalorder %v3319_v38, %v3100_v24 }
 0x109   : > { %2126 = vmatmul.msk.f32.gmra.mxu0 %vm3019_vm7, %v2448_v48  ;;  %2134 = vmatmul.msk.f32.gmra.mxu1 %vm3019_vm7, %v2448_v48 }
 0x10a   : > { %2150 = vmatpush.msk.msrb.mxu2 %vm4236_vm10, %v2448_v48  ;;  %2166 = vmatpush.msk.msrb.mxu3 %vm4237_vm6, %v2448_v48  ;;  %vm4240_vm10 = vcmp.eq.s32.totalorder %v2936_v23, %v3100_v24  ;;  %vm4241_vm6 = vcmp.eq.s32.totalorder %v3386_v35, %v3100_v24 }
 0x10c   : > { %2151 = vmatpush.msk.msrb.mxu2 %vm4238_vm8, %v2448_v48  ;;  %2167 = vmatpush.msk.msrb.mxu3 %vm4239_vm11, %v2448_v48  ;;  %vm4242_vm8 = vcmp.eq.s32.totalorder %v3112_v30, %v3100_v24  ;;  %vm4243_vm11 = vcmp.eq.s32.totalorder %v3115_v20, %v3100_v24 }
 0x10e   : > { %2152 = vmatpush.msk.msrb.mxu2 %vm514_vm12, %v2448_v48  ;;  %2168 = vmatpush.msk.msrb.mxu3 %vm530_vm14, %v2448_v48 }
 0x110   : > { %2153 = vmatpush.msk.msrb.mxu2 %vm513_vm13, %v2448_v48  ;;  %2169 = vmatpush.msk.msrb.mxu3 %vm529_vm9, %v2448_v48 }
 0x111   : > { %2127 = vmatmul.msk.f32.gmra.mxu0 %vm3038_vm15, %v2448_v48  ;;  %2135 = vmatmul.msk.f32.gmra.mxu1 %vm3038_vm15, %v2448_v48 }
 0x112   : > { %2154 = vmatpush.msk.msrb.mxu2 %vm4240_vm10, %v2448_v48  ;;  %2170 = vmatpush.msk.msrb.mxu3 %vm4241_vm6, %v2448_v48  ;;  %vm4244_vm10 = vcmp.eq.s32.totalorder %v3131_v32, %v3100_v24  ;;  %vm4245_vm6 = vcmp.eq.s32.totalorder %v3134_v44, %v3100_v24 }
 0x119   : > { %2128 = vmatmul.msk.f32.gmra.mxu0 %vm3057_vm0, %v2448_v48  ;;  %2136 = vmatmul.msk.f32.gmra.mxu1 %vm3057_vm0, %v2448_v48 }
 0x121   : > { %2129 = vmatmul.msk.f32.gmra.mxu0 %vm3076_vm2, %v2448_v48  ;;  %2137 = vmatmul.msk.f32.gmra.mxu1 %vm3076_vm2, %v2448_v48 }
 0x129   : > { %2130 = vmatmul.msk.f32.gmra.mxu0 %vm3095_vm3, %v2448_v48  ;;  %2138 = vmatmul.msk.f32.gmra.mxu1 %vm3095_vm3, %v2448_v48 }
 0x12e   : > { %v786_v40 = vpop.f32.mrf.mxu0  ;;  %v827_v42 = vpop.f32.mrf.mxu1 }
 0x12f   : > { %867 = vmatmul.f32.vlgmr.msra.gmra.mxu2 %v786_v40  ;;  %908 = vmatmul.f32.vlgmr.msra.gmra.mxu3 %v827_v42  ;;  %v2271_v40 = vld [vmem:[%s2915_s14 + $0x260] sm:$0xff]  ;;  %v2272_v42 = vld [vmem:[%s2915_s14 + $0x268] sm:$0xff] }
 0x130   : > { %1401 = vmatpush.msrb.mxu0 %v2271_v40  ;;  %1442 = vmatpush.msrb.mxu1 %v2272_v42  ;;  %v2269_v40 = vld [vmem:[%s2915_s14 + $0x250] sm:$0xff]  ;;  %v2270_v42 = vld [vmem:[%s2915_s14 + $0x258] sm:$0xff] }
 0x131   : > { %2203 = vmatmul.msk.f32.vlgmr.msra.gmra.mxu0 %vm2955_vm1, %v2448_v48  ;;  %2211 = vmatmul.msk.f32.vlgmr.msra.gmra.mxu1 %vm2955_vm1, %v2448_v48 }
 0x132   : > { %1402 = vmatpush.msrb.mxu0 %v2269_v40  ;;  %1443 = vmatpush.msrb.mxu1 %v2270_v42 }
 0x133   : > { %2219 = vmatpush.msk.msra.mxu2 %vm4242_vm8, %v2448_v48  ;;  %2235 = vmatpush.msk.msra.mxu3 %vm4243_vm11, %v2448_v48  ;;  %vm4246_vm8 = vcmp.eq.s32.totalorder %v3149_v51, %v3100_v24  ;;  %vm4247_vm11 = vcmp.eq.s32.totalorder %v3152_v52, %v3100_v24 }
 0x135   : > { %2220 = vmatpush.msk.msra.mxu2 %vm4244_vm10, %v2448_v48  ;;  %2236 = vmatpush.msk.msra.mxu3 %vm4245_vm6, %v2448_v48  ;;  %vm4248_vm10 = vcmp.eq.s32.totalorder %v3157_v0, %v3100_v24  ;;  %vm4249_vm6 = vcmp.eq.s32.totalorder %v3160_v1, %v3100_v24 }
 0x136   : > { %v789_v15 = vpop.f32.mrf.mxu0  ;;  %v830_v17 = vpop.f32.mrf.mxu1 }
 0x137   : > { %870 = vmatmul.f32.gmra.mxu2 %v789_v15  ;;  %911 = vmatmul.f32.gmra.mxu3 %v830_v17  ;;  %v2267_v15 = vld [vmem:[%s2915_s14 + $0x240] sm:$0xff]  ;;  %v2268_v17 = vld [vmem:[%s2915_s14 + $0x248] sm:$0xff] }
 0x138   : > { %1403 = vmatpush.msrb.mxu0 %v2267_v15  ;;  %1444 = vmatpush.msrb.mxu1 %v2268_v17  ;;  %v2265_v15 = vld [vmem:[%s2915_s14 + $0x230] sm:$0xff]  ;;  %v2266_v17 = vld [vmem:[%s2915_s14 + $0x238] sm:$0xff] }
 0x139   : > { %2204 = vmatmul.msk.f32.gmra.mxu0 %vm2975_vm4, %v2448_v48  ;;  %2212 = vmatmul.msk.f32.gmra.mxu1 %vm2975_vm4, %v2448_v48 }
 0x13a   : > { %2221 = vmatpush.msk.msra.mxu2 %vm4246_vm8, %v2448_v48  ;;  %2237 = vmatpush.msk.msra.mxu3 %vm4247_vm11, %v2448_v48  ;;  %vm4250_vm8 = vcmp.eq.s32.totalorder %v3175_v2, %v3100_v24  ;;  %vm4251_vm11 = vcmp.eq.s32.totalorder %v3178_v33, %v3100_v24 }
 0x13b   : > { %1404 = vmatpush.msrb.mxu0 %v2265_v15  ;;  %1445 = vmatpush.msrb.mxu1 %v2266_v17 }
 0x13c   : > { %2222 = vmatpush.msk.msra.mxu2 %vm4248_vm10, %v2448_v48  ;;  %2238 = vmatpush.msk.msra.mxu3 %vm4249_vm6, %v2448_v48  ;;  %vm4252_vm10 = vcmp.eq.s32.totalorder %v3205_v13, %v3100_v24  ;;  %vm4253_vm6 = vcmp.eq.s32.totalorder %v3208_v14, %v3100_v24 }
 0x13e   : > { %v792_v40 = vpop.f32.mrf.mxu0  ;;  %v833_v42 = vpop.f32.mrf.mxu1  ;;  %2223 = vmatpush.msk.msra.mxu2 %vm4250_vm8, %v2448_v48  ;;  %2239 = vmatpush.msk.msra.mxu3 %vm4251_vm11, %v2448_v48  ;;  %vm4254_vm8 = vcmp.eq.s32.totalorder %v3223_v25, %v3100_v24  ;;  %vm4255_vm11 = vcmp.eq.s32.totalorder %v3226_v19, %v3100_v24 }
 0x13f   : > { %873 = vmatmul.f32.gmra.mxu2 %v792_v40  ;;  %914 = vmatmul.f32.gmra.mxu3 %v833_v42  ;;  %v2263_v40 = vld [vmem:[%s2915_s14 + $0x220] sm:$0xff]  ;;  %v2264_v42 = vld [vmem:[%s2915_s14 + $0x228] sm:$0xff] }
 0x140   : > { %1405 = vmatpush.msrb.mxu0 %v2263_v40  ;;  %1446 = vmatpush.msrb.mxu1 %v2264_v42  ;;  %v2261_v40 = vld [vmem:[%s2915_s14 + $0x210] sm:$0xff]  ;;  %v2262_v42 = vld [vmem:[%s2915_s14 + $0x218] sm:$0xff] }
 0x141   : > { %2205 = vmatmul.msk.f32.gmra.mxu0 %vm2998_vm5, %v2448_v48  ;;  %2213 = vmatmul.msk.f32.gmra.mxu1 %vm2998_vm5, %v2448_v48 }
 0x142   : > { %2224 = vmatpush.msk.msra.mxu2 %vm4252_vm10, %v2448_v48  ;;  %2240 = vmatpush.msk.msra.mxu3 %vm4253_vm6, %v2448_v48  ;;  %vm4256_vm10 = vcmp.eq.s32.totalorder %v3239_v47, %v3100_v24  ;;  %vm4257_vm6 = vcmp.eq.s32.totalorder %v3242_v50, %v3100_v24 }
 0x143   : > { %1406 = vmatpush.msrb.mxu0 %v2261_v40  ;;  %1447 = vmatpush.msrb.mxu1 %v2262_v42 }
 0x144   : > { %2225 = vmatpush.msk.msra.mxu2 %vm4254_vm8, %v2448_v48  ;;  %2241 = vmatpush.msk.msra.mxu3 %vm4255_vm11, %v2448_v48  ;;  %vm4258_vm8 = vcmp.eq.s32.totalorder %v3081_v8, %v3100_v24  ;;  %vm4259_vm11 = vcmp.eq.s32.totalorder %v3249_v62, %v3100_v24 }
 0x146   : > { %v795_v15 = vpop.f32.mrf.mxu0  ;;  %v836_v17 = vpop.f32.mrf.mxu1  ;;  %2226 = vmatpush.msk.msra.mxu2 %vm4256_vm10, %v2448_v48  ;;  %2242 = vmatpush.msk.msra.mxu3 %vm4257_vm6, %v2448_v48  ;;  %vm4260_vm10 = vcmp.eq.s32.totalorder %v3062_v61, %v3100_v24  ;;  %vm4261_vm6 = vcmp.eq.s32.totalorder %v3276_v63, %v3100_v24 }
 0x147   : > { %876 = vmatmul.f32.gmra.mxu2 %v795_v15  ;;  %917 = vmatmul.f32.gmra.mxu3 %v836_v17  ;;  %v2259_v15 = vld [vmem:[%s2915_s14 + $0x200] sm:$0xff]  ;;  %v2260_v17 = vld [vmem:[%s2915_s14 + $0x208] sm:$0xff] }
 0x148   : > { %1407 = vmatpush.msrb.mxu0 %v2259_v15  ;;  %1448 = vmatpush.msrb.mxu1 %v2260_v17 }
 0x149   : > { %2206 = vmatmul.msk.f32.gmra.mxu0 %vm3019_vm7, %v2448_v48  ;;  %2214 = vmatmul.msk.f32.gmra.mxu1 %vm3019_vm7, %v2448_v48 }
 0x14a   : > { %2227 = vmatpush.msk.msra.mxu2 %vm4258_vm8, %v2448_v48  ;;  %2243 = vmatpush.msk.msra.mxu3 %vm4259_vm11, %v2448_v48  ;;  %vm4262_vm8 = vcmp.eq.s32.totalorder %v3043_v18, %v3100_v24  ;;  %vm4263_vm11 = vcmp.eq.s32.totalorder %v3299_v28, %v3100_v24 }
 0x14c   : > { %2228 = vmatpush.msk.msra.mxu2 %vm4260_vm10, %v2448_v48  ;;  %2244 = vmatpush.msk.msra.mxu3 %vm4261_vm6, %v2448_v48  ;;  %vm4264_vm10 = vcmp.eq.s32.totalorder %v3024_v27, %v3100_v24  ;;  %vm4265_vm6 = vcmp.eq.s32.totalorder %v3312_v36, %v3100_v24 }
 0x14e   : > { %v798_v40 = vpop.f32.mrf.mxu0  ;;  %v839_v42 = vpop.f32.mrf.mxu1  ;;  %2229 = vmatpush.msk.msra.mxu2 %vm4262_vm8, %v2448_v48  ;;  %2245 = vmatpush.msk.msra.mxu3 %vm4263_vm11, %v2448_v48  ;;  %vm4266_vm8 = vcmp.eq.s32.totalorder %v3003_v12, %v3100_v24  ;;  %vm4267_vm11 = vcmp.eq.s32.totalorder %v3319_v38, %v3100_v24 }
 0x14f   : > { %879 = vmatmul.f32.gmra.mxu2 %v798_v40  ;;  %920 = vmatmul.f32.gmra.mxu3 %v839_v42 }
 0x150   : > { %2230 = vmatpush.msk.msra.mxu2 %vm4264_vm10, %v2448_v48  ;;  %2246 = vmatpush.msk.msra.mxu3 %vm4265_vm6, %v2448_v48  ;;  %vm4268_vm10 = vcmp.eq.s32.totalorder %v2936_v23, %v3100_v24  ;;  %vm4269_vm6 = vcmp.eq.s32.totalorder %v3386_v35, %v3100_v24 }
 0x151   : > { %2207 = vmatmul.msk.f32.gmra.mxu0 %vm3038_vm15, %v2448_v48  ;;  %2215 = vmatmul.msk.f32.gmra.mxu1 %vm3038_vm15, %v2448_v48 }
 0x152   : > { %2231 = vmatpush.msk.msra.mxu2 %vm4266_vm8, %v2448_v48  ;;  %2247 = vmatpush.msk.msra.mxu3 %vm4267_vm11, %v2448_v48  ;;  %vm4270_vm8 = vcmp.eq.s32.totalorder %v3112_v30, %v3100_v24  ;;  %vm4271_vm11 = vcmp.eq.s32.totalorder %v3115_v20, %v3100_v24 }
 0x154   : > { %2232 = vmatpush.msk.msra.mxu2 %vm514_vm12, %v2448_v48  ;;  %2248 = vmatpush.msk.msra.mxu3 %vm530_vm14, %v2448_v48 }
 0x156   : > { %v801_v15 = vpop.f32.mrf.mxu0  ;;  %v842_v17 = vpop.f32.mrf.mxu1  ;;  %2233 = vmatpush.msk.msra.mxu2 %vm513_vm13, %v2448_v48  ;;  %2249 = vmatpush.msk.msra.mxu3 %vm529_vm9, %v2448_v48 }
 0x157   : > { %882 = vmatmul.f32.gmra.mxu2 %v801_v15  ;;  %923 = vmatmul.f32.gmra.mxu3 %v842_v17 }
 0x158   : > { %2234 = vmatpush.msk.msra.mxu2 %vm4268_vm10, %v2448_v48  ;;  %2250 = vmatpush.msk.msra.mxu3 %vm4269_vm6, %v2448_v48  ;;  %vm4272_vm10 = vcmp.eq.s32.totalorder %v3131_v32, %v3100_v24  ;;  %vm4273_vm6 = vcmp.eq.s32.totalorder %v3134_v44, %v3100_v24 }
 0x159   : > { %2208 = vmatmul.msk.f32.gmra.mxu0 %vm3057_vm0, %v2448_v48  ;;  %2216 = vmatmul.msk.f32.gmra.mxu1 %vm3057_vm0, %v2448_v48 }
 0x15e   : > { %v804_v40 = vpop.f32.mrf.mxu0  ;;  %v845_v42 = vpop.f32.mrf.mxu1 }
 0x15f   : > { %885 = vmatmul.f32.gmra.mxu2 %v804_v40  ;;  %926 = vmatmul.f32.gmra.mxu3 %v845_v42 }
 0x161   : > { %2209 = vmatmul.msk.f32.gmra.mxu0 %vm3076_vm2, %v2448_v48  ;;  %2217 = vmatmul.msk.f32.gmra.mxu1 %vm3076_vm2, %v2448_v48 }
 0x166   : > { %v807_v15 = vpop.f32.mrf.mxu0  ;;  %v848_v17 = vpop.f32.mrf.mxu1 }
 0x167   : > { %888 = vmatmul.f32.gmra.mxu2 %v807_v15  ;;  %929 = vmatmul.f32.gmra.mxu3 %v848_v17 }
 0x169   : > { %2210 = vmatmul.msk.f32.gmra.mxu0 %vm3095_vm3, %v2448_v48  ;;  %2218 = vmatmul.msk.f32.gmra.mxu1 %vm3095_vm3, %v2448_v48 }
 0x16e   : > { %v982_v40 = vpop.f32.mrf.mxu0  ;;  %v1023_v42 = vpop.f32.mrf.mxu1 }
 0x16f   : > { %1063 = vmatmul.f32.vlgmr.msrb.gmra.mxu2 %v982_v40  ;;  %1104 = vmatmul.f32.vlgmr.msrb.gmra.mxu3 %v1023_v42 }
 0x170   : > { %2307 = vmatpush.msk.msrb.mxu2 %vm4270_vm8, %v2448_v48  ;;  %2323 = vmatpush.msk.msrb.mxu3 %vm4271_vm11, %v2448_v48  ;;  %vm4274_vm8 = vcmp.eq.s32.totalorder %v3149_v51, %v3100_v24  ;;  %vm4275_vm11 = vcmp.eq.s32.totalorder %v3152_v52, %v3100_v24 }
 0x171   : > { %2291 = vmatmul.msk.f32.vlgmr.msrb.gmra.mxu0 %vm2955_vm1, %v2448_v48  ;;  %2299 = vmatmul.msk.f32.vlgmr.msrb.gmra.mxu1 %vm2955_vm1, %v2448_v48  ;;  %vm4276_vm1 = vcmp.eq.s32.totalorder %v3157_v0, %v3100_v24 }
 0x172   : > { %2308 = vmatpush.msk.msrb.mxu2 %vm4272_vm10, %v2448_v48  ;;  %2324 = vmatpush.msk.msrb.mxu3 %vm4273_vm6, %v2448_v48  ;;  %vm4277_vm10 = vcmp.eq.s32.totalorder %v3160_v1, %v3100_v24  ;;  %vm4278_vm6 = vcmp.eq.s32.totalorder %v3175_v2, %v3100_v24 }
 0x174   : > { %2309 = vmatpush.msk.msrb.mxu2 %vm4274_vm8, %v2448_v48  ;;  %2325 = vmatpush.msk.msrb.mxu3 %vm4275_vm11, %v2448_v48  ;;  %vm4279_vm8 = vcmp.eq.s32.totalorder %v3178_v33, %v3100_v24  ;;  %vm4280_vm11 = vcmp.eq.s32.totalorder %v3205_v13, %v3100_v24 }
 0x176   : > { %v985_v43 = vpop.f32.mrf.mxu0  ;;  %v1026_v30 = vpop.f32.mrf.mxu1  ;;  %2310 = vmatpush.msk.msrb.mxu2 %vm4276_vm1, %v2448_v48  ;;  %2326 = vmatpush.msk.msrb.mxu3 %vm4277_vm10, %v2448_v48  ;;  %vm4281_vm1 = vcmp.eq.s32.totalorder %v3208_v14, %v3100_v24  ;;  %vm4282_vm10 = vcmp.eq.s32.totalorder %v3223_v25, %v3100_v24 }
 0x177   : > { %1066 = vmatmul.f32.gmra.mxu2 %v985_v43  ;;  %1107 = vmatmul.f32.gmra.mxu3 %v1026_v30 }
 0x178   : > { %2311 = vmatpush.msk.msrb.mxu2 %vm4278_vm6, %v2448_v48  ;;  %2327 = vmatpush.msk.msrb.mxu3 %vm4279_vm8, %v2448_v48  ;;  %vm4283_vm6 = vcmp.eq.s32.totalorder %v3226_v19, %v3100_v24  ;;  %vm4285_vm8 = vcmp.eq.s32.totalorder %v3242_v50, %v3100_v24 }
 0x179   : > { %2292 = vmatmul.msk.f32.gmra.mxu0 %vm2975_vm4, %v2448_v48  ;;  %2300 = vmatmul.msk.f32.gmra.mxu1 %vm2975_vm4, %v2448_v48  ;;  %vm4284_vm4 = vcmp.eq.s32.totalorder %v3239_v47, %v3100_v24 }
 0x17a   : > { %2312 = vmatpush.msk.msrb.mxu2 %vm4280_vm11, %v2448_v48  ;;  %2328 = vmatpush.msk.msrb.mxu3 %vm4281_vm1, %v2448_v48  ;;  %vm4286_vm11 = vcmp.eq.s32.totalorder %v3081_v8, %v3100_v24  ;;  %vm4287_vm1 = vcmp.eq.s32.totalorder %v3249_v62, %v3100_v24 }
 0x17c   : > { %2313 = vmatpush.msk.msrb.mxu2 %vm4282_vm10, %v2448_v48  ;;  %2329 = vmatpush.msk.msrb.mxu3 %vm4283_vm6, %v2448_v48  ;;  %vm4288_vm10 = vcmp.eq.s32.totalorder %v3062_v61, %v3100_v24  ;;  %vm4289_vm6 = vcmp.eq.s32.totalorder %v3276_v63, %v3100_v24 }
 0x17e   : > { %v988_v54 = vpop.f32.mrf.mxu0  ;;  %v1029_v20 = vpop.f32.mrf.mxu1  ;;  %2314 = vmatpush.msk.msrb.mxu2 %vm4284_vm4, %v2448_v48  ;;  %2330 = vmatpush.msk.msrb.mxu3 %vm4285_vm8, %v2448_v48  ;;  %vm4290_vm4 = vcmp.eq.s32.totalorder %v3043_v18, %v3100_v24  ;;  %vm4291_vm8 = vcmp.eq.s32.totalorder %v3299_v28, %v3100_v24 }
 0x17f   : > { %1069 = vmatmul.f32.gmra.mxu2 %v988_v54  ;;  %1110 = vmatmul.f32.gmra.mxu3 %v1029_v20  ;;  %v4299_v54 = vld [vmem:[#allocation6_spill] sm:$0xff] }
 0x180   : > { %2315 = vmatpush.msk.msrb.mxu2 %vm4286_vm11, %v2448_v48  ;;  %2331 = vmatpush.msk.msrb.mxu3 %vm4287_vm1, %v2448_v48  ;;  %vm4293_vm11 = vcmp.eq.s32.totalorder %v3312_v36, %v3100_v24  ;;  %vm4294_vm1 = vcmp.eq.s32.totalorder %v3003_v12, %v3100_v24 }
 0x181   : > { %2293 = vmatmul.msk.f32.gmra.mxu0 %vm2998_vm5, %v2448_v48  ;;  %2301 = vmatmul.msk.f32.gmra.mxu1 %vm2998_vm5, %v2448_v48  ;;  %vm4292_vm5 = vcmp.eq.s32.totalorder %v3024_v27, %v3100_v24 }
 0x182   : > { %2316 = vmatpush.msk.msrb.mxu2 %vm4288_vm10, %v2448_v48  ;;  %2332 = vmatpush.msk.msrb.mxu3 %vm4289_vm6, %v2448_v48  ;;  %vm4295_vm10 = vcmp.eq.s32.totalorder %v3319_v38, %v3100_v24  ;;  %vm1588_vm6 = vcmp.ne.s32.totalorder %v2820_v7, 0 }
 0x184   : > { %2317 = vmatpush.msk.msrb.mxu2 %vm4290_vm4, %v2448_v48  ;;  %2333 = vmatpush.msk.msrb.mxu3 %vm4291_vm8, %v2448_v48  ;;  %vm1590_vm4 = vcmp.ne.s32.totalorder %v2816_v5, 0  ;;  %vm1592_vm8 = vcmp.ne.s32.totalorder %v2793_v60, 0 }
 0x185   : > { %v2364_v50 = vsel %vm1590_vm4, 1.0, %v4298_v3  ;;  %v2366_v63 = vsel %vm1592_vm8, 1.0, %v4298_v3 }
 0x186   : > { %v991_v10 = vpop.f32.mrf.mxu0  ;;  %v1032_v8 = vpop.f32.mrf.mxu1  ;;  %2318 = vmatpush.msk.msrb.mxu2 %vm4292_vm5, %v2448_v48  ;;  %2334 = vmatpush.msk.msrb.mxu3 %vm4293_vm11, %v2448_v48  ;;  %vm1595_vm5 = vcmp.ne.s32.totalorder %v2765_v49, 0  ;;  %vm1594_vm11 = vcmp.ne.s32.totalorder %v2785_v58, 0 }
 0x187   : > { %1072 = vmatmul.f32.gmra.mxu2 %v991_v10  ;;  %1113 = vmatmul.f32.gmra.mxu3 %v1032_v8  ;;  %v2369_v5 = vsel %vm1595_vm5, 1.0, %v4298_v3  ;;  %v2368_v15 = vsel %vm1594_vm11, 1.0, %v4298_v3 }
 0x188   : > { %2319 = vmatpush.msk.msrb.mxu2 %vm4294_vm1, %v2448_v48  ;;  %2335 = vmatpush.msk.msrb.mxu3 %vm4295_vm10, %v2448_v48  ;;  %vm1597_vm1 = vcmp.ne.s32.totalorder %v2740_v41, 0  ;;  %vm1599_vm10 = vcmp.ne.s32.totalorder %v2736_v39, 0 }
 0x189   : > { %2294 = vmatmul.msk.f32.gmra.mxu0 %vm3019_vm7, %v2448_v48  ;;  %2302 = vmatmul.msk.f32.gmra.mxu1 %vm3019_vm7, %v2448_v48  ;;  %vm4296_vm7 = vcmp.eq.s32.totalorder %v2936_v23, %v3100_v24  ;;  %v2371_v22 = vsel %vm1597_vm1, 1.0, %v4298_v3  ;;  %v2373_v58 = vsel %vm1599_vm10, 1.0, %v4298_v3 }
 0x18a   : > { %2320 = vmatpush.msk.msrb.mxu2 %vm514_vm12, %v2448_v48  ;;  %2336 = vmatpush.msk.msrb.mxu3 %vm530_vm14, %v2448_v48  ;;  %vm4297_vm12 = vcmp.eq.s32.totalorder %v3386_v35, %v3100_v24  ;;  %vm1593_vm14 = vcmp.ne.s32.totalorder %v2780_v56, 0 }
 0x18b   : > { %v2367_v19 = vsel %vm1593_vm14, 1.0, %v4298_v3 }
 0x18c   : > { %2321 = vmatpush.msk.msrb.mxu2 %vm513_vm13, %v2448_v48  ;;  %2337 = vmatpush.msk.msrb.mxu3 %vm529_vm9, %v2448_v48  ;;  %vm1591_vm9 = vcmp.ne.s32.totalorder %v2787_v59, 0  ;;  %vm1586_vm13 = vcmp.ne.s32.totalorder %v2834_v11, 0  ;;  %v2362_v11 = vsel %vm1588_vm6, 1.0, %v4298_v3 }
 0x18d   : > { %v2365_v2 = vsel %vm1591_vm9, 1.0, %v4298_v3  ;;  %v2360_v59 = vsel %vm1586_vm13, 1.0, %v4298_v3 }
 0x18e   : > { %v994_v36 = vpop.f32.mrf.mxu0  ;;  %v1035_v38 = vpop.f32.mrf.mxu1  ;;  %2322 = vmatpush.msk.msrb.mxu2 %vm4296_vm7, %v2448_v48  ;;  %2338 = vmatpush.msk.msrb.mxu3 %vm4297_vm12, %v2448_v48  ;;  %v1699_v7 = vadd.f32 %v2360_v59, %v2967_v45  ;;  %vm1596_vm7 = vcmp.ne.s32.totalorder %v2778_v55, 0  ;;  %vm1601_vm12 = vcmp.ne.s32.totalorder %v2732_v37, 0  ;;  %v4300_v55 = vld [vmem:[#allocation10_spill] sm:$0xff] }
 0x18f   : > { %1075 = vmatmul.f32.gmra.mxu2 %v994_v36  ;;  %1116 = vmatmul.f32.gmra.mxu3 %v1035_v38  ;;  %v2375_v43 = vsel %vm1601_vm12, 1.0, %v4298_v3  ;;  %v2370_v8 = vsel %vm1596_vm7, 1.0, %v4298_v3 }
 0x190   : > { %v1700_v62 = vadd.f32 %v2362_v11, %v1699_v7 }
 0x191   : > { %2295 = vmatmul.msk.f32.gmra.mxu0 %vm3038_vm15, %v2448_v48  ;;  %2303 = vmatmul.msk.f32.gmra.mxu1 %vm3038_vm15, %v2448_v48  ;;  %vm1583_vm15 = vcmp.ne.s32.totalorder %v2850_v16, 0 }
 0x192   : > { %v2357_v24 = vsel %vm1583_vm15, 1.0, %v4298_v3  ;;  %v1701_v45 = vadd.f32 %v2364_v50, %v1700_v62  ;;  %vm1603_vm15 = vcmp.ne.s32.totalorder %v4299_v54, 0 }
 0x193   : > { %v1673_v21 = vadd.f32 %v2357_v24, %v2950_v31  ;;  %v2377_v10 = vsel %vm1603_vm15, 1.0, %v4298_v3 }
 0x194   : > { %v1702_v17 = vadd.f32 %v2366_v63, %v1701_v45 }
 0x196   : > { %v997_v29 = vpop.f32.mrf.mxu0  ;;  %v1038_v57 = vpop.f32.mrf.mxu1  ;;  %v1703_v20 = vadd.f32 %v2368_v15, %v1702_v17 }
 0x197   : > { %1078 = vmatmul.f32.gmra.mxu2 %v997_v29  ;;  %1119 = vmatmul.f32.gmra.mxu3 %v1038_v57 }
 0x198   : > { %v1704_v37 = vadd.f32 %v2370_v8, %v1703_v20 }
 0x199   : > { %2296 = vmatmul.msk.f32.gmra.mxu0 %vm3057_vm0, %v2448_v48  ;;  %2304 = vmatmul.msk.f32.gmra.mxu1 %vm3057_vm0, %v2448_v48  ;;  %vm1585_vm0 = vcmp.ne.s32.totalorder %v2829_v9, 0 }
 0x19e   : > { %v1000_v35 = vpop.f32.mrf.mxu0  ;;  %v1041_v23 = vpop.f32.mrf.mxu1 }
 0x19f   : > { %1081 = vmatmul.f32.gmra.mxu2 %v1000_v35  ;;  %1122 = vmatmul.f32.gmra.mxu3 %v1041_v23  ;;  %v4301_v35 = vld [vmem:[#allocation9_spill] sm:$0xff] }
 0x1a1   : > { %2297 = vmatmul.msk.f32.gmra.mxu0 %vm3076_vm2, %v2448_v48  ;;  %2305 = vmatmul.msk.f32.gmra.mxu1 %vm3076_vm2, %v2448_v48  ;;  %vm1587_vm2 = vcmp.ne.s32.totalorder %v2818_v6, 0 }
 0x1a2   : > { %v2361_v16 = vsel %vm1587_vm2, 1.0, %v4298_v3  ;;  %vm1600_vm2 = vcmp.ne.s32.totalorder %v4301_v35, 0 }
 0x1a6   : > { %v1003_v12 = vpop.f32.mrf.mxu0  ;;  %v1044_v26 = vpop.f32.mrf.mxu1 }
 0x1a7   : > { %1084 = vmatmul.f32.gmra.mxu2 %v1003_v12  ;;  %1125 = vmatmul.f32.gmra.mxu3 %v1044_v26  ;;  %v2374_v12 = vsel %vm1600_vm2, 1.0, %v4298_v3  ;;  %v4302_v26 = vld [vmem:[#allocation8_spill] sm:$0xff] }
 0x1a9   : > { %2298 = vmatmul.msk.f32.gmra.mxu0 %vm3095_vm3, %v2448_v48  ;;  %2306 = vmatmul.msk.f32.gmra.mxu1 %vm3095_vm3, %v2448_v48  ;;  %v2359_v48 = vsel %vm1585_vm0, 1.0, %v4298_v3  ;;  %vm1589_vm3 = vcmp.ne.s32.totalorder %v2814_v4, 0  ;;  %vm1598_vm0 = vcmp.ne.s32.totalorder %v4300_v55, 0 }
 0x1aa   : > { %v1674_v0 = vadd.f32 %v2359_v48, %v1673_v21  ;;  %v2363_v1 = vsel %vm1589_vm3, 1.0, %v4298_v3  ;;  %v2372_v57 = vsel %vm1598_vm0, 1.0, %v4298_v3  ;;  %vm1602_vm3 = vcmp.ne.s32.totalorder %v4302_v26, 0 }
 0x1ab   : > { %v1705_v23 = vadd.f32 %v2372_v57, %v1704_v37 }
 0x1ac   : > { %v1675_v6 = vadd.f32 %v2361_v16, %v1674_v0 }
 0x1ae   : > { %v1195_v27 = vpop.f32.mrf.mxu0  ;;  %v1236_v34 = vpop.f32.mrf.mxu1  ;;  %v1676_v31 = vadd.f32 %v2363_v1, %v1675_v6 }
 0x1af   : > { %1276 = vmatmul.f32.vlgmr.msra.gmra.mxu2 %v1195_v27  ;;  %1317 = vmatmul.f32.vlgmr.msra.gmra.mxu3 %v1236_v34  ;;  %v1706_v27 = vadd.f32 %v2374_v12, %v1705_v23 }
 0x1b0   : > { %v1677_v13 = vadd.f32 %v2365_v2, %v1676_v31 }
 0x1b2   : > { %v868_v18 = vpop.f32.mrf.mxu2  ;;  %v909_v53 = vpop.f32.mrf.mxu3  ;;  %v1678_v56 = vadd.f32 %v2367_v19, %v1677_v13 }
 0x1b3   : > { %v3953_v61 = vadd.f32 %v909_v53, %v868_v18  ;;  %v2376_v53 = vsel %vm1602_vm3, 1.0, %v4298_v3 }
 0x1b4   : > { %v1679_v60 = vadd.f32 %v2369_v5, %v1678_v56 }
 0x1b6   : > { %v1198_v32 = vpop.f32.mrf.mxu0  ;;  %v1239_v44 = vpop.f32.mrf.mxu1  ;;  %v1680_v49 = vadd.f32 %v2371_v22, %v1679_v60 }
 0x1b7   : > { %1279 = vmatmul.f32.gmra.mxu2 %v1198_v32  ;;  %1320 = vmatmul.f32.gmra.mxu3 %v1239_v44  ;;  %v4303_v32 = vld [vmem:[#allocation7_spill] sm:$0xff]  ;;  %v1707_v44 = vadd.f32 %v2376_v53, %v1706_v27 }
 0x1b8   : > { %v1681_v41 = vadd.f32 %v2373_v58, %v1680_v49  ;;  %vm1604_vm9 = vcmp.ne.s32.totalorder %v4303_v32, 0 }
 0x1b9   : > { %v2378_v48 = vsel %vm1604_vm9, 1.0, %v4298_v3 }
 0x1ba   : > { %v871_v51 = vpop.f32.mrf.mxu2  ;;  %v912_v52 = vpop.f32.mrf.mxu3  ;;  %v1682_v39 = vadd.f32 %v2375_v43, %v1681_v41  ;;  %v1708_v21 = vadd.f32 %v2378_v48, %v1707_v44 }
 0x1bb   : > { %v3963_v9 = vadd.f32 %v912_v52, %v871_v51 }
 0x1bc   : > { %v1683_v36 = vadd.f32 %v2377_v10, %v1682_v39 }
 0x1be   : > { %v1201_v33 = vpop.f32.mrf.mxu0  ;;  %v1242_v4 = vpop.f32.mrf.mxu1  ;;  %1684 = vadd.xlane.f32.xlu0 %v1683_v36 }
 0x1bf   : > { %1282 = vmatmul.f32.gmra.mxu2 %v1201_v33  ;;  %1323 = vmatmul.f32.gmra.mxu3 %v1242_v4 }
 0x1c2   : > { %v874_v14 = vpop.f32.mrf.mxu2  ;;  %v915_v25 = vpop.f32.mrf.mxu3 }
 0x1c3   : > { %v3975_v47 = vadd.f32 %v915_v25, %v874_v14 }
 0x1c6   : > { %v1204_v28 = vpop.f32.mrf.mxu0  ;;  %v1245_v46 = vpop.f32.mrf.mxu1  ;;  %1709 = vadd.xlane.f32.xlu0 %v1708_v21 }
 0x1c7   : > { %1285 = vmatmul.f32.gmra.mxu2 %v1204_v28  ;;  %1326 = vmatmul.f32.gmra.mxu3 %v1245_v46 }
 0x1ca   : > { %v877_v40 = vpop.f32.mrf.mxu2  ;;  %v918_v42 = vpop.f32.mrf.mxu3 }
 0x1cb   : > { %v3991_v30 = vadd.f32 %v918_v42, %v877_v40 }
 0x1ce   : > { %v1207_v38 = vpop.f32.mrf.mxu0  ;;  %v1248_v29 = vpop.f32.mrf.mxu1 }
 0x1cf   : > { %1288 = vmatmul.f32.gmra.mxu2 %v1207_v38  ;;  %1329 = vmatmul.f32.gmra.mxu3 %v1248_v29 }
 0x1d2   : > { %v880_v34 = vpop.f32.mrf.mxu2  ;;  %v921_v18 = vpop.f32.mrf.mxu3 }
 0x1d3   : > { %v4002_v24 = vadd.f32 %v921_v18, %v880_v34 }
 0x1d6   : > { %v1210_v16 = vpop.f32.mrf.mxu0  ;;  %v1251_v51 = vpop.f32.mrf.mxu1 }
 0x1d7   : > { %1291 = vmatmul.f32.gmra.mxu2 %v1210_v16  ;;  %1332 = vmatmul.f32.gmra.mxu3 %v1251_v51 }
 0x1da   : > { %v883_v52 = vpop.f32.mrf.mxu2  ;;  %v924_v0 = vpop.f32.mrf.mxu3 }
 0x1db   : > { %v4006_v1 = vadd.f32 %v924_v0, %v883_v52 }
 0x1de   : > { %v1213_v6 = vpop.f32.mrf.mxu0  ;;  %v1254_v2 = vpop.f32.mrf.mxu1 }
 0x1df   : > { %1294 = vmatmul.f32.gmra.mxu2 %v1213_v6  ;;  %1335 = vmatmul.f32.gmra.mxu3 %v1254_v2 }
 0x1e2   : > { %v886_v33 = vpop.f32.mrf.mxu2  ;;  %v927_v4 = vpop.f32.mrf.mxu3 }
 0x1e3   : > { %v4008_v31 = vadd.f32 %v927_v4, %v886_v33 }
 0x1e6   : > { %v1216_v3 = vpop.f32.mrf.mxu0  ;;  %v1257_v59 = vpop.f32.mrf.mxu1 }
 0x1e7   : > { %1297 = vmatmul.f32.gmra.mxu2 %v1216_v3  ;;  %1338 = vmatmul.f32.gmra.mxu3 %v1257_v59 }
 0x1ea   : > { %v889_v13 = vpop.f32.mrf.mxu2  ;;  %v930_v11 = vpop.f32.mrf.mxu3 }
 0x1eb   : > { %v4010_v14 = vadd.f32 %v930_v11, %v889_v13 }
 0x1ee   : > { %v1409_v25 = vpop.f32.mrf.mxu0  ;;  %v1450_v19 = vpop.f32.mrf.mxu1 }
 0x1ef   : > { %1490 = vmatmul.f32.vlgmr.msrb.gmra.mxu2 %v1409_v25  ;;  %1531 = vmatmul.f32.vlgmr.msrb.gmra.mxu3 %v1450_v19 }
 0x1f2   : > { %v1064_v56 = vpop.f32.mrf.mxu2  ;;  %v1105_v7 = vpop.f32.mrf.mxu3 }
 0x1f3   : > { %v1106_v50 = vadd.f32 %v1105_v7, %v1064_v56 }
 0x1f5   : > { %v1129_v5 = vmul.f32 %v1106_v50, %v3953_v61 }
 0x1f6   : > { %v1412_v60 = vpop.f32.mrf.mxu0  ;;  %v1453_v62 = vpop.f32.mrf.mxu1 }
 0x1f7   : > { %1137 = vst [vmem:[%s4015_s16] sm:$0xff] %v1129_v5  ;;  %1493 = vmatmul.f32.gmra.mxu2 %v1412_v60  ;;  %1534 = vmatmul.f32.gmra.mxu3 %v1453_v62 }
 0x1fa   : > { %v1067_v63 = vpop.f32.mrf.mxu2  ;;  %v1108_v28 = vpop.f32.mrf.mxu3 }
 0x1fb   : > { %v1109_v46 = vadd.f32 %v1108_v28, %v1067_v63 }
 0x1fd   : > { %v1130_v22 = vmul.f32 %v1109_v46, %v3963_v9 }
 0x1fe   : > { %v1415_v49 = vpop.f32.mrf.mxu0  ;;  %v1456_v45 = vpop.f32.mrf.mxu1 }
 0x1ff   : > { %1138 = vst [vmem:[%s4015_s16 + $0x8] sm:$0xff] %v1130_v22  ;;  %1496 = vmatmul.f32.gmra.mxu2 %v1415_v49  ;;  %1537 = vmatmul.f32.gmra.mxu3 %v1456_v45 }
 0x202   : > { %v1070_v15 = vpop.f32.mrf.mxu2  ;;  %v1111_v58 = vpop.f32.mrf.mxu3 }
 0x203   : > { %v1112_v41 = vadd.f32 %v1111_v58, %v1070_v15 }
 0x205   : > { %v1131_v17 = vmul.f32 %v1112_v41, %v3975_v47 }
 0x206   : > { %v1418_v40 = vpop.f32.mrf.mxu0  ;;  %v1459_v42 = vpop.f32.mrf.mxu1 }
 0x207   : > { %1139 = vst [vmem:[%s4015_s16 + $0x10] sm:$0xff] %v1131_v17  ;;  %1499 = vmatmul.f32.gmra.mxu2 %v1418_v40  ;;  %1540 = vmatmul.f32.gmra.mxu3 %v1459_v42 }
 0x20a   : > { %v1073_v43 = vpop.f32.mrf.mxu2  ;;  %v1114_v54 = vpop.f32.mrf.mxu3 }
 0x20b   : > { %v1115_v39 = vadd.f32 %v1114_v54, %v1073_v43 }
 0x20d   : > { %v1132_v20 = vmul.f32 %v1115_v39, %v3991_v30 }
 0x20e   : > { %v1421_v10 = vpop.f32.mrf.mxu0  ;;  %v1462_v8 = vpop.f32.mrf.mxu1 }
 0x20f   : > { %1140 = vst [vmem:[%s4015_s16 + $0x18] sm:$0xff] %v1132_v20  ;;  %1502 = vmatmul.f32.gmra.mxu2 %v1421_v10  ;;  %1543 = vmatmul.f32.gmra.mxu3 %v1462_v8 }
 0x212   : > { %v1076_v36 = vpop.f32.mrf.mxu2  ;;  %v1117_v55 = vpop.f32.mrf.mxu3 }
 0x213   : > { %v1118_v37 = vadd.f32 %v1117_v55, %v1076_v36 }
 0x215   : > { %v1133_v38 = vmul.f32 %v1118_v37, %v4002_v24 }
 0x216   : > { %v1424_v29 = vpop.f32.mrf.mxu0  ;;  %v1465_v57 = vpop.f32.mrf.mxu1 }
 0x217   : > { %1141 = vst [vmem:[%s4015_s16 + $0x20] sm:$0xff] %v1133_v38  ;;  %1505 = vmatmul.f32.gmra.mxu2 %v1424_v29  ;;  %1546 = vmatmul.f32.gmra.mxu3 %v1465_v57 }
 0x21a   : > { %v1079_v35 = vpop.f32.mrf.mxu2  ;;  %v1120_v23 = vpop.f32.mrf.mxu3 }
 0x21b   : > { %v1121_v12 = vadd.f32 %v1120_v23, %v1079_v35 }
 0x21d   : > { %v1134_v26 = vmul.f32 %v1121_v12, %v4006_v1 }
 0x21e   : > { %v1427_v27 = vpop.f32.mrf.mxu0  ;;  %v1468_v34 = vpop.f32.mrf.mxu1 }
 0x21f   : > { %1142 = vst [vmem:[%s4015_s16 + $0x28] sm:$0xff] %v1134_v26  ;;  %1508 = vmatmul.f32.gmra.mxu2 %v1427_v27  ;;  %1549 = vmatmul.f32.gmra.mxu3 %v1468_v34 }
 0x222   : > { %v1082_v18 = vpop.f32.mrf.mxu2  ;;  %v1123_v53 = vpop.f32.mrf.mxu3 }
 0x223   : > { %v1124_v32 = vadd.f32 %v1123_v53, %v1082_v18 }
 0x225   : > { %v1135_v44 = vmul.f32 %v1124_v32, %v4008_v31 }
 0x226   : > { %v1430_v48 = vpop.f32.mrf.mxu0  ;;  %v1471_v21 = vpop.f32.mrf.mxu1 }
 0x227   : > { %1143 = vst [vmem:[%s4015_s16 + $0x30] sm:$0xff] %v1135_v44  ;;  %1511 = vmatmul.f32.gmra.mxu2 %v1430_v48  ;;  %1552 = vmatmul.f32.gmra.mxu3 %v1471_v21 }
 0x22a   : > { %v1085_v16 = vpop.f32.mrf.mxu2  ;;  %v1126_v51 = vpop.f32.mrf.mxu3 }
 0x22b   : > { %v1127_v52 = vadd.f32 %v1126_v51, %v1085_v16 }
 0x22d   : > { %v1136_v0 = vmul.f32 %v1127_v52, %v4010_v14 }
 0x22f   : > { %1144 = vst [vmem:[%s4015_s16 + $0x38] sm:$0xff] %v1136_v0 }
 0x231   : > { %v1685_v7 = vpop.xlane.xlu0 %1684 }
 0x232   : > { %v1277_v6 = vpop.f32.mrf.mxu2  ;;  %v1318_v2 = vpop.f32.mrf.mxu3  ;;  %v1686_v50 = vrot.slane %v1685_v7, 4 }
 0x233   : > { %v1319_v33 = vadd.f32 %v1318_v2, %v1277_v6 }
 0x234   : > { %v1687_v60 = vadd.f32 %v1686_v50, %v1685_v7 }
 0x235   : > { %v1342_v4 = vmul.f32 %v1319_v33, %v3953_v61 }
 0x236   : > { %v1688_v62 = vrot.slane %v1687_v60, 2 }
 0x237   : > { %2251 = vst [vmem:[%s4015_s16 + $0x40] sm:$0xff] %v1342_v4 }
 0x238   : > { %v1689_v46 = vadd.f32 %v1688_v62, %v1687_v60 }
 0x239   : > { %v1710_v49 = vpop.xlane.xlu0 %1709 }
 0x23a   : > { %v1280_v3 = vpop.f32.mrf.mxu2  ;;  %v1321_v59 = vpop.f32.mrf.mxu3  ;;  %v1711_v45 = vrot.slane %v1710_v49, 4  ;;  %v1690_v15 = vrot.slane %v1689_v46, 1 }
 0x23b   : > { %v1322_v13 = vadd.f32 %v1321_v59, %v1280_v3 }
 0x23c   : > { %v1712_v41 = vadd.f32 %v1711_v45, %v1710_v49  ;;  %v1691_v17 = vadd.f32 %v1690_v15, %v1689_v46 }
 0x23d   : > { %v1343_v11 = vmul.f32 %v1322_v13, %v3963_v9 }
 0x23e   : > { %v1713_v40 = vrot.slane %v1712_v41, 2  ;;  %2393 = vpush %v1691_v17 }
 0x23f   : > { %2252 = vst [vmem:[%s4015_s16 + $0x48] sm:$0xff] %v1343_v11 }
 0x240   : > { %v1714_v54 = vadd.f32 %v1713_v40, %v1712_v41 }
 0x242   : > { %v1283_v25 = vpop.f32.mrf.mxu2  ;;  %v1324_v19 = vpop.f32.mrf.mxu3  ;;  %v1715_v20 = vrot.slane %v1714_v54, 1 }
 0x243   : > { %v1325_v56 = vadd.f32 %v1324_v19, %v1283_v25 }
 0x244   : > { %v1716_v8 = vadd.f32 %v1715_v20, %v1714_v54 }
 0x245   : > { %v1344_v5 = vmul.f32 %v1325_v56, %v3975_v47 }
 0x246   : > { %2395 = vpush %v1716_v8 }
 0x247   : > { %2253 = vst [vmem:[%s4015_s16 + $0x50] sm:$0xff] %v1344_v5 }
 0x24a   : > { %v1286_v63 = vpop.f32.mrf.mxu2  ;;  %v1327_v28 = vpop.f32.mrf.mxu3 }
 0x24b   : > { %v1328_v22 = vadd.f32 %v1327_v28, %v1286_v63 }
 0x24d   : > { %v1345_v58 = vmul.f32 %v1328_v22, %v3991_v30 }
 0x24f   : > { %2254 = vst [vmem:[%s4015_s16 + $0x58] sm:$0xff] %v1345_v58 }
 0x252   : > { %v1289_v42 = vpop.f32.mrf.mxu2  ;;  %v1330_v43 = vpop.f32.mrf.mxu3 }
 0x253   : > { %v1331_v39 = vadd.f32 %v1330_v43, %v1289_v42 }
 0x255   : > { %v1346_v10 = vmul.f32 %v1331_v39, %v4002_v24 }
 0x257   : > { %2255 = vst [vmem:[%s4015_s16 + $0x60] sm:$0xff] %v1346_v10 }
 0x25a   : > { %v1292_v36 = vpop.f32.mrf.mxu2  ;;  %v1333_v55 = vpop.f32.mrf.mxu3 }
 0x25b   : > { %v1334_v37 = vadd.f32 %v1333_v55, %v1292_v36 }
 0x25d   : > { %v1347_v38 = vmul.f32 %v1334_v37, %v4006_v1 }
 0x25f   : > { %2256 = vst [vmem:[%s4015_s16 + $0x68] sm:$0xff] %v1347_v38 }
 0x262   : > { %v1295_v29 = vpop.f32.mrf.mxu2  ;;  %v1336_v57 = vpop.f32.mrf.mxu3 }
 0x263   : > { %v1337_v35 = vadd.f32 %v1336_v57, %v1295_v29 }
 0x265   : > { %v1348_v23 = vmul.f32 %v1337_v35, %v4008_v31 }
 0x267   : > { %2257 = vst [vmem:[%s4015_s16 + $0x70] sm:$0xff] %v1348_v23 }
 0x26a   : > { %v1298_v12 = vpop.f32.mrf.mxu2  ;;  %v1339_v26 = vpop.f32.mrf.mxu3 }
 0x26b   : > { %v1340_v27 = vadd.f32 %v1339_v26, %v1298_v12 }
 0x26d   : > { %v1349_v34 = vmul.f32 %v1340_v27, %v4010_v14 }
 0x26f   : > { %2258 = vst [vmem:[%s4015_s16 + $0x78] sm:$0xff] %v1349_v34  ;;  %s4052_s17 = spop %2393 }
 0x270   : > { %v1693_v6 = vstv %s4052_s17 }
 0x272   : > { %v1491_v18 = vpop.f32.mrf.mxu2  ;;  %v1532_v53 = vpop.f32.mrf.mxu3 }
 0x273   : > { %v1533_v32 = vadd.f32 %v1532_v53, %v1491_v18 }
 0x275   : > { %v1556_v44 = vmul.f32 %v1533_v32, %v3953_v61 }
 0x277   : > { %2339 = vst [vmem:[%s4015_s16 + $0x80] sm:$0xff] %v1556_v44  ;;  %s4057_s19 = spop %2395 }
 0x278   : > { %v1718_v3 = vstv %s4057_s19 }
 0x27a   : > { %v1494_v48 = vpop.f32.mrf.mxu2  ;;  %v1535_v21 = vpop.f32.mrf.mxu3 }
 0x27b   : > { %v1536_v16 = vadd.f32 %v1535_v21, %v1494_v48 }
 0x27d   : > { %v1557_v51 = vmul.f32 %v1536_v16, %v3963_v9 }
 0x27f   : > { %2340 = vst [vmem:[%s4015_s16 + $0x88] sm:$0xff] %v1557_v51 }
 0x282   : > { %v1497_v52 = vpop.f32.mrf.mxu2  ;;  %v1538_v0 = vpop.f32.mrf.mxu3 }
 0x283   : > { %v1539_v2 = vadd.f32 %v1538_v0, %v1497_v52 }
 0x285   : > { %v1558_v33 = vmul.f32 %v1539_v2, %v3975_v47 }
 0x287   : > { %2341 = vst [vmem:[%s4015_s16 + $0x90] sm:$0xff] %v1558_v33 }
 0x28a   : > { %v1500_v61 = vpop.f32.mrf.mxu2  ;;  %v1541_v4 = vpop.f32.mrf.mxu3 }
 0x28b   : > { %v1542_v9 = vadd.f32 %v1541_v4, %v1500_v61 }
 0x28d   : > { %v1559_v59 = vmul.f32 %v1542_v9, %v3991_v30 }
 0x28f   : > { %2342 = vst [vmem:[%s4015_s16 + $0x98] sm:$0xff] %v1559_v59 }
 0x292   : > { %v1503_v13 = vpop.f32.mrf.mxu2  ;;  %v1544_v11 = vpop.f32.mrf.mxu3 }
 0x293   : > { %v1545_v25 = vadd.f32 %v1544_v11, %v1503_v13 }
 0x295   : > { %v1560_v19 = vmul.f32 %v1545_v25, %v4002_v24 }
 0x297   : > { %2343 = vst [vmem:[%s4015_s16 + $0xa0] sm:$0xff] %v1560_v19 }
 0x29a   : > { %v1506_v47 = vpop.f32.mrf.mxu2  ;;  %v1547_v56 = vpop.f32.mrf.mxu3 }
 0x29b   : > { %v1548_v7 = vadd.f32 %v1547_v56, %v1506_v47 }
 0x29d   : > { %v1561_v50 = vmul.f32 %v1548_v7, %v4006_v1 }
 0x29f   : > { %2344 = vst [vmem:[%s4015_s16 + $0xa8] sm:$0xff] %v1561_v50 }
 0x2a2   : > { %v1509_v5 = vpop.f32.mrf.mxu2  ;;  %v1550_v60 = vpop.f32.mrf.mxu3 }
 0x2a3   : > { %v1551_v62 = vadd.f32 %v1550_v60, %v1509_v5 }
 0x2a5   : > { %v1562_v30 = vmul.f32 %v1551_v62, %v4008_v31 }
 0x2a7   : > { %2345 = vst [vmem:[%s4015_s16 + $0xb0] sm:$0xff] %v1562_v30 }
 0x2aa   : > { %v1512_v63 = vpop.f32.mrf.mxu2  ;;  %v1553_v28 = vpop.f32.mrf.mxu3 }
 0x2ab   : > { %v1554_v46 = vadd.f32 %v1553_v28, %v1512_v63  ;;  %1722 = sbr.rel (%p2379_p11) target bundleno = 690 (0x2b2), region = 55 }
 0x2ad   : > { %v1563_v22 = vmul.f32 %v1554_v46, %v4010_v14 }
 0x2af   : > { %2346 = vst [vmem:[%s4015_s16 + $0xb8] sm:$0xff] %v1563_v22 }
 0x2b0   : > { %vm1723_vm13 = vcmask 24576   ;;  %v2450_v24 = vmov 0.0  }
 0x2b1   : > { %1724 = vst.msk [vmem:[%s4158_s4] sm:$0x1] %vm1723_vm13, %v2450_v24 }
 0x2b2 PF: > { %p2380_p12 = scmp.ge.s32.totalorder %s2495_s0, 1 }
 0x2b4   : > { %1728 = sbr.rel (%p2380_p12) target bundleno = 704 (0x2c0), region = 59 }
 0x2b9   : > { %vm1730_vm14 = vcmask 7168   ;;  %vm1732_vm6 = vcmask 15360   ;;  %vm1734_vm4 = vcmask 23552   ;;  %v1729_v1 = vld [vmem:[%s4158_s4] sm:$0x1]  ;;  %vm1737_vm8 = vcmask 24576  }
 0x2ba   : > { %v1731_v31 = vsel %vm1730_vm14, %v1718_v3, %v1693_v6 }
 0x2bb   : > { %v1733_v14 = vsel %vm1732_vm6, %v1731_v31, 0.0 }
 0x2bc   : > { %v1735_v49 = vsel %vm1734_vm4, %v1733_v14, 0.0 }
 0x2bd   : > { %v1736_v45 = vadd.f32 %v1735_v49, %v1729_v1 }
 0x2bf   : > { %1738 = vst.msk [vmem:[%s4158_s4] sm:$0x1] %vm1737_vm8, %v1736_v45 }
 0x2c0 PF: > { %p2381_p13 = scmp.lt.s32.totalorder %s2495_s0, 1 }
 0x2c2   : > { %1742 = sbr.rel (%p2381_p13) target bundleno = 717 (0x2cd), region = 63 }
 0x2c7   : > { %v1743_v15 = vld [vmem:[%s4158_s4] sm:$0x1]  ;;  %vm1744_vm5 = vcmask 15360   ;;  %vm1746_vm11 = vcmask 23552   ;;  %vm1749_vm1 = vcmask 24576  }
 0x2c8   : > { %v1745_v58 = vsel %vm1744_vm5, 0.0, %v1693_v6 }
 0x2c9   : > { %v1747_v41 = vsel %vm1746_vm11, %v1745_v58, %v1718_v3 }
 0x2ca   : > { %v1748_v17 = vadd.f32 %v1747_v41, %v1743_v15 }
 0x2cc   : > { %1750 = vst.msk [vmem:[%s4158_s4] sm:$0x1] %vm1749_vm1, %v1748_v17 }
 0x2cd PF: > { %1757 = sbr.rel (!%p2510_p5) target bundleno = 743 (0x2e7), region = 67  ;;  %s2389_s7 = sshll.u32 (%p2510_p5), %s2495_s0, 6  ;;  %v1835_v40 = vld [vmem:[%s4015_s16] sm:$0xff] (%p2510_p5)  ;;  %v1837_v42 = vld [vmem:[%s4015_s16 + $0x8] sm:$0xff] (%p2510_p5)  ;;  %v1839_v43 = vld [vmem:[%s4015_s16 + $0x10] sm:$0xff] (%p2510_p5) }
 0x2ce   : > { %s4096_s10 = scalar_lea.vmem (%p2510_p5), %s4157_s3, %s2389_s7  ;;  %v1841_v54 = vld [vmem:[%s4015_s16 + $0x18] sm:$0xff] (%p2510_p5)  ;;  %v1843_v39 = vld [vmem:[%s4015_s16 + $0x20] sm:$0xff] (%p2510_p5)  ;;  %v1845_v20 = vld [vmem:[%s4015_s16 + $0x28] sm:$0xff] (%p2510_p5) }
 0x2cf   : > { %1836 = vst [vmem:[%s4096_s10] sm:$0xff] (%p2510_p5), %v1835_v40  ;;  %v1847_v10 = vld [vmem:[%s4015_s16 + $0x30] sm:$0xff] (%p2510_p5)  ;;  %v1849_v8 = vld [vmem:[%s4015_s16 + $0x38] sm:$0xff] (%p2510_p5)  ;;  %v1851_v36 = vld [vmem:[%s4015_s16 + $0x40] sm:$0xff] (%p2510_p5) }
 0x2d0   : > { %1838 = vst [vmem:[%s4096_s10 + $0x8] sm:$0xff] (%p2510_p5), %v1837_v42  ;;  %v1853_v55 = vld [vmem:[%s4015_s16 + $0x48] sm:$0xff] (%p2510_p5)  ;;  %v1855_v37 = vld [vmem:[%s4015_s16 + $0x50] sm:$0xff] (%p2510_p5)  ;;  %v1857_v38 = vld [vmem:[%s4015_s16 + $0x58] sm:$0xff] (%p2510_p5) }
 0x2d1   : > { %1840 = vst [vmem:[%s4096_s10 + $0x10] sm:$0xff] (%p2510_p5), %v1839_v43  ;;  %v1859_v29 = vld [vmem:[%s4015_s16 + $0x60] sm:$0xff] (%p2510_p5)  ;;  %v1861_v57 = vld [vmem:[%s4015_s16 + $0x68] sm:$0xff] (%p2510_p5)  ;;  %v1863_v35 = vld [vmem:[%s4015_s16 + $0x70] sm:$0xff] (%p2510_p5) }
 0x2d2   : > { %1842 = vst [vmem:[%s4096_s10 + $0x18] sm:$0xff] %v1841_v54  ;;  %v1865_v23 = vld [vmem:[%s4015_s16 + $0x78] sm:$0xff]  ;;  %v1867_v12 = vld [vmem:[%s4015_s16 + $0x80] sm:$0xff]  ;;  %v1869_v26 = vld [vmem:[%s4015_s16 + $0x88] sm:$0xff] }
 0x2d3   : > { %1844 = vst [vmem:[%s4096_s10 + $0x20] sm:$0xff] %v1843_v39  ;;  %v1871_v27 = vld [vmem:[%s4015_s16 + $0x90] sm:$0xff]  ;;  %v1873_v34 = vld [vmem:[%s4015_s16 + $0x98] sm:$0xff]  ;;  %v1875_v18 = vld [vmem:[%s4015_s16 + $0xa0] sm:$0xff] }
 0x2d4   : > { %1846 = vst [vmem:[%s4096_s10 + $0x28] sm:$0xff] %v1845_v20  ;;  %v1877_v53 = vld [vmem:[%s4015_s16 + $0xa8] sm:$0xff]  ;;  %v1879_v32 = vld [vmem:[%s4015_s16 + $0xb0] sm:$0xff]  ;;  %v1881_v44 = vld [vmem:[%s4015_s16 + $0xb8] sm:$0xff] }
 0x2d5   : > { %1848 = vst [vmem:[%s4096_s10 + $0x30] sm:$0xff] %v1847_v10 }
 0x2d6   : > { %1850 = vst [vmem:[%s4096_s10 + $0x38] sm:$0xff] %v1849_v8 }
 0x2d7   : > { %1852 = vst [vmem:[%s4096_s10 + $0x80] sm:$0xff] %v1851_v36 }
 0x2d8   : > { %1854 = vst [vmem:[%s4096_s10 + $0x88] sm:$0xff] %v1853_v55 }
 0x2d9   : > { %1856 = vst [vmem:[%s4096_s10 + $0x90] sm:$0xff] %v1855_v37 }
 0x2da   : > { %1858 = vst [vmem:[%s4096_s10 + $0x98] sm:$0xff] %v1857_v38 }
 0x2db   : > { %1860 = vst [vmem:[%s4096_s10 + $0xa0] sm:$0xff] %v1859_v29 }
 0x2dc   : > { %1862 = vst [vmem:[%s4096_s10 + $0xa8] sm:$0xff] %v1861_v57 }
 0x2dd   : > { %1864 = vst [vmem:[%s4096_s10 + $0xb0] sm:$0xff] %v1863_v35 }
 0x2de   : > { %1866 = vst [vmem:[%s4096_s10 + $0xb8] sm:$0xff] %v1865_v23 }
 0x2df   : > { %1868 = vst [vmem:[%s4096_s10 + $0x100] sm:$0xff] %v1867_v12 }
 0x2e0   : > { %1870 = vst [vmem:[%s4096_s10 + $0x108] sm:$0xff] %v1869_v26 }
 0x2e1   : > { %1872 = vst [vmem:[%s4096_s10 + $0x110] sm:$0xff] %v1871_v27 }
 0x2e2   : > { %1874 = vst [vmem:[%s4096_s10 + $0x118] sm:$0xff] %v1873_v34 }
 0x2e3   : > { %1876 = vst [vmem:[%s4096_s10 + $0x120] sm:$0xff] %v1875_v18 }
 0x2e4   : > { %1878 = vst [vmem:[%s4096_s10 + $0x128] sm:$0xff] %v1877_v53 }
 0x2e5   : > { %1880 = vst [vmem:[%s4096_s10 + $0x130] sm:$0xff] %v1879_v32 }
 0x2e6   : > { %1882 = vst [vmem:[%s4096_s10 + $0x138] sm:$0xff] %v1881_v44 }
 0x2e7 PF: > { %p13_p0 = scmp.ge.s32.totalorder %s2498_s20, 4   ;;  %s4304_s17 = smov %s2442_s18 }
 0x2e8   : > { %s4305_s18 = smov %s2508_s23  ;;  %s4306_s19 = smov %s2498_s20 }
 0x2e9   :  { %15 = sbr.rel (!%p13_p0) target bundleno = 4 (0x4), region = 151 }

</bundles_post_ra>
